<compile_context>
chip_gen: v7x
topology: tpu7x:2x2x1
jax: 0.10.0
libtpu: 0.0.40
codegen_flags: <defaults>
</compile_context>

<pallas_src>
import functools
import math

import jax
import jax.numpy as jnp
from jax.experimental import pallas as pl
from jax.experimental.pallas import tpu as pltpu


# ---------------------------------------------------------------------------
# In-kernel helpers (traced inside the Pallas kernel body)
# ---------------------------------------------------------------------------
def _layer_norm(x, g, b, eps=1e-5):
    """LayerNorm over last dim; x (L, D) f32, g/b (1, D)."""
    mean = jnp.mean(x, axis=-1, keepdims=True)
    c = x - mean
    var = jnp.mean(c * c, axis=-1, keepdims=True)
    return c * jax.lax.rsqrt(var + eps) * g + b


def _attn_heads(q, k, v, bias, wo_t, bo, nhead):
    """Multi-head scaled-dot-product attention + output projection.

    q (Lq, D), k/v (Lk, D), bias None or (1, Lk) additive, wo_t (D, D) is the
    PRE-TRANSPOSED output-projection weight, bo (1, D).  Per-head results are
    accumulated directly into the output projection (no lane-dim concat).
    """
    D = q.shape[-1]
    hd = D // nhead
    q = q * (1.0 / math.sqrt(hd))               # scale once, not per head
    out = None
    for h in range(nhead):                      # static unroll, nhead small
        sl = slice(h * hd, (h + 1) * hd)
        qh = q[:, sl]                           # (Lq, hd)
        kh = k[:, sl]                           # (Lk, hd)
        vh = v[:, sl]                           # (Lk, hd)
        # scores: contract hd dims directly (q @ k^T without explicit .T)
        s = jax.lax.dot_general(qh, kh, (((1,), (1,)), ((), ())),
                                preferred_element_type=jnp.float32)  # (Lq, Lk)
        if bias is not None:
            s = s + bias
        s = s - jnp.max(s, axis=-1, keepdims=True)
        p = jnp.exp(s)
        p = p * pl.reciprocal(jnp.sum(p, axis=-1, keepdims=True), approx=True)
        head = jnp.dot(p, vh, preferred_element_type=jnp.float32)    # (Lq, hd)
        contrib = jnp.dot(head, wo_t[sl, :],
                          preferred_element_type=jnp.float32)        # (Lq, D)
        out = contrib if out is None else out + contrib
    return out + bo


# ---------------------------------------------------------------------------
# Fused decoder-stack kernel: one grid step = (layer, batch element)
# Layer axis outermost => each layer's weights are DMA'd once and stay
# resident in VMEM while all batch elements are processed.
# ---------------------------------------------------------------------------
def fused_decoder_kernel(
        # batch-indexed activations
        embed_ref, mem_ref, qpos_ref, kpos_ref, bias_ref,
        # layer-indexed params: self-attn
        w_qk_s_ref, b_qk_s_ref, w_v_s_ref, b_v_s_ref, w_o_s_ref, b_o_s_ref,
        g1_ref, bn1_ref,
        # cross-attn
        w_q_c_ref, b_q_c_ref, w_k_c_ref, b_k_c_ref, w_v_c_ref, b_v_c_ref,
        w_o_c_ref, b_o_c_ref, g2_ref, bn2_ref,
        # FFN + norm3
        w1_ref, bf1_ref, w2_ref, bf2_ref, g3_ref, bn3_ref,
        # output + scratch
        out_ref, tgt_scr, *, nhead):
    layer = pl.program_id(0)
    b = pl.program_id(1)
    D = embed_ref.shape[-1]

    # initialize the per-batch carried state at the first layer
    @pl.when(layer == 0)
    def _():
        tgt_scr[b] = embed_ref[...].astype(jnp.float32)

    tgt = tgt_scr[b]                            # (Lq, D) f32
    qpos = qpos_ref[...].astype(jnp.float32)    # (Lq, D)
    mem = mem_ref[...].astype(jnp.float32)      # (Lk, D)
    kpos = kpos_ref[...].astype(jnp.float32)    # (Lk, D)
    kbias = bias_ref[...].astype(jnp.float32)   # (1, Lk) additive (-1e9 on pad)

    # ---- self-attention (packed Q/K projection: same input tgt+query_pos) ----
    qk_in = tgt + qpos
    qk = jnp.dot(qk_in, w_qk_s_ref[...],
                 preferred_element_type=jnp.float32) + b_qk_s_ref[...]  # (Lq, 2D)
    q_s = qk[:, :D]
    k_s = qk[:, D:]
    v_s = jnp.dot(tgt, w_v_s_ref[...],
                  preferred_element_type=jnp.float32) + b_v_s_ref[...]
    sa = _attn_heads(q_s, k_s, v_s, None, w_o_s_ref[...], b_o_s_ref[...], nhead)
    tgt = _layer_norm(tgt + sa, g1_ref[...], bn1_ref[...])

    # ---- cross-attention over memory (key-padding bias applied) ----
    q_c = jnp.dot(tgt + qpos, w_q_c_ref[...],
                  preferred_element_type=jnp.float32) + b_q_c_ref[...]
    k_c = jnp.dot(mem + kpos, w_k_c_ref[...],
                  preferred_element_type=jnp.float32) + b_k_c_ref[...]
    v_c = jnp.dot(mem, w_v_c_ref[...],
                  preferred_element_type=jnp.float32) + b_v_c_ref[...]
    ca = _attn_heads(q_c, k_c, v_c, kbias, w_o_c_ref[...], b_o_c_ref[...], nhead)
    tgt = _layer_norm(tgt + ca, g2_ref[...], bn2_ref[...])

    # ---- feed-forward ----
    h = jnp.dot(tgt, w1_ref[...], preferred_element_type=jnp.float32) + bf1_ref[...]
    h = jnp.maximum(h, 0.0)
    y = jnp.dot(h, w2_ref[...], preferred_element_type=jnp.float32) + bf2_ref[...]
    tgt = _layer_norm(tgt + y, g3_ref[...], bn3_ref[...])

    # carry for the next layer; also refresh the (small) output block — the
    # final (last-layer) write is the one that ends up in HBM.
    tgt_scr[b] = tgt
    out_ref[...] = tgt.astype(out_ref.dtype)


# ---------------------------------------------------------------------------
# Host-side wrapper
# ---------------------------------------------------------------------------
PARAM_ORDER = (
    "w_qk_self", "b_qk_self", "w_v_self", "b_v_self", "w_o_self", "b_o_self",
    "g1", "bn1",
    "w_q_cross", "b_q_cross", "w_k_cross", "b_k_cross", "w_v_cross", "b_v_cross",
    "w_o_cross", "b_o_cross", "g2", "bn2",
    "w1", "bf1", "w2", "bf2", "g3", "bn3",
)


def temp_transformer_forward(embed, hist_embed, query_embed, pos_embed,
                             key_padding_mask, params, nhead):
    """Equivalent to TempTransformer.forward (inference, dropout = identity).

    embed/query_embed: (B, Lq, D); hist_embed/pos_embed: (B, Lk, D);
    key_padding_mask: (B, Lk) bool, True = padded. params: dict of arrays with
    leading num_layers axis, Linear weights stored PRE-TRANSPOSED (in, out).
    """
    B, Lq, D = embed.shape
    Lk = hist_embed.shape[1]
    num_layers = params["w_qk_self"].shape[0]

    # additive key-padding bias computed once per forward
    bias = jnp.where(key_padding_mask, -1e9, 0.0).astype(jnp.float32)
    bias = bias.reshape(B, 1, Lk)

    param_list = [params[name] for name in PARAM_ORDER]

    def batch_spec(arr):
        return pl.BlockSpec((None,) + arr.shape[1:], lambda l, b: (b, 0, 0))

    def layer_spec(arr):
        # Depends only on the (outer) layer index -> weight block stays
        # resident in VMEM across the whole inner batch sweep.
        return pl.BlockSpec((None,) + arr.shape[1:], lambda l, b: (l, 0, 0))

    in_specs = ([batch_spec(embed), batch_spec(hist_embed),
                 batch_spec(query_embed), batch_spec(pos_embed),
                 batch_spec(bias)]
                + [layer_spec(p) for p in param_list])

    kernel = functools.partial(fused_decoder_kernel, nhead=nhead)

    return pl.pallas_call(
        kernel,
        out_shape=jax.ShapeDtypeStruct((B, Lq, D), jnp.float32),
        grid=(num_layers, B),
        in_specs=in_specs,
        out_specs=pl.BlockSpec((None, Lq, D), lambda l, b: (b, 0, 0)),
        scratch_shapes=[pltpu.VMEM((B, Lq, D), jnp.float32)],
        compiler_params=pltpu.CompilerParams(
            dimension_semantics=("arbitrary", "arbitrary")),
    )(embed, hist_embed, query_embed, pos_embed, bias, *param_list)


# ---------------------------------------------------------------------------
# Deterministic parameter init (weights generated directly in pre-transposed
# (in, out) layout; when loading a real torch checkpoint, transpose nn.Linear
# weights and slice MultiheadAttention's packed in_proj into wq/wk/wv).
# ---------------------------------------------------------------------------
def init_params(key, num_layers, d_model, dff, dtype=jnp.float32):
    def dense_t(k, d_in, d_out):
        return (jax.random.normal(k, (d_in, d_out), jnp.float32) * 0.02).astype(dtype)

    layer_keys = jax.random.split(key, num_layers)
    layers = []
    for lk in layer_keys:
        ks = jax.random.split(lk, 10)
        wq_s = dense_t(ks[0], d_model, d_model)
        wk_s = dense_t(ks[1], d_model, d_model)
        layers.append(dict(
            w_qk_self=jnp.concatenate([wq_s, wk_s], axis=1),        # (D, 2D)
            b_qk_self=jnp.zeros((1, 2 * d_model), dtype),
            w_v_self=dense_t(ks[2], d_model, d_model),
            b_v_self=jnp.zeros((1, d_model), dtype),
            w_o_self=dense_t(ks[3], d_model, d_model),
            b_o_self=jnp.zeros((1, d_model), dtype),
            g1=jnp.ones((1, d_model), dtype), bn1=jnp.zeros((1, d_model), dtype),
            w_q_cross=dense_t(ks[4], d_model, d_model),
            b_q_cross=jnp.zeros((1, d_model), dtype),
            w_k_cross=dense_t(ks[5], d_model, d_model),
            b_k_cross=jnp.zeros((1, d_model), dtype),
            w_v_cross=dense_t(ks[6], d_model, d_model),
            b_v_cross=jnp.zeros((1, d_model), dtype),
            w_o_cross=dense_t(ks[7], d_model, d_model),
            b_o_cross=jnp.zeros((1, d_model), dtype),
            g2=jnp.ones((1, d_model), dtype), bn2=jnp.zeros((1, d_model), dtype),
            w1=dense_t(ks[8], d_model, dff),
            bf1=jnp.zeros((1, dff), dtype),
            w2=dense_t(ks[9], dff, d_model),
            bf2=jnp.zeros((1, d_model), dtype),
            g3=jnp.ones((1, d_model), dtype), bn3=jnp.zeros((1, d_model), dtype),
        ))
    # stack per-layer params along a leading num_layers axis
    return {k: jnp.stack([lp[k] for lp in layers], axis=0) for k in layers[0]}


# ---------------------------------------------------------------------------
if __name__ == "__main__":
    B, Lq, Lk, D = 2, 8, 16, 32
    NHEAD, DFF, NUM_LAYERS = 4, 64, 2

    root = jax.random.PRNGKey(0)
    k_in, k_par = jax.random.split(root)
    ki = jax.random.split(k_in, 4)

    embed = jax.random.normal(ki[0], (B, Lq, D), jnp.float32)        # queries
    hist_embed = jax.random.normal(ki[1], (B, Lk, D), jnp.float32)   # memory
    query_embed = jax.random.normal(ki[2], (B, Lq, D), jnp.float32)  # query pos
    pos_embed = jax.random.normal(ki[3], (B, Lk, D), jnp.float32)    # memory pos
    # key_padding_mask: True = padded (last 3 memory positions of each batch)
    key_padding_mask = jnp.broadcast_to(
        jnp.arange(Lk)[None, :] >= (Lk - 3), (B, Lk))

    params = init_params(k_par, NUM_LAYERS, D, DFF)

    # TODO(synk): dropout layers are identity at inference and are omitted.
    fwd = jax.jit(functools.partial(temp_transformer_forward, nhead=NHEAD))
    out = fwd(embed, hist_embed, query_embed, pos_embed, key_padding_mask, params)
    out = jax.block_until_ready(out)

    assert out.shape == (B, Lq, D) and out.dtype == jnp.float32
    assert bool(jnp.all(jnp.isfinite(out)))
    print("KERNEL_OK")
</pallas_src>

<mosaic_0001>
module attributes {stable_mosaic.version = 11 : i64} {
  func.func @fused_decoder_kernel(%arg0: i32, %arg1: i32, %arg2: memref<1x8x32xf32, #tpu.memory_space<vmem>>, %arg3: memref<1x16x32xf32, #tpu.memory_space<vmem>>, %arg4: memref<1x8x32xf32, #tpu.memory_space<vmem>>, %arg5: memref<1x16x32xf32, #tpu.memory_space<vmem>>, %arg6: memref<1x1x16xf32, #tpu.memory_space<vmem>>, %arg7: memref<1x32x64xf32, #tpu.memory_space<vmem>>, %arg8: memref<1x1x64xf32, #tpu.memory_space<vmem>>, %arg9: memref<1x32x32xf32, #tpu.memory_space<vmem>>, %arg10: memref<1x1x32xf32, #tpu.memory_space<vmem>>, %arg11: memref<1x32x32xf32, #tpu.memory_space<vmem>>, %arg12: memref<1x1x32xf32, #tpu.memory_space<vmem>>, %arg13: memref<1x1x32xf32, #tpu.memory_space<vmem>>, %arg14: memref<1x1x32xf32, #tpu.memory_space<vmem>>, %arg15: memref<1x32x32xf32, #tpu.memory_space<vmem>>, %arg16: memref<1x1x32xf32, #tpu.memory_space<vmem>>, %arg17: memref<1x32x32xf32, #tpu.memory_space<vmem>>, %arg18: memref<1x1x32xf32, #tpu.memory_space<vmem>>, %arg19: memref<1x32x32xf32, #tpu.memory_space<vmem>>, %arg20: memref<1x1x32xf32, #tpu.memory_space<vmem>>, %arg21: memref<1x32x32xf32, #tpu.memory_space<vmem>>, %arg22: memref<1x1x32xf32, #tpu.memory_space<vmem>>, %arg23: memref<1x1x32xf32, #tpu.memory_space<vmem>>, %arg24: memref<1x1x32xf32, #tpu.memory_space<vmem>>, %arg25: memref<1x32x64xf32, #tpu.memory_space<vmem>>, %arg26: memref<1x1x64xf32, #tpu.memory_space<vmem>>, %arg27: memref<1x64x32xf32, #tpu.memory_space<vmem>>, %arg28: memref<1x1x32xf32, #tpu.memory_space<vmem>>, %arg29: memref<1x1x32xf32, #tpu.memory_space<vmem>>, %arg30: memref<1x1x32xf32, #tpu.memory_space<vmem>>, %arg31: memref<1x8x32xf32, #tpu.memory_space<vmem>>, %arg32: memref<2x8x32xf32, #tpu.memory_space<vmem>>) attributes {dimension_semantics = [#tpu.dimension_semantics<arbitrary>, #tpu.dimension_semantics<arbitrary>], iteration_bounds = array<i64: 2, 2>, scalar_prefetch = 0 : i64, scratch_operands = 1 : i64, tpu.core_type = #tpu.core_type<tc>, window_params = [{transform_indices = @transform_0, window_bounds = array<i64: 1, 8, 32>}, {transform_indices = @transform_1, window_bounds = array<i64: 1, 16, 32>}, {transform_indices = @transform_2, window_bounds = array<i64: 1, 8, 32>}, {transform_indices = @transform_3, window_bounds = array<i64: 1, 16, 32>}, {transform_indices = @transform_4, window_bounds = array<i64: 1, 1, 16>}, {transform_indices = @transform_5, window_bounds = array<i64: 1, 32, 64>}, {transform_indices = @transform_6, window_bounds = array<i64: 1, 1, 64>}, {transform_indices = @transform_7, window_bounds = array<i64: 1, 32, 32>}, {transform_indices = @transform_8, window_bounds = array<i64: 1, 1, 32>}, {transform_indices = @transform_9, window_bounds = array<i64: 1, 32, 32>}, {transform_indices = @transform_10, window_bounds = array<i64: 1, 1, 32>}, {transform_indices = @transform_11, window_bounds = array<i64: 1, 1, 32>}, {transform_indices = @transform_12, window_bounds = array<i64: 1, 1, 32>}, {transform_indices = @transform_13, window_bounds = array<i64: 1, 32, 32>}, {transform_indices = @transform_14, window_bounds = array<i64: 1, 1, 32>}, {transform_indices = @transform_15, window_bounds = array<i64: 1, 32, 32>}, {transform_indices = @transform_16, window_bounds = array<i64: 1, 1, 32>}, {transform_indices = @transform_17, window_bounds = array<i64: 1, 32, 32>}, {transform_indices = @transform_18, window_bounds = array<i64: 1, 1, 32>}, {transform_indices = @transform_19, window_bounds = array<i64: 1, 32, 32>}, {transform_indices = @transform_20, window_bounds = array<i64: 1, 1, 32>}, {transform_indices = @transform_21, window_bounds = array<i64: 1, 1, 32>}, {transform_indices = @transform_22, window_bounds = array<i64: 1, 1, 32>}, {transform_indices = @transform_23, window_bounds = array<i64: 1, 32, 64>}, {transform_indices = @transform_24, window_bounds = array<i64: 1, 1, 64>}, {transform_indices = @transform_25, window_bounds = array<i64: 1, 64, 32>}, {transform_indices = @transform_26, window_bounds = array<i64: 1, 1, 32>}, {transform_indices = @transform_27, window_bounds = array<i64: 1, 1, 32>}, {transform_indices = @transform_28, window_bounds = array<i64: 1, 1, 32>}, {transform_indices = @transform_29, window_bounds = array<i64: 1, 8, 32>}]} {
    %c0_i32 = arith.constant 0 : i32
    %0 = arith.cmpi eq, %arg0, %c0_i32 : i32
    %1 = arith.extui %0 : i1 to i32
    %c0_i32_0 = arith.constant 0 : i32
    %2 = arith.cmpi ne, %1, %c0_i32_0 : i32
    scf.if %2 {
      %c0_155 = arith.constant 0 : index
      %c0_156 = arith.constant 0 : index
      %c0_157 = arith.constant 0 : index
      %318 = vector.load %arg2[%c0_155, %c0_156, %c0_157] : memref<1x8x32xf32, #tpu.memory_space<vmem>>, vector<1x8x32xf32>
      %319 = vector.shape_cast %318 : vector<1x8x32xf32> to vector<8x32xf32>
      %320 = arith.index_cast %arg1 : i32 to index
      %c0_158 = arith.constant 0 : index
      %c0_159 = arith.constant 0 : index
      %321 = vector.load %arg32[%320, %c0_158, %c0_159] : memref<2x8x32xf32, #tpu.memory_space<vmem>>, vector<1x8x32xf32>
      %322 = vector.shape_cast %321 : vector<1x8x32xf32> to vector<8x32xf32>
      %323 = vector.shape_cast %319 : vector<8x32xf32> to vector<1x8x32xf32>
      tpu.vector_store %arg32[%320, %c0_158, %c0_159], %323 {strides = array<i32>} : memref<2x8x32xf32, #tpu.memory_space<vmem>>, vector<1x8x32xf32>,
    } else {
    }
    %3 = arith.index_cast %arg1 : i32 to index
    %c0 = arith.constant 0 : index
    %c0_1 = arith.constant 0 : index
    %4 = vector.load %arg32[%3, %c0, %c0_1] : memref<2x8x32xf32, #tpu.memory_space<vmem>>, vector<1x8x32xf32>
    %5 = vector.shape_cast %4 : vector<1x8x32xf32> to vector<8x32xf32>
    %c0_2 = arith.constant 0 : index
    %c0_3 = arith.constant 0 : index
    %c0_4 = arith.constant 0 : index
    %6 = vector.load %arg4[%c0_2, %c0_3, %c0_4] : memref<1x8x32xf32, #tpu.memory_space<vmem>>, vector<1x8x32xf32>
    %7 = vector.shape_cast %6 : vector<1x8x32xf32> to vector<8x32xf32>
    %c0_5 = arith.constant 0 : index
    %c0_6 = arith.constant 0 : index
    %c0_7 = arith.constant 0 : index
    %8 = vector.load %arg3[%c0_5, %c0_6, %c0_7] : memref<1x16x32xf32, #tpu.memory_space<vmem>>, vector<1x16x32xf32>
    %9 = vector.shape_cast %8 : vector<1x16x32xf32> to vector<16x32xf32>
    %c0_8 = arith.constant 0 : index
    %c0_9 = arith.constant 0 : index
    %c0_10 = arith.constant 0 : index
    %10 = vector.load %arg5[%c0_8, %c0_9, %c0_10] : memref<1x16x32xf32, #tpu.memory_space<vmem>>, vector<1x16x32xf32>
    %11 = vector.shape_cast %10 : vector<1x16x32xf32> to vector<16x32xf32>
    %c0_11 = arith.constant 0 : index
    %c0_12 = arith.constant 0 : index
    %c0_13 = arith.constant 0 : index
    %12 = vector.load %arg6[%c0_11, %c0_12, %c0_13] : memref<1x1x16xf32, #tpu.memory_space<vmem>>, vector<1x1x16xf32>
    %13 = vector.shape_cast %12 : vector<1x1x16xf32> to vector<1x16xf32>
    %14 = arith.addf %5, %7 : vector<8x32xf32>
    %c0_14 = arith.constant 0 : index
    %c0_15 = arith.constant 0 : index
    %c0_16 = arith.constant 0 : index
    %15 = vector.load %arg7[%c0_14, %c0_15, %c0_16] : memref<1x32x64xf32, #tpu.memory_space<vmem>>, vector<1x32x64xf32>
    %16 = vector.shape_cast %15 : vector<1x32x64xf32> to vector<32x64xf32>
    %cst = arith.constant dense<0.000000e+00> : vector<8x64xf32>
    %17 = tpu.matmul %14, %16, %cst {dimension_numbers = #tpu.dot_dimension_numbers<[1], [0], [0], [1], [0, 0, 1, 1], [], []>} : vector<8x32xf32>, vector<32x64xf32>, vector<8x64xf32> -> vector<8x64xf32>
    %c0_17 = arith.constant 0 : index
    %c0_18 = arith.constant 0 : index
    %c0_19 = arith.constant 0 : index
    %18 = vector.load %arg8[%c0_17, %c0_18, %c0_19] : memref<1x1x64xf32, #tpu.memory_space<vmem>>, vector<1x1x64xf32>
    %19 = vector.shape_cast %18 : vector<1x1x64xf32> to vector<1x64xf32>
    %20 = vector.broadcast %19 : vector<1x64xf32> to vector<8x64xf32>
    %21 = arith.addf %17, %20 : vector<8x64xf32>
    %22 = vector.extract_strided_slice %21 {offsets = [0, 0], sizes = [8, 32], strides = [1, 1]} : vector<8x64xf32> to vector<8x32xf32>
    %23 = vector.extract_strided_slice %21 {offsets = [0, 32], sizes = [8, 32], strides = [1, 1]} : vector<8x64xf32> to vector<8x32xf32>
    %c0_20 = arith.constant 0 : index
    %c0_21 = arith.constant 0 : index
    %c0_22 = arith.constant 0 : index
    %24 = vector.load %arg9[%c0_20, %c0_21, %c0_22] : memref<1x32x32xf32, #tpu.memory_space<vmem>>, vector<1x32x32xf32>
    %25 = vector.shape_cast %24 : vector<1x32x32xf32> to vector<32x32xf32>
    %cst_23 = arith.constant dense<0.000000e+00> : vector<8x32xf32>
    %26 = tpu.matmul %5, %25, %cst_23 {dimension_numbers = #tpu.dot_dimension_numbers<[1], [0], [0], [1], [0, 0, 1, 1], [], []>} : vector<8x32xf32>, vector<32x32xf32>, vector<8x32xf32> -> vector<8x32xf32>
    %c0_24 = arith.constant 0 : index
    %c0_25 = arith.constant 0 : index
    %c0_26 = arith.constant 0 : index
    %27 = vector.load %arg10[%c0_24, %c0_25, %c0_26] : memref<1x1x32xf32, #tpu.memory_space<vmem>>, vector<1x1x32xf32>
    %28 = vector.shape_cast %27 : vector<1x1x32xf32> to vector<1x32xf32>
    %29 = vector.broadcast %28 : vector<1x32xf32> to vector<8x32xf32>
    %30 = arith.addf %26, %29 : vector<8x32xf32>
    %c0_27 = arith.constant 0 : index
    %c0_28 = arith.constant 0 : index
    %c0_29 = arith.constant 0 : index
    %31 = vector.load %arg11[%c0_27, %c0_28, %c0_29] : memref<1x32x32xf32, #tpu.memory_space<vmem>>, vector<1x32x32xf32>
    %32 = vector.shape_cast %31 : vector<1x32x32xf32> to vector<32x32xf32>
    %c0_30 = arith.constant 0 : index
    %c0_31 = arith.constant 0 : index
    %c0_32 = arith.constant 0 : index
    %33 = vector.load %arg12[%c0_30, %c0_31, %c0_32] : memref<1x1x32xf32, #tpu.memory_space<vmem>>, vector<1x1x32xf32>
    %34 = vector.shape_cast %33 : vector<1x1x32xf32> to vector<1x32xf32>
    %cst_33 = arith.constant 0.353553385 : f32
    %35 = vector.broadcast %cst_33 : f32 to vector<8x32xf32>
    %36 = arith.mulf %22, %35 : vector<8x32xf32>
    %37 = vector.extract_strided_slice %36 {offsets = [0, 0], sizes = [8, 8], strides = [1, 1]} : vector<8x32xf32> to vector<8x8xf32>
    %38 = vector.extract_strided_slice %23 {offsets = [0, 0], sizes = [8, 8], strides = [1, 1]} : vector<8x32xf32> to vector<8x8xf32>
    %39 = vector.extract_strided_slice %30 {offsets = [0, 0], sizes = [8, 8], strides = [1, 1]} : vector<8x32xf32> to vector<8x8xf32>
    %cst_34 = arith.constant dense<0.000000e+00> : vector<8x8xf32>
    %40 = tpu.matmul %37, %38, %cst_34 {dimension_numbers = #tpu.dot_dimension_numbers<[1], [1], [0], [0], [0, 0, 1, 0], [], []>} : vector<8x8xf32>, vector<8x8xf32>, vector<8x8xf32> -> vector<8x8xf32>
    %cst_35 = arith.constant dense<0xFF800000> : vector<8xf32>
    %41 = vector.multi_reduction <maximumf>, %40, %cst_35 [1] : vector<8x8xf32> to vector<8xf32>
    %42 = vector.shape_cast %41 : vector<8xf32> to vector<8x1xf32>
    %43 = vector.broadcast %42 : vector<8x1xf32> to vector<8x8xf32>
    %44 = arith.subf %40, %43 : vector<8x8xf32>
    %45 = math.exp %44 : vector<8x8xf32>
    %cst_36 = arith.constant dense<0.000000e+00> : vector<8xf32>
    %46 = vector.multi_reduction <add>, %45, %cst_36 [1] : vector<8x8xf32> to vector<8xf32>
    %47 = vector.shape_cast %46 : vector<8xf32> to vector<8x1xf32>
    %48 = tpu.reciprocal %47 {approx = true} : vector<8x1xf32> -> vector<8x1xf32>
    %49 = vector.broadcast %48 : vector<8x1xf32> to vector<8x8xf32>
    %50 = arith.mulf %45, %49 : vector<8x8xf32>
    %cst_37 = arith.constant dense<0.000000e+00> : vector<8x8xf32>
    %51 = tpu.matmul %50, %39, %cst_37 {dimension_numbers = #tpu.dot_dimension_numbers<[1], [0], [0], [1], [0, 0, 1, 1], [], []>} : vector<8x8xf32>, vector<8x8xf32>, vector<8x8xf32> -> vector<8x8xf32>
    %52 = vector.extract_strided_slice %32 {offsets = [0, 0], sizes = [8, 32], strides = [1, 1]} : vector<32x32xf32> to vector<8x32xf32>
    %cst_38 = arith.constant dense<0.000000e+00> : vector<8x32xf32>
    %53 = tpu.matmul %51, %52, %cst_38 {dimension_numbers = #tpu.dot_dimension_numbers<[1], [0], [0], [1], [0, 0, 1, 1], [], []>} : vector<8x8xf32>, vector<8x32xf32>, vector<8x32xf32> -> vector<8x32xf32>
    %54 = vector.extract_strided_slice %36 {offsets = [0, 8], sizes = [8, 8], strides = [1, 1]} : vector<8x32xf32> to vector<8x8xf32>
    %55 = vector.extract_strided_slice %23 {offsets = [0, 8], sizes = [8, 8], strides = [1, 1]} : vector<8x32xf32> to vector<8x8xf32>
    %56 = vector.extract_strided_slice %30 {offsets = [0, 8], sizes = [8, 8], strides = [1, 1]} : vector<8x32xf32> to vector<8x8xf32>
    %cst_39 = arith.constant dense<0.000000e+00> : vector<8x8xf32>
    %57 = tpu.matmul %54, %55, %cst_39 {dimension_numbers = #tpu.dot_dimension_numbers<[1], [1], [0], [0], [0, 0, 1, 0], [], []>} : vector<8x8xf32>, vector<8x8xf32>, vector<8x8xf32> -> vector<8x8xf32>
    %cst_40 = arith.constant dense<0xFF800000> : vector<8xf32>
    %58 = vector.multi_reduction <maximumf>, %57, %cst_40 [1] : vector<8x8xf32> to vector<8xf32>
    %59 = vector.shape_cast %58 : vector<8xf32> to vector<8x1xf32>
    %60 = vector.broadcast %59 : vector<8x1xf32> to vector<8x8xf32>
    %61 = arith.subf %57, %60 : vector<8x8xf32>
    %62 = math.exp %61 : vector<8x8xf32>
    %cst_41 = arith.constant dense<0.000000e+00> : vector<8xf32>
    %63 = vector.multi_reduction <add>, %62, %cst_41 [1] : vector<8x8xf32> to vector<8xf32>
    %64 = vector.shape_cast %63 : vector<8xf32> to vector<8x1xf32>
    %65 = tpu.reciprocal %64 {approx = true} : vector<8x1xf32> -> vector<8x1xf32>
    %66 = vector.broadcast %65 : vector<8x1xf32> to vector<8x8xf32>
    %67 = arith.mulf %62, %66 : vector<8x8xf32>
    %cst_42 = arith.constant dense<0.000000e+00> : vector<8x8xf32>
    %68 = tpu.matmul %67, %56, %cst_42 {dimension_numbers = #tpu.dot_dimension_numbers<[1], [0], [0], [1], [0, 0, 1, 1], [], []>} : vector<8x8xf32>, vector<8x8xf32>, vector<8x8xf32> -> vector<8x8xf32>
    %69 = vector.extract_strided_slice %32 {offsets = [8, 0], sizes = [8, 32], strides = [1, 1]} : vector<32x32xf32> to vector<8x32xf32>
    %cst_43 = arith.constant dense<0.000000e+00> : vector<8x32xf32>
    %70 = tpu.matmul %68, %69, %cst_43 {dimension_numbers = #tpu.dot_dimension_numbers<[1], [0], [0], [1], [0, 0, 1, 1], [], []>} : vector<8x8xf32>, vector<8x32xf32>, vector<8x32xf32> -> vector<8x32xf32>
    %71 = arith.addf %53, %70 : vector<8x32xf32>
    %72 = vector.extract_strided_slice %36 {offsets = [0, 16], sizes = [8, 8], strides = [1, 1]} : vector<8x32xf32> to vector<8x8xf32>
    %73 = vector.extract_strided_slice %23 {offsets = [0, 16], sizes = [8, 8], strides = [1, 1]} : vector<8x32xf32> to vector<8x8xf32>
    %74 = vector.extract_strided_slice %30 {offsets = [0, 16], sizes = [8, 8], strides = [1, 1]} : vector<8x32xf32> to vector<8x8xf32>
    %cst_44 = arith.constant dense<0.000000e+00> : vector<8x8xf32>
    %75 = tpu.matmul %72, %73, %cst_44 {dimension_numbers = #tpu.dot_dimension_numbers<[1], [1], [0], [0], [0, 0, 1, 0], [], []>} : vector<8x8xf32>, vector<8x8xf32>, vector<8x8xf32> -> vector<8x8xf32>
    %cst_45 = arith.constant dense<0xFF800000> : vector<8xf32>
    %76 = vector.multi_reduction <maximumf>, %75, %cst_45 [1] : vector<8x8xf32> to vector<8xf32>
    %77 = vector.shape_cast %76 : vector<8xf32> to vector<8x1xf32>
    %78 = vector.broadcast %77 : vector<8x1xf32> to vector<8x8xf32>
    %79 = arith.subf %75, %78 : vector<8x8xf32>
    %80 = math.exp %79 : vector<8x8xf32>
    %cst_46 = arith.constant dense<0.000000e+00> : vector<8xf32>
    %81 = vector.multi_reduction <add>, %80, %cst_46 [1] : vector<8x8xf32> to vector<8xf32>
    %82 = vector.shape_cast %81 : vector<8xf32> to vector<8x1xf32>
    %83 = tpu.reciprocal %82 {approx = true} : vector<8x1xf32> -> vector<8x1xf32>
    %84 = vector.broadcast %83 : vector<8x1xf32> to vector<8x8xf32>
    %85 = arith.mulf %80, %84 : vector<8x8xf32>
    %cst_47 = arith.constant dense<0.000000e+00> : vector<8x8xf32>
    %86 = tpu.matmul %85, %74, %cst_47 {dimension_numbers = #tpu.dot_dimension_numbers<[1], [0], [0], [1], [0, 0, 1, 1], [], []>} : vector<8x8xf32>, vector<8x8xf32>, vector<8x8xf32> -> vector<8x8xf32>
    %87 = vector.extract_strided_slice %32 {offsets = [16, 0], sizes = [8, 32], strides = [1, 1]} : vector<32x32xf32> to vector<8x32xf32>
    %cst_48 = arith.constant dense<0.000000e+00> : vector<8x32xf32>
    %88 = tpu.matmul %86, %87, %cst_48 {dimension_numbers = #tpu.dot_dimension_numbers<[1], [0], [0], [1], [0, 0, 1, 1], [], []>} : vector<8x8xf32>, vector<8x32xf32>, vector<8x32xf32> -> vector<8x32xf32>
    %89 = arith.addf %71, %88 : vector<8x32xf32>
    %90 = vector.extract_strided_slice %36 {offsets = [0, 24], sizes = [8, 8], strides = [1, 1]} : vector<8x32xf32> to vector<8x8xf32>
    %91 = vector.extract_strided_slice %23 {offsets = [0, 24], sizes = [8, 8], strides = [1, 1]} : vector<8x32xf32> to vector<8x8xf32>
    %92 = vector.extract_strided_slice %30 {offsets = [0, 24], sizes = [8, 8], strides = [1, 1]} : vector<8x32xf32> to vector<8x8xf32>
    %cst_49 = arith.constant dense<0.000000e+00> : vector<8x8xf32>
    %93 = tpu.matmul %90, %91, %cst_49 {dimension_numbers = #tpu.dot_dimension_numbers<[1], [1], [0], [0], [0, 0, 1, 0], [], []>} : vector<8x8xf32>, vector<8x8xf32>, vector<8x8xf32> -> vector<8x8xf32>
    %cst_50 = arith.constant dense<0xFF800000> : vector<8xf32>
    %94 = vector.multi_reduction <maximumf>, %93, %cst_50 [1] : vector<8x8xf32> to vector<8xf32>
    %95 = vector.shape_cast %94 : vector<8xf32> to vector<8x1xf32>
    %96 = vector.broadcast %95 : vector<8x1xf32> to vector<8x8xf32>
    %97 = arith.subf %93, %96 : vector<8x8xf32>
    %98 = math.exp %97 : vector<8x8xf32>
    %cst_51 = arith.constant dense<0.000000e+00> : vector<8xf32>
    %99 = vector.multi_reduction <add>, %98, %cst_51 [1] : vector<8x8xf32> to vector<8xf32>
    %100 = vector.shape_cast %99 : vector<8xf32> to vector<8x1xf32>
    %101 = tpu.reciprocal %100 {approx = true} : vector<8x1xf32> -> vector<8x1xf32>
    %102 = vector.broadcast %101 : vector<8x1xf32> to vector<8x8xf32>
    %103 = arith.mulf %98, %102 : vector<8x8xf32>
    %cst_52 = arith.constant dense<0.000000e+00> : vector<8x8xf32>
    %104 = tpu.matmul %103, %92, %cst_52 {dimension_numbers = #tpu.dot_dimension_numbers<[1], [0], [0], [1], [0, 0, 1, 1], [], []>} : vector<8x8xf32>, vector<8x8xf32>, vector<8x8xf32> -> vector<8x8xf32>
    %105 = vector.extract_strided_slice %32 {offsets = [24, 0], sizes = [8, 32], strides = [1, 1]} : vector<32x32xf32> to vector<8x32xf32>
    %cst_53 = arith.constant dense<0.000000e+00> : vector<8x32xf32>
    %106 = tpu.matmul %104, %105, %cst_53 {dimension_numbers = #tpu.dot_dimension_numbers<[1], [0], [0], [1], [0, 0, 1, 1], [], []>} : vector<8x8xf32>, vector<8x32xf32>, vector<8x32xf32> -> vector<8x32xf32>
    %107 = arith.addf %89, %106 : vector<8x32xf32>
    %108 = vector.broadcast %34 : vector<1x32xf32> to vector<8x32xf32>
    %109 = arith.addf %107, %108 : vector<8x32xf32>
    %110 = arith.addf %5, %109 : vector<8x32xf32>
    %c0_54 = arith.constant 0 : index
    %c0_55 = arith.constant 0 : index
    %c0_56 = arith.constant 0 : index
    %111 = vector.load %arg13[%c0_54, %c0_55, %c0_56] : memref<1x1x32xf32, #tpu.memory_space<vmem>>, vector<1x1x32xf32>
    %112 = vector.shape_cast %111 : vector<1x1x32xf32> to vector<1x32xf32>
    %c0_57 = arith.constant 0 : index
    %c0_58 = arith.constant 0 : index
    %c0_59 = arith.constant 0 : index
    %113 = vector.load %arg14[%c0_57, %c0_58, %c0_59] : memref<1x1x32xf32, #tpu.memory_space<vmem>>, vector<1x1x32xf32>
    %114 = vector.shape_cast %113 : vector<1x1x32xf32> to vector<1x32xf32>
    %cst_60 = arith.constant dense<0.000000e+00> : vector<8xf32>
    %115 = vector.multi_reduction <add>, %110, %cst_60 [1] : vector<8x32xf32> to vector<8xf32>
    %116 = vector.shape_cast %115 : vector<8xf32> to vector<8x1xf32>
    %cst_61 = arith.constant 3.200000e+01 : f32
    %117 = vector.broadcast %cst_61 : f32 to vector<8x1xf32>
    %118 = arith.divf %116, %117 : vector<8x1xf32>
    %119 = vector.broadcast %118 : vector<8x1xf32> to vector<8x32xf32>
    %120 = arith.subf %110, %119 : vector<8x32xf32>
    %121 = arith.mulf %120, %120 : vector<8x32xf32>
    %cst_62 = arith.constant dense<0.000000e+00> : vector<8xf32>
    %122 = vector.multi_reduction <add>, %121, %cst_62 [1] : vector<8x32xf32> to vector<8xf32>
    %123 = vector.shape_cast %122 : vector<8xf32> to vector<8x1xf32>
    %cst_63 = arith.constant 3.200000e+01 : f32
    %124 = vector.broadcast %cst_63 : f32 to vector<8x1xf32>
    %125 = arith.divf %123, %124 : vector<8x1xf32>
    %cst_64 = arith.constant 9.99999974E-6 : f32
    %126 = vector.broadcast %cst_64 : f32 to vector<8x1xf32>
    %127 = arith.addf %125, %126 : vector<8x1xf32>
    %128 = math.rsqrt %127 : vector<8x1xf32>
    %129 = vector.broadcast %128 : vector<8x1xf32> to vector<8x32xf32>
    %130 = arith.mulf %120, %129 : vector<8x32xf32>
    %131 = vector.broadcast %112 : vector<1x32xf32> to vector<8x32xf32>
    %132 = arith.mulf %130, %131 : vector<8x32xf32>
    %133 = vector.broadcast %114 : vector<1x32xf32> to vector<8x32xf32>
    %134 = arith.addf %132, %133 : vector<8x32xf32>
    %135 = arith.addf %134, %7 : vector<8x32xf32>
    %c0_65 = arith.constant 0 : index
    %c0_66 = arith.constant 0 : index
    %c0_67 = arith.constant 0 : index
    %136 = vector.load %arg15[%c0_65, %c0_66, %c0_67] : memref<1x32x32xf32, #tpu.memory_space<vmem>>, vector<1x32x32xf32>
    %137 = vector.shape_cast %136 : vector<1x32x32xf32> to vector<32x32xf32>
    %cst_68 = arith.constant dense<0.000000e+00> : vector<8x32xf32>
    %138 = tpu.matmul %135, %137, %cst_68 {dimension_numbers = #tpu.dot_dimension_numbers<[1], [0], [0], [1], [0, 0, 1, 1], [], []>} : vector<8x32xf32>, vector<32x32xf32>, vector<8x32xf32> -> vector<8x32xf32>
    %c0_69 = arith.constant 0 : index
    %c0_70 = arith.constant 0 : index
    %c0_71 = arith.constant 0 : index
    %139 = vector.load %arg16[%c0_69, %c0_70, %c0_71] : memref<1x1x32xf32, #tpu.memory_space<vmem>>, vector<1x1x32xf32>
    %140 = vector.shape_cast %139 : vector<1x1x32xf32> to vector<1x32xf32>
    %141 = vector.broadcast %140 : vector<1x32xf32> to vector<8x32xf32>
    %142 = arith.addf %138, %141 : vector<8x32xf32>
    %143 = arith.addf %9, %11 : vector<16x32xf32>
    %c0_72 = arith.constant 0 : index
    %c0_73 = arith.constant 0 : index
    %c0_74 = arith.constant 0 : index
    %144 = vector.load %arg17[%c0_72, %c0_73, %c0_74] : memref<1x32x32xf32, #tpu.memory_space<vmem>>, vector<1x32x32xf32>
    %145 = vector.shape_cast %144 : vector<1x32x32xf32> to vector<32x32xf32>
    %cst_75 = arith.constant dense<0.000000e+00> : vector<16x32xf32>
    %146 = tpu.matmul %143, %145, %cst_75 {dimension_numbers = #tpu.dot_dimension_numbers<[1], [0], [0], [1], [0, 0, 1, 1], [], []>} : vector<16x32xf32>, vector<32x32xf32>, vector<16x32xf32> -> vector<16x32xf32>
    %c0_76 = arith.constant 0 : index
    %c0_77 = arith.constant 0 : index
    %c0_78 = arith.constant 0 : index
    %147 = vector.load %arg18[%c0_76, %c0_77, %c0_78] : memref<1x1x32xf32, #tpu.memory_space<vmem>>, vector<1x1x32xf32>
    %148 = vector.shape_cast %147 : vector<1x1x32xf32> to vector<1x32xf32>
    %149 = vector.broadcast %148 : vector<1x32xf32> to vector<16x32xf32>
    %150 = arith.addf %146, %149 : vector<16x32xf32>
    %c0_79 = arith.constant 0 : index
    %c0_80 = arith.constant 0 : index
    %c0_81 = arith.constant 0 : index
    %151 = vector.load %arg19[%c0_79, %c0_80, %c0_81] : memref<1x32x32xf32, #tpu.memory_space<vmem>>, vector<1x32x32xf32>
    %152 = vector.shape_cast %151 : vector<1x32x32xf32> to vector<32x32xf32>
    %cst_82 = arith.constant dense<0.000000e+00> : vector<16x32xf32>
    %153 = tpu.matmul %9, %152, %cst_82 {dimension_numbers = #tpu.dot_dimension_numbers<[1], [0], [0], [1], [0, 0, 1, 1], [], []>} : vector<16x32xf32>, vector<32x32xf32>, vector<16x32xf32> -> vector<16x32xf32>
    %c0_83 = arith.constant 0 : index
    %c0_84 = arith.constant 0 : index
    %c0_85 = arith.constant 0 : index
    %154 = vector.load %arg20[%c0_83, %c0_84, %c0_85] : memref<1x1x32xf32, #tpu.memory_space<vmem>>, vector<1x1x32xf32>
    %155 = vector.shape_cast %154 : vector<1x1x32xf32> to vector<1x32xf32>
    %156 = vector.broadcast %155 : vector<1x32xf32> to vector<16x32xf32>
    %157 = arith.addf %153, %156 : vector<16x32xf32>
    %c0_86 = arith.constant 0 : index
    %c0_87 = arith.constant 0 : index
    %c0_88 = arith.constant 0 : index
    %158 = vector.load %arg21[%c0_86, %c0_87, %c0_88] : memref<1x32x32xf32, #tpu.memory_space<vmem>>, vector<1x32x32xf32>
    %159 = vector.shape_cast %158 : vector<1x32x32xf32> to vector<32x32xf32>
    %c0_89 = arith.constant 0 : index
    %c0_90 = arith.constant 0 : index
    %c0_91 = arith.constant 0 : index
    %160 = vector.load %arg22[%c0_89, %c0_90, %c0_91] : memref<1x1x32xf32, #tpu.memory_space<vmem>>, vector<1x1x32xf32>
    %161 = vector.shape_cast %160 : vector<1x1x32xf32> to vector<1x32xf32>
    %cst_92 = arith.constant 0.353553385 : f32
    %162 = vector.broadcast %cst_92 : f32 to vector<8x32xf32>
    %163 = arith.mulf %142, %162 : vector<8x32xf32>
    %164 = vector.extract_strided_slice %163 {offsets = [0, 0], sizes = [8, 8], strides = [1, 1]} : vector<8x32xf32> to vector<8x8xf32>
    %165 = vector.extract_strided_slice %150 {offsets = [0, 0], sizes = [16, 8], strides = [1, 1]} : vector<16x32xf32> to vector<16x8xf32>
    %166 = vector.extract_strided_slice %157 {offsets = [0, 0], sizes = [16, 8], strides = [1, 1]} : vector<16x32xf32> to vector<16x8xf32>
    %cst_93 = arith.constant dense<0.000000e+00> : vector<8x16xf32>
    %167 = tpu.matmul %164, %165, %cst_93 {dimension_numbers = #tpu.dot_dimension_numbers<[1], [1], [0], [0], [0, 0, 1, 0], [], []>} : vector<8x8xf32>, vector<16x8xf32>, vector<8x16xf32> -> vector<8x16xf32>
    %168 = vector.broadcast %13 : vector<1x16xf32> to vector<8x16xf32>
    %169 = arith.addf %167, %168 : vector<8x16xf32>
    %cst_94 = arith.constant dense<0xFF800000> : vector<8xf32>
    %170 = vector.multi_reduction <maximumf>, %169, %cst_94 [1] : vector<8x16xf32> to vector<8xf32>
    %171 = vector.shape_cast %170 : vector<8xf32> to vector<8x1xf32>
    %172 = vector.broadcast %171 : vector<8x1xf32> to vector<8x16xf32>
    %173 = arith.subf %169, %172 : vector<8x16xf32>
    %174 = math.exp %173 : vector<8x16xf32>
    %cst_95 = arith.constant dense<0.000000e+00> : vector<8xf32>
    %175 = vector.multi_reduction <add>, %174, %cst_95 [1] : vector<8x16xf32> to vector<8xf32>
    %176 = vector.shape_cast %175 : vector<8xf32> to vector<8x1xf32>
    %177 = tpu.reciprocal %176 {approx = true} : vector<8x1xf32> -> vector<8x1xf32>
    %178 = vector.broadcast %177 : vector<8x1xf32> to vector<8x16xf32>
    %179 = arith.mulf %174, %178 : vector<8x16xf32>
    %cst_96 = arith.constant dense<0.000000e+00> : vector<8x8xf32>
    %180 = tpu.matmul %179, %166, %cst_96 {dimension_numbers = #tpu.dot_dimension_numbers<[1], [0], [0], [1], [0, 0, 1, 1], [], []>} : vector<8x16xf32>, vector<16x8xf32>, vector<8x8xf32> -> vector<8x8xf32>
    %181 = vector.extract_strided_slice %159 {offsets = [0, 0], sizes = [8, 32], strides = [1, 1]} : vector<32x32xf32> to vector<8x32xf32>
    %cst_97 = arith.constant dense<0.000000e+00> : vector<8x32xf32>
    %182 = tpu.matmul %180, %181, %cst_97 {dimension_numbers = #tpu.dot_dimension_numbers<[1], [0], [0], [1], [0, 0, 1, 1], [], []>} : vector<8x8xf32>, vector<8x32xf32>, vector<8x32xf32> -> vector<8x32xf32>
    %183 = vector.extract_strided_slice %163 {offsets = [0, 8], sizes = [8, 8], strides = [1, 1]} : vector<8x32xf32> to vector<8x8xf32>
    %184 = vector.extract_strided_slice %150 {offsets = [0, 8], sizes = [16, 8], strides = [1, 1]} : vector<16x32xf32> to vector<16x8xf32>
    %185 = vector.extract_strided_slice %157 {offsets = [0, 8], sizes = [16, 8], strides = [1, 1]} : vector<16x32xf32> to vector<16x8xf32>
    %cst_98 = arith.constant dense<0.000000e+00> : vector<8x16xf32>
    %186 = tpu.matmul %183, %184, %cst_98 {dimension_numbers = #tpu.dot_dimension_numbers<[1], [1], [0], [0], [0, 0, 1, 0], [], []>} : vector<8x8xf32>, vector<16x8xf32>, vector<8x16xf32> -> vector<8x16xf32>
    %187 = vector.broadcast %13 : vector<1x16xf32> to vector<8x16xf32>
    %188 = arith.addf %186, %187 : vector<8x16xf32>
    %cst_99 = arith.constant dense<0xFF800000> : vector<8xf32>
    %189 = vector.multi_reduction <maximumf>, %188, %cst_99 [1] : vector<8x16xf32> to vector<8xf32>
    %190 = vector.shape_cast %189 : vector<8xf32> to vector<8x1xf32>
    %191 = vector.broadcast %190 : vector<8x1xf32> to vector<8x16xf32>
    %192 = arith.subf %188, %191 : vector<8x16xf32>
    %193 = math.exp %192 : vector<8x16xf32>
    %cst_100 = arith.constant dense<0.000000e+00> : vector<8xf32>
    %194 = vector.multi_reduction <add>, %193, %cst_100 [1] : vector<8x16xf32> to vector<8xf32>
    %195 = vector.shape_cast %194 : vector<8xf32> to vector<8x1xf32>
    %196 = tpu.reciprocal %195 {approx = true} : vector<8x1xf32> -> vector<8x1xf32>
    %197 = vector.broadcast %196 : vector<8x1xf32> to vector<8x16xf32>
    %198 = arith.mulf %193, %197 : vector<8x16xf32>
    %cst_101 = arith.constant dense<0.000000e+00> : vector<8x8xf32>
    %199 = tpu.matmul %198, %185, %cst_101 {dimension_numbers = #tpu.dot_dimension_numbers<[1], [0], [0], [1], [0, 0, 1, 1], [], []>} : vector<8x16xf32>, vector<16x8xf32>, vector<8x8xf32> -> vector<8x8xf32>
    %200 = vector.extract_strided_slice %159 {offsets = [8, 0], sizes = [8, 32], strides = [1, 1]} : vector<32x32xf32> to vector<8x32xf32>
    %cst_102 = arith.constant dense<0.000000e+00> : vector<8x32xf32>
    %201 = tpu.matmul %199, %200, %cst_102 {dimension_numbers = #tpu.dot_dimension_numbers<[1], [0], [0], [1], [0, 0, 1, 1], [], []>} : vector<8x8xf32>, vector<8x32xf32>, vector<8x32xf32> -> vector<8x32xf32>
    %202 = arith.addf %182, %201 : vector<8x32xf32>
    %203 = vector.extract_strided_slice %163 {offsets = [0, 16], sizes = [8, 8], strides = [1, 1]} : vector<8x32xf32> to vector<8x8xf32>
    %204 = vector.extract_strided_slice %150 {offsets = [0, 16], sizes = [16, 8], strides = [1, 1]} : vector<16x32xf32> to vector<16x8xf32>
    %205 = vector.extract_strided_slice %157 {offsets = [0, 16], sizes = [16, 8], strides = [1, 1]} : vector<16x32xf32> to vector<16x8xf32>
    %cst_103 = arith.constant dense<0.000000e+00> : vector<8x16xf32>
    %206 = tpu.matmul %203, %204, %cst_103 {dimension_numbers = #tpu.dot_dimension_numbers<[1], [1], [0], [0], [0, 0, 1, 0], [], []>} : vector<8x8xf32>, vector<16x8xf32>, vector<8x16xf32> -> vector<8x16xf32>
    %207 = vector.broadcast %13 : vector<1x16xf32> to vector<8x16xf32>
    %208 = arith.addf %206, %207 : vector<8x16xf32>
    %cst_104 = arith.constant dense<0xFF800000> : vector<8xf32>
    %209 = vector.multi_reduction <maximumf>, %208, %cst_104 [1] : vector<8x16xf32> to vector<8xf32>
    %210 = vector.shape_cast %209 : vector<8xf32> to vector<8x1xf32>
    %211 = vector.broadcast %210 : vector<8x1xf32> to vector<8x16xf32>
    %212 = arith.subf %208, %211 : vector<8x16xf32>
    %213 = math.exp %212 : vector<8x16xf32>
    %cst_105 = arith.constant dense<0.000000e+00> : vector<8xf32>
    %214 = vector.multi_reduction <add>, %213, %cst_105 [1] : vector<8x16xf32> to vector<8xf32>
    %215 = vector.shape_cast %214 : vector<8xf32> to vector<8x1xf32>
    %216 = tpu.reciprocal %215 {approx = true} : vector<8x1xf32> -> vector<8x1xf32>
    %217 = vector.broadcast %216 : vector<8x1xf32> to vector<8x16xf32>
    %218 = arith.mulf %213, %217 : vector<8x16xf32>
    %cst_106 = arith.constant dense<0.000000e+00> : vector<8x8xf32>
    %219 = tpu.matmul %218, %205, %cst_106 {dimension_numbers = #tpu.dot_dimension_numbers<[1], [0], [0], [1], [0, 0, 1, 1], [], []>} : vector<8x16xf32>, vector<16x8xf32>, vector<8x8xf32> -> vector<8x8xf32>
    %220 = vector.extract_strided_slice %159 {offsets = [16, 0], sizes = [8, 32], strides = [1, 1]} : vector<32x32xf32> to vector<8x32xf32>
    %cst_107 = arith.constant dense<0.000000e+00> : vector<8x32xf32>
    %221 = tpu.matmul %219, %220, %cst_107 {dimension_numbers = #tpu.dot_dimension_numbers<[1], [0], [0], [1], [0, 0, 1, 1], [], []>} : vector<8x8xf32>, vector<8x32xf32>, vector<8x32xf32> -> vector<8x32xf32>
    %222 = arith.addf %202, %221 : vector<8x32xf32>
    %223 = vector.extract_strided_slice %163 {offsets = [0, 24], sizes = [8, 8], strides = [1, 1]} : vector<8x32xf32> to vector<8x8xf32>
    %224 = vector.extract_strided_slice %150 {offsets = [0, 24], sizes = [16, 8], strides = [1, 1]} : vector<16x32xf32> to vector<16x8xf32>
    %225 = vector.extract_strided_slice %157 {offsets = [0, 24], sizes = [16, 8], strides = [1, 1]} : vector<16x32xf32> to vector<16x8xf32>
    %cst_108 = arith.constant dense<0.000000e+00> : vector<8x16xf32>
    %226 = tpu.matmul %223, %224, %cst_108 {dimension_numbers = #tpu.dot_dimension_numbers<[1], [1], [0], [0], [0, 0, 1, 0], [], []>} : vector<8x8xf32>, vector<16x8xf32>, vector<8x16xf32> -> vector<8x16xf32>
    %227 = vector.broadcast %13 : vector<1x16xf32> to vector<8x16xf32>
    %228 = arith.addf %226, %227 : vector<8x16xf32>
    %cst_109 = arith.constant dense<0xFF800000> : vector<8xf32>
    %229 = vector.multi_reduction <maximumf>, %228, %cst_109 [1] : vector<8x16xf32> to vector<8xf32>
    %230 = vector.shape_cast %229 : vector<8xf32> to vector<8x1xf32>
    %231 = vector.broadcast %230 : vector<8x1xf32> to vector<8x16xf32>
    %232 = arith.subf %228, %231 : vector<8x16xf32>
    %233 = math.exp %232 : vector<8x16xf32>
    %cst_110 = arith.constant dense<0.000000e+00> : vector<8xf32>
    %234 = vector.multi_reduction <add>, %233, %cst_110 [1] : vector<8x16xf32> to vector<8xf32>
    %235 = vector.shape_cast %234 : vector<8xf32> to vector<8x1xf32>
    %236 = tpu.reciprocal %235 {approx = true} : vector<8x1xf32> -> vector<8x1xf32>
    %237 = vector.broadcast %236 : vector<8x1xf32> to vector<8x16xf32>
    %238 = arith.mulf %233, %237 : vector<8x16xf32>
    %cst_111 = arith.constant dense<0.000000e+00> : vector<8x8xf32>
    %239 = tpu.matmul %238, %225, %cst_111 {dimension_numbers = #tpu.dot_dimension_numbers<[1], [0], [0], [1], [0, 0, 1, 1], [], []>} : vector<8x16xf32>, vector<16x8xf32>, vector<8x8xf32> -> vector<8x8xf32>
    %240 = vector.extract_strided_slice %159 {offsets = [24, 0], sizes = [8, 32], strides = [1, 1]} : vector<32x32xf32> to vector<8x32xf32>
    %cst_112 = arith.constant dense<0.000000e+00> : vector<8x32xf32>
    %241 = tpu.matmul %239, %240, %cst_112 {dimension_numbers = #tpu.dot_dimension_numbers<[1], [0], [0], [1], [0, 0, 1, 1], [], []>} : vector<8x8xf32>, vector<8x32xf32>, vector<8x32xf32> -> vector<8x32xf32>
    %242 = arith.addf %222, %241 : vector<8x32xf32>
    %243 = vector.broadcast %161 : vector<1x32xf32> to vector<8x32xf32>
    %244 = arith.addf %242, %243 : vector<8x32xf32>
    %245 = arith.addf %134, %244 : vector<8x32xf32>
    %c0_113 = arith.constant 0 : index
    %c0_114 = arith.constant 0 : index
    %c0_115 = arith.constant 0 : index
    %246 = vector.load %arg23[%c0_113, %c0_114, %c0_115] : memref<1x1x32xf32, #tpu.memory_space<vmem>>, vector<1x1x32xf32>
    %247 = vector.shape_cast %246 : vector<1x1x32xf32> to vector<1x32xf32>
    %c0_116 = arith.constant 0 : index
    %c0_117 = arith.constant 0 : index
    %c0_118 = arith.constant 0 : index
    %248 = vector.load %arg24[%c0_116, %c0_117, %c0_118] : memref<1x1x32xf32, #tpu.memory_space<vmem>>, vector<1x1x32xf32>
    %249 = vector.shape_cast %248 : vector<1x1x32xf32> to vector<1x32xf32>
    %cst_119 = arith.constant dense<0.000000e+00> : vector<8xf32>
    %250 = vector.multi_reduction <add>, %245, %cst_119 [1] : vector<8x32xf32> to vector<8xf32>
    %251 = vector.shape_cast %250 : vector<8xf32> to vector<8x1xf32>
    %cst_120 = arith.constant 3.200000e+01 : f32
    %252 = vector.broadcast %cst_120 : f32 to vector<8x1xf32>
    %253 = arith.divf %251, %252 : vector<8x1xf32>
    %254 = vector.broadcast %253 : vector<8x1xf32> to vector<8x32xf32>
    %255 = arith.subf %245, %254 : vector<8x32xf32>
    %256 = arith.mulf %255, %255 : vector<8x32xf32>
    %cst_121 = arith.constant dense<0.000000e+00> : vector<8xf32>
    %257 = vector.multi_reduction <add>, %256, %cst_121 [1] : vector<8x32xf32> to vector<8xf32>
    %258 = vector.shape_cast %257 : vector<8xf32> to vector<8x1xf32>
    %cst_122 = arith.constant 3.200000e+01 : f32
    %259 = vector.broadcast %cst_122 : f32 to vector<8x1xf32>
    %260 = arith.divf %258, %259 : vector<8x1xf32>
    %cst_123 = arith.constant 9.99999974E-6 : f32
    %261 = vector.broadcast %cst_123 : f32 to vector<8x1xf32>
    %262 = arith.addf %260, %261 : vector<8x1xf32>
    %263 = math.rsqrt %262 : vector<8x1xf32>
    %264 = vector.broadcast %263 : vector<8x1xf32> to vector<8x32xf32>
    %265 = arith.mulf %255, %264 : vector<8x32xf32>
    %266 = vector.broadcast %247 : vector<1x32xf32> to vector<8x32xf32>
    %267 = arith.mulf %265, %266 : vector<8x32xf32>
    %268 = vector.broadcast %249 : vector<1x32xf32> to vector<8x32xf32>
    %269 = arith.addf %267, %268 : vector<8x32xf32>
    %c0_124 = arith.constant 0 : index
    %c0_125 = arith.constant 0 : index
    %c0_126 = arith.constant 0 : index
    %270 = vector.load %arg25[%c0_124, %c0_125, %c0_126] : memref<1x32x64xf32, #tpu.memory_space<vmem>>, vector<1x32x64xf32>
    %271 = vector.shape_cast %270 : vector<1x32x64xf32> to vector<32x64xf32>
    %cst_127 = arith.constant dense<0.000000e+00> : vector<8x64xf32>
    %272 = tpu.matmul %269, %271, %cst_127 {dimension_numbers = #tpu.dot_dimension_numbers<[1], [0], [0], [1], [0, 0, 1, 1], [], []>} : vector<8x32xf32>, vector<32x64xf32>, vector<8x64xf32> -> vector<8x64xf32>
    %c0_128 = arith.constant 0 : index
    %c0_129 = arith.constant 0 : index
    %c0_130 = arith.constant 0 : index
    %273 = vector.load %arg26[%c0_128, %c0_129, %c0_130] : memref<1x1x64xf32, #tpu.memory_space<vmem>>, vector<1x1x64xf32>
    %274 = vector.shape_cast %273 : vector<1x1x64xf32> to vector<1x64xf32>
    %275 = vector.broadcast %274 : vector<1x64xf32> to vector<8x64xf32>
    %276 = arith.addf %272, %275 : vector<8x64xf32>
    %cst_131 = arith.constant 0.000000e+00 : f32
    %277 = vector.broadcast %cst_131 : f32 to vector<8x64xf32>
    %278 = arith.maximumf %276, %277 : vector<8x64xf32>
    %c0_132 = arith.constant 0 : index
    %c0_133 = arith.constant 0 : index
    %c0_134 = arith.constant 0 : index
    %279 = vector.load %arg27[%c0_132, %c0_133, %c0_134] : memref<1x64x32xf32, #tpu.memory_space<vmem>>, vector<1x64x32xf32>
    %280 = vector.shape_cast %279 : vector<1x64x32xf32> to vector<64x32xf32>
    %cst_135 = arith.constant dense<0.000000e+00> : vector<8x32xf32>
    %281 = tpu.matmul %278, %280, %cst_135 {dimension_numbers = #tpu.dot_dimension_numbers<[1], [0], [0], [1], [0, 0, 1, 1], [], []>} : vector<8x64xf32>, vector<64x32xf32>, vector<8x32xf32> -> vector<8x32xf32>
    %c0_136 = arith.constant 0 : index
    %c0_137 = arith.constant 0 : index
    %c0_138 = arith.constant 0 : index
    %282 = vector.load %arg28[%c0_136, %c0_137, %c0_138] : memref<1x1x32xf32, #tpu.memory_space<vmem>>, vector<1x1x32xf32>
    %283 = vector.shape_cast %282 : vector<1x1x32xf32> to vector<1x32xf32>
    %284 = vector.broadcast %283 : vector<1x32xf32> to vector<8x32xf32>
    %285 = arith.addf %281, %284 : vector<8x32xf32>
    %286 = arith.addf %269, %285 : vector<8x32xf32>
    %c0_139 = arith.constant 0 : index
    %c0_140 = arith.constant 0 : index
    %c0_141 = arith.constant 0 : index
    %287 = vector.load %arg29[%c0_139, %c0_140, %c0_141] : memref<1x1x32xf32, #tpu.memory_space<vmem>>, vector<1x1x32xf32>
    %288 = vector.shape_cast %287 : vector<1x1x32xf32> to vector<1x32xf32>
    %c0_142 = arith.constant 0 : index
    %c0_143 = arith.constant 0 : index
    %c0_144 = arith.constant 0 : index
    %289 = vector.load %arg30[%c0_142, %c0_143, %c0_144] : memref<1x1x32xf32, #tpu.memory_space<vmem>>, vector<1x1x32xf32>
    %290 = vector.shape_cast %289 : vector<1x1x32xf32> to vector<1x32xf32>
    %cst_145 = arith.constant dense<0.000000e+00> : vector<8xf32>
    %291 = vector.multi_reduction <add>, %286, %cst_145 [1] : vector<8x32xf32> to vector<8xf32>
    %292 = vector.shape_cast %291 : vector<8xf32> to vector<8x1xf32>
    %cst_146 = arith.constant 3.200000e+01 : f32
    %293 = vector.broadcast %cst_146 : f32 to vector<8x1xf32>
    %294 = arith.divf %292, %293 : vector<8x1xf32>
    %295 = vector.broadcast %294 : vector<8x1xf32> to vector<8x32xf32>
    %296 = arith.subf %286, %295 : vector<8x32xf32>
    %297 = arith.mulf %296, %296 : vector<8x32xf32>
    %cst_147 = arith.constant dense<0.000000e+00> : vector<8xf32>
    %298 = vector.multi_reduction <add>, %297, %cst_147 [1] : vector<8x32xf32> to vector<8xf32>
    %299 = vector.shape_cast %298 : vector<8xf32> to vector<8x1xf32>
    %cst_148 = arith.constant 3.200000e+01 : f32
    %300 = vector.broadcast %cst_148 : f32 to vector<8x1xf32>
    %301 = arith.divf %299, %300 : vector<8x1xf32>
    %cst_149 = arith.constant 9.99999974E-6 : f32
    %302 = vector.broadcast %cst_149 : f32 to vector<8x1xf32>
    %303 = arith.addf %301, %302 : vector<8x1xf32>
    %304 = math.rsqrt %303 : vector<8x1xf32>
    %305 = vector.broadcast %304 : vector<8x1xf32> to vector<8x32xf32>
    %306 = arith.mulf %296, %305 : vector<8x32xf32>
    %307 = vector.broadcast %288 : vector<1x32xf32> to vector<8x32xf32>
    %308 = arith.mulf %306, %307 : vector<8x32xf32>
    %309 = vector.broadcast %290 : vector<1x32xf32> to vector<8x32xf32>
    %310 = arith.addf %308, %309 : vector<8x32xf32>
    %311 = arith.index_cast %arg1 : i32 to index
    %c0_150 = arith.constant 0 : index
    %c0_151 = arith.constant 0 : index
    %312 = vector.load %arg32[%311, %c0_150, %c0_151] : memref<2x8x32xf32, #tpu.memory_space<vmem>>, vector<1x8x32xf32>
    %313 = vector.shape_cast %312 : vector<1x8x32xf32> to vector<8x32xf32>
    %314 = vector.shape_cast %310 : vector<8x32xf32> to vector<1x8x32xf32>
    tpu.vector_store %arg32[%311, %c0_150, %c0_151], %314 {strides = array<i32>} : memref<2x8x32xf32, #tpu.memory_space<vmem>>, vector<1x8x32xf32>,
    %c0_152 = arith.constant 0 : index
    %c0_153 = arith.constant 0 : index
    %c0_154 = arith.constant 0 : index
    %315 = vector.load %arg31[%c0_152, %c0_153, %c0_154] : memref<1x8x32xf32, #tpu.memory_space<vmem>>, vector<1x8x32xf32>
    %316 = vector.shape_cast %315 : vector<1x8x32xf32> to vector<8x32xf32>
    %317 = vector.shape_cast %310 : vector<8x32xf32> to vector<1x8x32xf32>
    tpu.vector_store %arg31[%c0_152, %c0_153, %c0_154], %317 {strides = array<i32>} : memref<1x8x32xf32, #tpu.memory_space<vmem>>, vector<1x8x32xf32>,
    return
  }
  func.func @transform_0(%arg0: i32, %arg1: i32) -> (i32, i32, i32) {
    %c0_i32 = arith.constant 0 : i32
    %c0_i32_0 = arith.constant 0 : i32
    %c0_i32_1 = arith.constant 0 : i32
    return %arg1, %c0_i32, %c0_i32_0 : i32, i32, i32
  }
  func.func @transform_1(%arg0: i32, %arg1: i32) -> (i32, i32, i32) {
    %c0_i32 = arith.constant 0 : i32
    %c0_i32_0 = arith.constant 0 : i32
    %c0_i32_1 = arith.constant 0 : i32
    return %arg1, %c0_i32, %c0_i32_0 : i32, i32, i32
  }
  func.func @transform_2(%arg0: i32, %arg1: i32) -> (i32, i32, i32) {
    %c0_i32 = arith.constant 0 : i32
    %c0_i32_0 = arith.constant 0 : i32
    %c0_i32_1 = arith.constant 0 : i32
    return %arg1, %c0_i32, %c0_i32_0 : i32, i32, i32
  }
  func.func @transform_3(%arg0: i32, %arg1: i32) -> (i32, i32, i32) {
    %c0_i32 = arith.constant 0 : i32
    %c0_i32_0 = arith.constant 0 : i32
    %c0_i32_1 = arith.constant 0 : i32
    return %arg1, %c0_i32, %c0_i32_0 : i32, i32, i32
  }
  func.func @transform_4(%arg0: i32, %arg1: i32) -> (i32, i32, i32) {
    %c0_i32 = arith.constant 0 : i32
    %c0_i32_0 = arith.constant 0 : i32
    %c0_i32_1 = arith.constant 0 : i32
    return %arg1, %c0_i32, %c0_i32_0 : i32, i32, i32
  }
  func.func @transform_5(%arg0: i32, %arg1: i32) -> (i32, i32, i32) {
    %c0_i32 = arith.constant 0 : i32
    %c0_i32_0 = arith.constant 0 : i32
    %c0_i32_1 = arith.constant 0 : i32
    return %arg0, %c0_i32, %c0_i32_0 : i32, i32, i32
  }
  func.func @transform_6(%arg0: i32, %arg1: i32) -> (i32, i32, i32) {
    %c0_i32 = arith.constant 0 : i32
    %c0_i32_0 = arith.constant 0 : i32
    %c0_i32_1 = arith.constant 0 : i32
    return %arg0, %c0_i32, %c0_i32_0 : i32, i32, i32
  }
  func.func @transform_7(%arg0: i32, %arg1: i32) -> (i32, i32, i32) {
    %c0_i32 = arith.constant 0 : i32
    %c0_i32_0 = arith.constant 0 : i32
    %c0_i32_1 = arith.constant 0 : i32
    return %arg0, %c0_i32, %c0_i32_0 : i32, i32, i32
  }
  func.func @transform_8(%arg0: i32, %arg1: i32) -> (i32, i32, i32) {
    %c0_i32 = arith.constant 0 : i32
    %c0_i32_0 = arith.constant 0 : i32
    %c0_i32_1 = arith.constant 0 : i32
    return %arg0, %c0_i32, %c0_i32_0 : i32, i32, i32
  }
  func.func @transform_9(%arg0: i32, %arg1: i32) -> (i32, i32, i32) {
    %c0_i32 = arith.constant 0 : i32
    %c0_i32_0 = arith.constant 0 : i32
    %c0_i32_1 = arith.constant 0 : i32
    return %arg0, %c0_i32, %c0_i32_0 : i32, i32, i32
  }
  func.func @transform_10(%arg0: i32, %arg1: i32) -> (i32, i32, i32) {
    %c0_i32 = arith.constant 0 : i32
    %c0_i32_0 = arith.constant 0 : i32
    %c0_i32_1 = arith.constant 0 : i32
    return %arg0, %c0_i32, %c0_i32_0 : i32, i32, i32
  }
  func.func @transform_11(%arg0: i32, %arg1: i32) -> (i32, i32, i32) {
    %c0_i32 = arith.constant 0 : i32
    %c0_i32_0 = arith.constant 0 : i32
    %c0_i32_1 = arith.constant 0 : i32
    return %arg0, %c0_i32, %c0_i32_0 : i32, i32, i32
  }
  func.func @transform_12(%arg0: i32, %arg1: i32) -> (i32, i32, i32) {
    %c0_i32 = arith.constant 0 : i32
    %c0_i32_0 = arith.constant 0 : i32
    %c0_i32_1 = arith.constant 0 : i32
    return %arg0, %c0_i32, %c0_i32_0 : i32, i32, i32
  }
  func.func @transform_13(%arg0: i32, %arg1: i32) -> (i32, i32, i32) {
    %c0_i32 = arith.constant 0 : i32
    %c0_i32_0 = arith.constant 0 : i32
    %c0_i32_1 = arith.constant 0 : i32
    return %arg0, %c0_i32, %c0_i32_0 : i32, i32, i32
  }
  func.func @transform_14(%arg0: i32, %arg1: i32) -> (i32, i32, i32) {
    %c0_i32 = arith.constant 0 : i32
    %c0_i32_0 = arith.constant 0 : i32
    %c0_i32_1 = arith.constant 0 : i32
    return %arg0, %c0_i32, %c0_i32_0 : i32, i32, i32
  }
  func.func @transform_15(%arg0: i32, %arg1: i32) -> (i32, i32, i32) {
    %c0_i32 = arith.constant 0 : i32
    %c0_i32_0 = arith.constant 0 : i32
    %c0_i32_1 = arith.constant 0 : i32
    return %arg0, %c0_i32, %c0_i32_0 : i32, i32, i32
  }
  func.func @transform_16(%arg0: i32, %arg1: i32) -> (i32, i32, i32) {
    %c0_i32 = arith.constant 0 : i32
    %c0_i32_0 = arith.constant 0 : i32
    %c0_i32_1 = arith.constant 0 : i32
    return %arg0, %c0_i32, %c0_i32_0 : i32, i32, i32
  }
  func.func @transform_17(%arg0: i32, %arg1: i32) -> (i32, i32, i32) {
    %c0_i32 = arith.constant 0 : i32
    %c0_i32_0 = arith.constant 0 : i32
    %c0_i32_1 = arith.constant 0 : i32
    return %arg0, %c0_i32, %c0_i32_0 : i32, i32, i32
  }
  func.func @transform_18(%arg0: i32, %arg1: i32) -> (i32, i32, i32) {
    %c0_i32 = arith.constant 0 : i32
    %c0_i32_0 = arith.constant 0 : i32
    %c0_i32_1 = arith.constant 0 : i32
    return %arg0, %c0_i32, %c0_i32_0 : i32, i32, i32
  }
  func.func @transform_19(%arg0: i32, %arg1: i32) -> (i32, i32, i32) {
    %c0_i32 = arith.constant 0 : i32
    %c0_i32_0 = arith.constant 0 : i32
    %c0_i32_1 = arith.constant 0 : i32
    return %arg0, %c0_i32, %c0_i32_0 : i32, i32, i32
  }
  func.func @transform_20(%arg0: i32, %arg1: i32) -> (i32, i32, i32) {
    %c0_i32 = arith.constant 0 : i32
    %c0_i32_0 = arith.constant 0 : i32
    %c0_i32_1 = arith.constant 0 : i32
    return %arg0, %c0_i32, %c0_i32_0 : i32, i32, i32
  }
  func.func @transform_21(%arg0: i32, %arg1: i32) -> (i32, i32, i32) {
    %c0_i32 = arith.constant 0 : i32
    %c0_i32_0 = arith.constant 0 : i32
    %c0_i32_1 = arith.constant 0 : i32
    return %arg0, %c0_i32, %c0_i32_0 : i32, i32, i32
  }
  func.func @transform_22(%arg0: i32, %arg1: i32) -> (i32, i32, i32) {
    %c0_i32 = arith.constant 0 : i32
    %c0_i32_0 = arith.constant 0 : i32
    %c0_i32_1 = arith.constant 0 : i32
    return %arg0, %c0_i32, %c0_i32_0 : i32, i32, i32
  }
  func.func @transform_23(%arg0: i32, %arg1: i32) -> (i32, i32, i32) {
    %c0_i32 = arith.constant 0 : i32
    %c0_i32_0 = arith.constant 0 : i32
    %c0_i32_1 = arith.constant 0 : i32
    return %arg0, %c0_i32, %c0_i32_0 : i32, i32, i32
  }
  func.func @transform_24(%arg0: i32, %arg1: i32) -> (i32, i32, i32) {
    %c0_i32 = arith.constant 0 : i32
    %c0_i32_0 = arith.constant 0 : i32
    %c0_i32_1 = arith.constant 0 : i32
    return %arg0, %c0_i32, %c0_i32_0 : i32, i32, i32
  }
  func.func @transform_25(%arg0: i32, %arg1: i32) -> (i32, i32, i32) {
    %c0_i32 = arith.constant 0 : i32
    %c0_i32_0 = arith.constant 0 : i32
    %c0_i32_1 = arith.constant 0 : i32
    return %arg0, %c0_i32, %c0_i32_0 : i32, i32, i32
  }
  func.func @transform_26(%arg0: i32, %arg1: i32) -> (i32, i32, i32) {
    %c0_i32 = arith.constant 0 : i32
    %c0_i32_0 = arith.constant 0 : i32
    %c0_i32_1 = arith.constant 0 : i32
    return %arg0, %c0_i32, %c0_i32_0 : i32, i32, i32
  }
  func.func @transform_27(%arg0: i32, %arg1: i32) -> (i32, i32, i32) {
    %c0_i32 = arith.constant 0 : i32
    %c0_i32_0 = arith.constant 0 : i32
    %c0_i32_1 = arith.constant 0 : i32
    return %arg0, %c0_i32, %c0_i32_0 : i32, i32, i32
  }
  func.func @transform_28(%arg0: i32, %arg1: i32) -> (i32, i32, i32) {
    %c0_i32 = arith.constant 0 : i32
    %c0_i32_0 = arith.constant 0 : i32
    %c0_i32_1 = arith.constant 0 : i32
    return %arg0, %c0_i32, %c0_i32_0 : i32, i32, i32
  }
  func.func @transform_29(%arg0: i32, %arg1: i32) -> (i32, i32, i32) {
    %c0_i32 = arith.constant 0 : i32
    %c0_i32_0 = arith.constant 0 : i32
    %c0_i32_1 = arith.constant 0 : i32
    return %arg1, %c0_i32, %c0_i32_0 : i32, i32, i32
  }
}

</mosaic_0001>

<bundles_post_ra>
// kernel: temp_transformer_forward.1
= control target key start
LH: loop header
LB: loop body
LE: loop exit
PB: predicated region body
PF: predicated region fallthrough
CT: control target
= control target key end

     0   :  { %s6172_s6 = smov 1   ;;  %s6173_s10 = smov 2   ;;  %s7438_s0 = inlined_call_operand.smem [shape: u32[30], index: -1, kind: input, shape index: {}] }
   0x1   :  { %s6235_s5 = sld [smem:[%s7438_s0]]   ;;  %s6174_s14 = smov 3  }
   0x2   :  { %s6240_s9 = sld [smem:[%s7438_s0 + %s6172_s6]]   ;;  %s6175_s18 = smov 4  }
   0x3   :  { %s6245_s13 = sld [smem:[%s7438_s0 + %s6173_s10]]   ;;  %s6176_s22 = smov 5  }
   0x4   :  { %s6250_s17 = sld [smem:[%s7438_s0 + %s6174_s14]]   ;;  %s6177_s26 = smov 6  }
   0x5   :  { %s6255_s21 = sld [smem:[%s7438_s0 + %s6175_s18]]   ;;  %s6178_s30 = smov 7  }
   0x6   :  { %s6260_s25 = sld [smem:[%s7438_s0 + %s6176_s22]]   ;;  %s6179_s4 = smov 8  }
   0x7   :  { %7517 = sst [smem:[#allocation34_spill]] %s6235_s5  ;;  %s6180_s10 = smov 9  }
   0x8   :  { %7518 = sst [smem:[#allocation35_spill]] %s6240_s9  ;;  %s6181_s15 = smov 10  }
   0x9   :  { %7519 = sst [smem:[#allocation36_spill]] %s6245_s13  ;;  %s6182_s20 = smov 11  }
   0xa   :  { %7520 = sst [smem:[#allocation37_spill]] %s6250_s17  ;;  %s6184_s1 = smov 13  }
   0xb   :  { %7521 = sst [smem:[#allocation38_spill]] %s6255_s21  ;;  %s6185_s7 = smov 14  }
   0xc   :  { %7522 = sst [smem:[#allocation39_spill]] %s6260_s25  ;;  %s6187_s22 = smov 16  }
   0xd   :  { %s6265_s29 = sld [smem:[%s7438_s0 + %s6177_s26]]   ;;  %s6183_s26 = smov 12  }
   0xe   :  { %s6270_s3 = sld [smem:[%s7438_s0 + %s6178_s30]]   ;;  %s6188_s28 = smov 17  }
   0xf   :  { %s6275_s8 = sld [smem:[%s7438_s0 + %s6179_s4]]  }
  0x10   :  { %s6280_s14 = sld [smem:[%s7438_s0 + %s6180_s10]]  }
  0x11   :  { %s6285_s19 = sld [smem:[%s7438_s0 + %s6181_s15]]   ;;  %s6186_s15 = smov 15  }
  0x12   :  { %s6290_s24 = sld [smem:[%s7438_s0 + %s6182_s20]]  }
  0x13   :  { %7523 = sst [smem:[#allocation40_spill]] %s6265_s29 }
  0x14   :  { %7524 = sst [smem:[#allocation41_spill]] %s6270_s3 }
  0x15   :  { %7525 = sst [smem:[#allocation42_spill]] %s6275_s8 }
  0x16   :  { %7526 = sst [smem:[#allocation43_spill]] %s6280_s14 }
  0x17   :  { %7527 = sst [smem:[#allocation44_spill]] %s6285_s19 }
  0x18   :  { %7528 = sst [smem:[#allocation45_spill]] %s6290_s24 }
  0x19   :  { %s6295_s30 = sld [smem:[%s7438_s0 + %s6183_s26]]  }
  0x1a   :  { %s6300_s6 = sld [smem:[%s7438_s0 + %s6184_s1]]  }
  0x1b   :  { %s6305_s12 = sld [smem:[%s7438_s0 + %s6185_s7]]   ;;  %s6189_s7 = smov 18  }
  0x1c   :  { %s6310_s20 = sld [smem:[%s7438_s0 + %s6186_s15]]   ;;  %s6190_s15 = smov 19  }
  0x1d   :  { %s6315_s27 = sld [smem:[%s7438_s0 + %s6187_s22]]   ;;  %s6191_s22 = smov 20  }
  0x1e   :  { %s6320_s4 = sld [smem:[%s7438_s0 + %s6188_s28]]   ;;  %s6192_s28 = smov 21  }
  0x1f   :  { %7529 = sst [smem:[#allocation46_spill]] %s6295_s30 }
  0x20   :  { %7530 = sst [smem:[#allocation47_spill]] %s6300_s6 }
  0x21   :  { %7531 = sst [smem:[#allocation48_spill]] %s6305_s12 }
  0x22   :  { %7532 = sst [smem:[#allocation49_spill]] %s6310_s20 }
  0x23   :  { %7533 = sst [smem:[#allocation50_spill]] %s6315_s27 }
  0x24   :  { %7534 = sst [smem:[#allocation51_spill]] %s6320_s4 }
  0x25   :  { %s6325_s12 = sld [smem:[%s7438_s0 + %s6189_s7]]   ;;  %s6193_s7 = smov 22  }
  0x26   :  { %s6330_s30 = sld [smem:[%s7438_s0 + %s6190_s15]]   ;;  %s6194_s15 = smov 23  }
  0x27   :  { %s6335_s27 = sld [smem:[%s7438_s0 + %s6191_s22]]   ;;  %s6195_s22 = smov 24  }
  0x28   :  { %s6340_s24 = sld [smem:[%s7438_s0 + %s6192_s28]]   ;;  %s6196_s28 = smov 25  }
  0x29   :  { %s6350_s19 = sld [smem:[%s7438_s0 + %s6194_s15]]   ;;  %s6198_s15 = smov 27  }
  0x2a   :  { %s6370_s14 = sld [smem:[%s7438_s0 + %s6198_s15]]  }
  0x2b   :  { %7535 = sst [smem:[#allocation52_spill]] %s6325_s12 }
  0x2c   :  { %7536 = sst [smem:[#allocation53_spill]] %s6330_s30 }
  0x2d   :  { %7537 = sst [smem:[#allocation54_spill]] %s6335_s27 }
  0x2e   :  { %7538 = sst [smem:[#allocation55_spill]] %s6340_s24 }
  0x2f   :  { %s6345_s12 = sld [smem:[%s7438_s0 + %s6193_s7]]   ;;  %s6197_s7 = smov 26  }
  0x30   :  { %7540 = sst [smem:[#allocation57_spill]] %s6350_s19 }
  0x31   :  { %s6355_s27 = sld [smem:[%s7438_s0 + %s6195_s22]]   ;;  %s6199_s22 = smov 28  }
  0x32   :  { %s6360_s24 = sld [smem:[%s7438_s0 + %s6196_s28]]   ;;  %s6200_s28 = smov 29  }
  0x33   :  { %7544 = sst [smem:[#allocation61_spill]] %s6370_s14 }
  0x34   :  { %s6375_s8 = sld [smem:[%s7438_s0 + %s6199_s22]]  }
  0x35   :  { %7539 = sst [smem:[#allocation56_spill]] %s6345_s12 }
  0x36   :  { %s6365_s12 = sld [smem:[%s7438_s0 + %s6197_s7]]  }
  0x37   :  { %7541 = sst [smem:[#allocation58_spill]] %s6355_s27 }
  0x38   :  { %7542 = sst [smem:[#allocation59_spill]] %s6360_s24 }
  0x39   :  { %s6380_s24 = sld [smem:[%s7438_s0 + %s6200_s28]]  }
  0x3a   :  { %7545 = sst [smem:[#allocation62_spill]] %s6375_s8 }
  0x3c   :  { %7543 = sst [smem:[#allocation60_spill]] %s6365_s12 }
  0x3f   :  { %7546 = sst [smem:[#allocation63_spill]] %s6380_s24 }
  0x40   :  { %64 = vsyncpa [#allocation4], 0 }
  0x41   :  { %66 = vsyncpa [#allocation4 + $0x1], 0 }
  0x42   :  { %67 = vsyncpa [#allocation7], 0 }
  0x43   :  { %69 = vsyncpa [#allocation7 + $0x1], 0 }
  0x44   :  { %70 = vsyncpa [#allocation10], 0 }
  0x45   :  { %72 = vsyncpa [#allocation10 + $0x1], 0 }
  0x46   :  { %73 = vsyncpa [#allocation13], 0 }
  0x47   :  { %75 = vsyncpa [#allocation13 + $0x1], 0 }
  0x48   :  { %76 = vsyncpa [#allocation16], 0 }
  0x49   :  { %78 = vsyncpa [#allocation16 + $0x1], 0 }
  0x4a   :  { %79 = vsyncpa [#allocation19], 0 }
  0x4b   :  { %81 = vsyncpa [#allocation19 + $0x1], 0 }
  0x4c   :  { %82 = vsyncpa [#allocation22], 0 }
  0x4d   :  { %84 = vsyncpa [#allocation22 + $0x1], 0 }
  0x4e   :  { %85 = vsyncpa [#allocation5], 0 }
  0x4f   :  { %87 = vsyncpa [#allocation5 + $0x1], 0  ;;  %s6382_s7 = smov 0   ;;  %s6384_s0 = smov 0  }
  0x50   :  { %s6386_s10 = smov 0   ;;  %s6388_s11 = smov 0  }
  0x51   :  { %s6390_s15 = smov 0   ;;  %s6392_s16 = smov 0  }
  0x52   :  { %s6394_s18 = smov 0   ;;  %s6396_s22 = smov 0  }
  0x53   :  { %s6398_s23 = smov 0   ;;  %s6400_s26 = smov 0  }
  0x54   :  { %s6402_s28 = smov 0  }
  0x55 LB: > { %s7547_s30 = sld [smem:[#allocation53_spill]]  ;;  %s7548_s27 = sld [smem:[#allocation58_spill]]  ;;  %s6158_s22 = sphi %s6396_s22, %s7707_s22   ;;  %s6154_s18 = sphi %s6394_s18, %s7706_s18   ;;  %s6150_s16 = sphi %s6392_s16, %s7705_s16   ;;  %s6146_s15 = sphi %s6390_s15, %s7704_s15   ;;  %s6142_s11 = sphi %s6388_s11, %s7703_s11   ;;  %s6138_s10 = sphi %s6386_s10, %s7702_s10   ;;  %s6134_s0 = sphi %s6384_s0, %s7701_s0   ;;  %s6130_s7 = sphi %s6382_s7, %s7700_s7   ;;  %s6170_s28 = sphi %s6402_s28, %s93_s28   ;;  %s6166_s26 = sphi %s6400_s26, %s7709_s26   ;;  %s6162_s23 = sphi %s6398_s23, %s7708_s23  }
  0x56   : > { %s7549_s13 = sld [smem:[#allocation36_spill]]  ;;  %s7550_s5 = sld [smem:[#allocation34_spill]] }
  0x57   : > { %s7551_s14 = sld [smem:[#allocation61_spill]]  ;;  %s7552_s20 = sld [smem:[#allocation49_spill]] }
  0x58   : > { %s7553_s17 = sld [smem:[#allocation37_spill]]  ;;  %s7554_s9 = sld [smem:[#allocation35_spill]] }
  0x59   : > { %7555 = sst [smem:[#allocation64_spill]] %s6134_s0  ;;  %s6438_s1 = sadd.s32 4294967295, %s6170_s28  }
  0x5a   : > { %7556 = sst [smem:[#allocation65_spill]] %s6138_s10  ;;  %s4831_s2 = sadd.s32 4294967294, %s6170_s28  }
  0x5b   : > { %7557 = sst [smem:[#allocation66_spill]] %s6142_s11  ;;  %s102_s24 = sadd.s32 1, %s6162_s23 }
  0x5c   : > { %7558 = sst [smem:[#allocation67_spill]] %s6146_s15  ;;  %s112_s3 = sadd.s32 1, %s6150_s16 }
  0x5d   : > { %7559 = sst [smem:[#allocation68_spill]] %s6150_s16  ;;  %p6443_p0 = scmp.ge.s32.totalorder %s102_s24, 2 }
  0x5e   : > { %7560 = sst [smem:[#allocation69_spill]] %s6154_s18  ;;  %p119_p1 = scmp.ne.s32.totalorder %s6150_s16, %s6146_s15 }
  0x5f   : > { %7561 = sst [smem:[#allocation70_spill]] %s6158_s22  ;;  %p120_p2 = scmp.eq.s32.totalorder %s6170_s28, 0 }
  0x60   : > { %7562 = sst [smem:[#allocation71_spill]] %s6162_s23  ;;  %p7445_p3 = scmp.ne.s32.totalorder %s6146_s15, %s6142_s11 }
  0x61   : > { %7563 = sst [smem:[#allocation72_spill]] %s6166_s26  ;;  %s7711_s24 = smov (%p6443_p0, %s102_s24), 0 }
  0x62   : > { %7564 = sst [smem:[#allocation73_spill]] %s6170_s28  ;;  %p6459_p4 = por %p120_p2, %p119_p1 }
  0x63   : > { %7565 = sst [smem:[#allocation74_spill]] %s6438_s1  ;;  %p126_p5 = scmp.eq.s32.totalorder %s6438_s1, 0 }
  0x64   : > { %s7566_s25 = scalar_select %p6443_p0, 1, 0 }
  0x65   : > { %7567 = sst [smem:[#allocation75_spill]] %s7711_s24  ;;  %s109_s21 = ssub.s32 %s6162_s23, %s7711_s24 }
  0x66   : > { %p110_p6 = scmp.eq.s32.totalorder %s109_s21, 0  ;;  %p6470_p7 = por %p126_p5, %p7445_p3 }
  0x67   : > { %p457_p8 = scmp.ne.s32.totalorder %s6138_s10, %s6134_s0  ;;  %p463_p9 = scmp.ne.s32.totalorder %s6134_s0, %s6130_s7 }
  0x68   : > { %s7569_s18 = scalar_select %p6470_p7, 1, 0 }
  0x69   : > { %s6479_s8 = scalar_select %p110_p6, %s6150_s16, %s112_s3  }
  0x6a   : > { %7570 = sst [smem:[#allocation76_spill]] %s7569_s18  ;;  %p6481_p10 = por %p457_p8, %p120_p2 }
  0x6b   : > { %7571 = sst [smem:[#allocation77_spill]] %s6479_s8  ;;  %p6485_p11 = por %p463_p9, %p126_p5 }
  0x6c   : > { %p877_p12 = scmp.eq.s32.totalorder %s6438_s1, 3  ;;  %p883_p13 = scmp.eq.s32.totalorder %s4831_s2, 3 }
  0x6d   : > { %s7573_s22 = scalar_select %p6485_p11, 1, 0 }
  0x6e   : > { %p5431_p3 = scmp.lt.s32.totalorder %s6170_s28, 4  ;;  %p6494_p7 = por %p877_p12, %p119_p1 }
  0x6f   : > { %7574 = sst [smem:[#allocation78_spill]] %s7573_s22  ;;  %p7577_p0 = scmp.ne.s32.totalorder %s6146_s15, %s6142_s11 }
  0x70   : > { %s7575_s21 = scalar_select %p6494_p7, 1, 0 }
  0x71   : > { %p6501_p6 = por %p883_p13, %p7577_p0  ;;  %s6506_s7 = sand.u32 1, %s6150_s16  }
  0x72   : > { %7576 = sst [smem:[#allocation79_spill]] %s7575_s21  ;;  %p6510_p2 = pnand %p5431_p3, %p6459_p4 }
  0x73   : > { %s7578_s3 = scalar_select %p6501_p6, 1, 0 }
  0x74   : > { %s7580_s24 = scalar_select %p6510_p2, 1, 0 }
  0x75   : > { %7579 = sst [smem:[#allocation80_spill]] %s7578_s3  ;;  %s6515_s2 = sand.u32 1, %s6170_s28  }
  0x76   : > { %s7461_s8 = sshll.u32 %s6506_s7, 4  ;;  %s7457_s11 = sshll.u32 %s6162_s23, 8 }
  0x77   : > { %s6522_s21 = scalar_lea.hbm %s7554_s9, %s7457_s11  ;;  %s925_s29 = scalar_lea.vmem [#allocation6], %s7461_s8 }
  0x78   : > { %s932_s16 = sshll.u32 %s925_s29, 4  ;;  %p6530_p0 = pnand %p5431_p3, %p6481_p10  ;;  %s6526_s16 = int_to_ptr.vmem [resolvable:$true] %s932_s16 }
  0x79   : > { %s5630_s0 = scalar_lea.hbm %s6522_s21, 256  ;;  %p6539_p4 = pneg %p6510_p2 }
  0x7a   : > { %s7581_s3 = scalar_select %p6530_p0, 1, 0 }
  0x7b   : > { %p5631_p1 = scmp.ne.s32.totalorder %s6522_s21, %s5630_s0  ;;  %s5635_s29 = scalar_lea.hbm %s7554_s9, 512 }
  0x7c   : > { %s7582_s11 = scalar_select %p6539_p4, 1, 0 }
  0x7d   : > { %p5633_p5 = pnand %p6539_p4, %p5631_p1  ;;  %p5636_p9 = scmp.lt.u32.totalorder %s6522_s21, %s7554_s9 }
  0x7e   : > { %p5637_p12 = scmp.lt.u32.totalorder %s5635_s29, %s5630_s0  ;;  %p5639_p3 = scmp.lt.u32.totalorder %s5630_s0, %s6522_s21 }
  0x7f   : > { %p5634_p8 = pneg %p5633_p5 }
  0x80   : > { %p5638_p13 = por %p5637_p12, %p5636_p9 }
  0x82   : > { %p5640_p10 = por %p5639_p3, %p5638_p13 }
  0x84   : > { %p5641_p6 = pnand %p5640_p10, %p5634_p8 }
  0x86   : > { %5644 = shalt.err (!%p5641_p6)
}
  0x87   : > { %s5645_s12 = scalar_lea.vmem %s6526_s16, 256  ;;  %s6201_s8 = smov [#allocation6]  }
  0x88   : > { %p5646_p7 = scmp.ne.s32.totalorder %s6526_s16, %s5645_s12  ;;  %s5650_s22 = sshll.u32 %s6201_s8, 4  ;;  %s5651_s22 = int_to_ptr.vmem [resolvable:$false] %s5650_s22 }
  0x89   : > { %s5652_s1 = scalar_lea.vmem %s5651_s22, 512  ;;  %p5653_p1 = scmp.lt.s32.totalorder %s6526_s16, %s5651_s22 }
  0x8a   : > { %p5648_p11 = pnand %p5646_p7, %p6539_p4  ;;  %p5654_p5 = scmp.lt.s32.totalorder %s5652_s1, %s5645_s12 }
  0x8c   : > { %p5649_p0 = pneg %p5648_p11  ;;  %p5655_p9 = por %p5654_p5, %p5653_p1 }
  0x8e   : > { %p5656_p12 = pnand %p5655_p9, %p5649_p0 }
  0x90   : > { %5659 = shalt.err (!%p5656_p12)
}
  0x91   : > { %s7469_s0 = smov 128   ;;  %s7471_s8 = smov 8  }
  0x92   : > { %s7583_s22 = scalar_lea.sflag [#allocation7], %s6515_s2  ;;  %p4863_p7 = scmp.ge.s32.totalorder %s6170_s28, 1 }
  0x93   : > { %5393 = dma.hbm_to_vmem [thread:$0]  (!%p6510_p2), %s6522_s21, 256, %s6526_s16, %s7583_s22, %s7469_s0, %s7469_s0, %s7471_s8  }
  0x94   : > { %p1256_p11 = scmp.lt.s32.totalorder %s6170_s28, 5  ;;  %s7584_s1 = sshll.u32 %s6162_s23, 8 }
  0x95   : > { %s6568_s29 = scalar_lea.hbm %s7553_s17, %s7584_s1  ;;  %s7587_s9 = sshll.u32 %s6506_s7, 4 }
  0x96   : > { %p6570_p6 = pnand %p4863_p7, %p1256_p11  ;;  %s964_s18 = scalar_lea.vmem [#allocation9], %s7587_s9 }
  0x97   : > { %s971_s15 = sshll.u32 %s964_s18, 4  ;;  %s7468_s19 = scalar_lea.sflag [#allocation10], %s6515_s2  ;;  %s6576_s15 = int_to_ptr.vmem [resolvable:$true] %s971_s15 }
  0x98   : > { %s7585_s12 = scalar_select %p6570_p6, 1, 0 }
  0x99   : > { %s5660_s16 = scalar_lea.hbm %s6568_s29, 256  ;;  %s5665_s21 = scalar_lea.hbm %s7553_s17, 512 }
  0x9a   : > { %7586 = sst [smem:[#allocation81_spill]] %s7585_s12  ;;  %p5661_p0 = scmp.ne.s32.totalorder %s6568_s29, %s5660_s16 }
  0x9b   : > { %p5666_p3 = scmp.lt.u32.totalorder %s6568_s29, %s7553_s17  ;;  %p5667_p10 = scmp.lt.u32.totalorder %s5665_s21, %s5660_s16 }
  0x9c   : > { %p5663_p8 = pnand %p5661_p0, %p6539_p4  ;;  %p5669_p5 = scmp.lt.u32.totalorder %s5660_s16, %s6568_s29 }
  0x9d   : > { %p5668_p1 = por %p5667_p10, %p5666_p3 }
  0x9e   : > { %p5664_p13 = pneg %p5663_p8 }
  0x9f   : > { %p5670_p9 = por %p5669_p5, %p5668_p1 }
  0xa1   : > { %p5671_p12 = pnand %p5670_p9, %p5664_p13 }
  0xa3   : > { %5674 = shalt.err (!%p5671_p12)
}
  0xa4   : > { %s5675_s9 = scalar_lea.vmem %s6576_s15, 256  ;;  %s6204_s18 = smov [#allocation9]  }
  0xa5   : > { %p5676_p7 = scmp.ne.s32.totalorder %s6576_s15, %s5675_s9  ;;  %s5680_s22 = sshll.u32 %s6204_s18, 4  ;;  %s5681_s22 = int_to_ptr.vmem [resolvable:$false] %s5680_s22 }
  0xa6   : > { %s5682_s1 = scalar_lea.vmem %s5681_s22, 512  ;;  %p5683_p0 = scmp.lt.s32.totalorder %s6576_s15, %s5681_s22 }
  0xa7   : > { %p5678_p11 = pnand %p5676_p7, %p6539_p4  ;;  %p5684_p8 = scmp.lt.s32.totalorder %s5682_s1, %s5675_s9 }
  0xa9   : > { %p5679_p6 = pneg %p5678_p11  ;;  %p5685_p3 = por %p5684_p8, %p5683_p0 }
  0xab   : > { %p5686_p10 = pnand %p5685_p3, %p5679_p6 }
  0xad   : > { %5689 = shalt.err (!%p5686_p10)
}
  0xae   : > { %5399 = dma.hbm_to_vmem [thread:$0]  (!%p6510_p2), %s6568_s29, 256, %s6576_s15, %s7468_s19, %s7469_s0, %s7469_s0, %s7471_s8  }
  0xaf   : > { %s6602_s16 = sand.u32 1, %s6138_s10   ;;  %s105_s21 = sadd.s32 1, %s6166_s26 }
  0xb0   : > { %s6606_s9 = sshll.u32 %s6602_s16, 5  ;;  %p7588_p6 = scmp.ne.s32.totalorder %s7566_s25, 0 }
  0xb1   : > { %s6612_s18 = sshll.u32 %s6166_s26, 9  ;;  %s1072_s15 = scalar_lea.vmem [#allocation12], %s6606_s9 }
  0xb2   : > { %s7713_s21 = smov (!%p7588_p6, %s105_s21), %s6166_s26  ;;  %s6616_s22 = scalar_lea.hbm %s7552_s20, %s6612_s18 }
  0xb3   : > { %p107_p13 = scmp.ge.s32.totalorder %s7713_s21, 2  ;;  %s1079_s29 = sshll.u32 %s1072_s15, 4  ;;  %s6621_s29 = int_to_ptr.vmem [resolvable:$true] %s1079_s29 }
  0xb4   : > { %s6631_s19 = scalar_lea.hbm %s7547_s30, %s6612_s18  ;;  %s5690_s8 = scalar_lea.hbm %s6616_s22, 512 }
  0xb5   : > { %s7715_s21 = smov (%p107_p13, %s7713_s21), 0  ;;  %p5691_p5 = scmp.ne.s32.totalorder %s6616_s22, %s5690_s8 }
  0xb6   : > { %7589 = sst [smem:[#allocation82_spill]] %s7715_s21  ;;  %s447_s25 = ssub.s32 %s6166_s26, %s7715_s21 }
  0xb7   : > { %p6625_p1 = scmp.eq.s32.totalorder %s447_s25, 0  ;;  %p7591_p9 = scmp.ne.s32.totalorder %s7581_s3, 0 }
  0xb8   : > { %s5695_s15 = scalar_lea.hbm %s7552_s20, 1024  ;;  %p5696_p0 = scmp.lt.u32.totalorder %s6616_s22, %s7552_s20 }
  0xb9   : > { %s7590_s1 = scalar_select %p6625_p1, 1, 0 }
  0xba   : > { %p6638_p12 = pneg %p7591_p9  ;;  %p5697_p8 = scmp.lt.u32.totalorder %s5695_s15, %s5690_s8 }
  0xbb   : > { %p5699_p10 = scmp.lt.u32.totalorder %s5690_s8, %s6616_s22 }
  0xbc   : > { %s7592_s17 = scalar_select %p6638_p12, 1, 0 }
  0xbd   : > { %p5693_p7 = pnand %p6638_p12, %p5691_p5  ;;  %p5698_p3 = por %p5697_p8, %p5696_p0 }
  0xbf   : > { %p5694_p11 = pneg %p5693_p7  ;;  %p5700_p6 = por %p5699_p10, %p5698_p3 }
  0xc1   : > { %p5701_p13 = pnand %p5700_p6, %p5694_p11 }
  0xc3   : > { %5704 = shalt.err (!%p5701_p13)
}
  0xc4   : > { %s5705_s25 = scalar_lea.vmem %s6621_s29, 512  ;;  %s6205_s0 = smov [#allocation12]  }
  0xc5   : > { %p5706_p2 = scmp.ne.s32.totalorder %s6621_s29, %s5705_s25  ;;  %s5710_s21 = sshll.u32 %s6205_s0, 4  ;;  %s5711_s21 = int_to_ptr.vmem [resolvable:$false] %s5710_s21 }
  0xc6   : > { %s5712_s28 = scalar_lea.vmem %s5711_s21, 1024  ;;  %p5713_p5 = scmp.lt.s32.totalorder %s6621_s29, %s5711_s21 }
  0xc7   : > { %p5708_p4 = pnand %p5706_p2, %p6638_p12  ;;  %p5714_p7 = scmp.lt.s32.totalorder %s5712_s28, %s5705_s25 }
  0xc9   : > { %p5709_p1 = pneg %p5708_p4  ;;  %p5715_p0 = por %p5714_p7, %p5713_p5 }
  0xcb   : > { %p5716_p8 = pnand %p5715_p0, %p5709_p1 }
  0xcd   : > { %5719 = shalt.err (!%p5716_p8)
}
  0xce   : > { %s7593_s8 = smov 8   ;;  %s7594_s15 = smov 128  }
  0xcf   : > { %s7595_s20 = scalar_lea.sflag [#allocation13], %s6515_s2  ;;  %s7596_s28 = sadd.s32 1, %s6138_s10 }
  0xd0   : > { %5405 = dma.hbm_to_vmem [thread:$0]  (!%p7591_p9), %s6616_s22, 512, %s6621_s29, %s7595_s20, %s7594_s15, %s7594_s15, %s7593_s8  }
  0xd1   : > { %p7597_p2 = scmp.ne.s32.totalorder %s7590_s1, 0  ;;  %s1126_s21 = scalar_lea.vmem [#allocation15], %s6606_s9 }
  0xd2   : > { %s1133_s25 = sshll.u32 %s1126_s21, 4  ;;  %s7487_s12 = scalar_lea.sflag [#allocation16], %s6515_s2  ;;  %s6670_s25 = int_to_ptr.vmem [resolvable:$true] %s1133_s25 }
  0xd3   : > { %s6667_s0 = scalar_select %p7597_p2, %s6138_s10, %s7596_s28  }
  0xd4   : > { %s5720_s4 = scalar_lea.hbm %s6631_s19, 512  ;;  %s5725_s6 = scalar_lea.hbm %s7547_s30, 1024 }
  0xd5   : > { %7598 = sst [smem:[#allocation83_spill]] %s6667_s0  ;;  %p5721_p4 = scmp.ne.s32.totalorder %s6631_s19, %s5720_s4 }
  0xd6   : > { %p5726_p3 = scmp.lt.u32.totalorder %s6631_s19, %s7547_s30  ;;  %p5727_p10 = scmp.lt.u32.totalorder %s5725_s6, %s5720_s4 }
  0xd7   : > { %p5723_p1 = pnand %p5721_p4, %p6638_p12  ;;  %p5729_p13 = scmp.lt.u32.totalorder %s5720_s4, %s6631_s19 }
  0xd8   : > { %p5728_p6 = por %p5727_p10, %p5726_p3 }
  0xd9   : > { %p5724_p11 = pneg %p5723_p1 }
  0xda   : > { %p5730_p5 = por %p5729_p13, %p5728_p6 }
  0xdc   : > { %p5731_p7 = pnand %p5730_p5, %p5724_p11 }
  0xde   : > { %5734 = shalt.err (!%p5731_p7)
}
  0xdf   : > { %s5735_s20 = scalar_lea.vmem %s6670_s25, 512  ;;  %s6206_s22 = smov [#allocation15]  }
  0xe0   : > { %p5736_p0 = scmp.ne.s32.totalorder %s6670_s25, %s5735_s20  ;;  %s5740_s29 = sshll.u32 %s6206_s22, 4  ;;  %s5741_s29 = int_to_ptr.vmem [resolvable:$false] %s5740_s29 }
  0xe1   : > { %s5742_s1 = scalar_lea.vmem %s5741_s29, 1024  ;;  %p5743_p4 = scmp.lt.s32.totalorder %s6670_s25, %s5741_s29 }
  0xe2   : > { %p5738_p8 = pnand %p5736_p0, %p6638_p12  ;;  %p5744_p1 = scmp.lt.s32.totalorder %s5742_s1, %s5735_s20 }
  0xe4   : > { %p5739_p2 = pneg %p5738_p8  ;;  %p5745_p3 = por %p5744_p1, %p5743_p4 }
  0xe6   : > { %p5746_p10 = pnand %p5745_p3, %p5739_p2 }
  0xe8   : > { %5749 = shalt.err (!%p5746_p10)
}
  0xe9   : > { %5411 = dma.hbm_to_vmem [thread:$0]  (!%p7591_p9), %s6631_s19, 512, %s6670_s25, %s7487_s12, %s7594_s15, %s7594_s15, %s7593_s8  }
  0xea   : > { %s6696_s6 = sshll.u32 %s6166_s26, 4  ;;  %s1185_s4 = scalar_lea.vmem [#allocation18], %s6602_s16 }
  0xeb   : > { %s1192_s28 = sshll.u32 %s1185_s4, 4  ;;  %s6701_s21 = scalar_lea.hbm %s7548_s27, %s6696_s6  ;;  %s1193_s28 = int_to_ptr.vmem [resolvable:$true] %s1192_s28 }
  0xec   : > { %s7486_s20 = scalar_lea.sflag [#allocation19], %s6515_s2  ;;  %s5750_s22 = scalar_lea.hbm %s6701_s21, 16 }
  0xed   : > { %p5751_p11 = scmp.ne.s32.totalorder %s6701_s21, %s5750_s22  ;;  %s5755_s29 = scalar_lea.hbm %s7548_s27, 32 }
  0xee   : > { %p5756_p5 = scmp.lt.u32.totalorder %s6701_s21, %s7548_s27  ;;  %p5757_p7 = scmp.lt.u32.totalorder %s5755_s29, %s5750_s22 }
  0xef   : > { %p5753_p6 = pnand %p5751_p11, %p6638_p12  ;;  %p5759_p8 = scmp.lt.u32.totalorder %s5750_s22, %s6701_s21 }
  0xf0   : > { %p5758_p0 = por %p5757_p7, %p5756_p5 }
  0xf1   : > { %p5754_p13 = pneg %p5753_p6 }
  0xf2   : > { %p5760_p2 = por %p5759_p8, %p5758_p0 }
  0xf4   : > { %p5761_p4 = pnand %p5760_p2, %p5754_p13 }
  0xf6   : > { %5764 = shalt.err (!%p5761_p4)
}
  0xf7   : > { %s5765_s19 = scalar_lea.vmem %s1193_s28, 16  ;;  %s6207_s25 = smov [#allocation18]  }
  0xf8   : > { %p5766_p1 = scmp.ne.s32.totalorder %s1193_s28, %s5765_s19  ;;  %s5770_s1 = sshll.u32 %s6207_s25, 4  ;;  %s5771_s1 = int_to_ptr.vmem [resolvable:$false] %s5770_s1 }
  0xf9   : > { %s5772_s4 = scalar_lea.vmem %s5771_s1, 32  ;;  %p5773_p11 = scmp.lt.s32.totalorder %s1193_s28, %s5771_s1 }
  0xfa   : > { %p5768_p3 = pnand %p5766_p1, %p6638_p12  ;;  %p5774_p6 = scmp.lt.s32.totalorder %s5772_s4, %s5765_s19 }
  0xfc   : > { %p5769_p10 = pneg %p5768_p3  ;;  %p5775_p9 = por %p5774_p6, %p5773_p11 }
  0xfe   : > { %p5776_p5 = pnand %p5775_p9, %p5769_p10 }
 0x100   : > { %5779 = shalt.err (!%p5776_p5)
}
 0x101   : > { %p7599_p7 = scmp.ne.s32.totalorder %s7581_s3, 0  ;;  %s6721_s22 = scalar_lea.hbm %s7551_s14, %s6696_s6 }
 0x102   : > { %s1227_s29 = scalar_lea.vmem [#allocation21], %s6602_s16  ;;  %s7489_s25 = scalar_lea.sflag [#allocation22], %s6515_s2 }
 0x103   : > { %5417 = dma.hbm_to_vmem [thread:$0]  (!%p7599_p7), %s6701_s21, 16, %s1193_s28, %s7486_s20  }
 0x104   : > { %s1234_s19 = sshll.u32 %s1227_s29, 4  ;;  %s5780_s1 = scalar_lea.hbm %s6721_s22, 16  ;;  %s1235_s19 = int_to_ptr.vmem [resolvable:$true] %s1234_s19 }
 0x105   : > { %p5781_p9 = scmp.ne.s32.totalorder %s6721_s22, %s5780_s1  ;;  %s5785_s4 = scalar_lea.hbm %s7551_s14, 32 }
 0x106   : > { %p5786_p8 = scmp.lt.u32.totalorder %s6721_s22, %s7551_s14  ;;  %p5787_p2 = scmp.lt.u32.totalorder %s5785_s4, %s5780_s1 }
 0x107   : > { %p5783_p13 = pnand %p5781_p9, %p6638_p12  ;;  %p5789_p1 = scmp.lt.u32.totalorder %s5780_s1, %s6721_s22 }
 0x108   : > { %p5788_p4 = por %p5787_p2, %p5786_p8 }
 0x109   : > { %p5784_p0 = pneg %p5783_p13 }
 0x10a   : > { %p5790_p3 = por %p5789_p1, %p5788_p4 }
 0x10c   : > { %p5791_p10 = pnand %p5790_p3, %p5784_p0 }
 0x10e   : > { %5794 = shalt.err (!%p5791_p10)
}
 0x10f   : > { %s5795_s28 = scalar_lea.vmem %s1235_s19, 16  ;;  %s6208_s21 = smov [#allocation21]  }
 0x110   : > { %p5796_p11 = scmp.ne.s32.totalorder %s1235_s19, %s5795_s28  ;;  %s5800_s29 = sshll.u32 %s6208_s21, 4  ;;  %s5801_s29 = int_to_ptr.vmem [resolvable:$false] %s5800_s29 }
 0x111   : > { %s5802_s20 = scalar_lea.vmem %s5801_s29, 32  ;;  %p5803_p9 = scmp.lt.s32.totalorder %s1235_s19, %s5801_s29 }
 0x112   : > { %p5798_p6 = pnand %p5796_p11, %p6638_p12  ;;  %p5804_p13 = scmp.lt.s32.totalorder %s5802_s20, %s5795_s28 }
 0x114   : > { %p5799_p5 = pneg %p5798_p6  ;;  %p5805_p7 = por %p5804_p13, %p5803_p9 }
 0x116   : > { %p5806_p2 = pnand %p5805_p7, %p5799_p5 }
 0x118   : > { %5809 = shalt.err (!%p5806_p2)
}
 0x119   : > { %p7600_p8 = scmp.ne.s32.totalorder %s7581_s3, 0  ;;  %s4834_s1 = sshll.u32 %s6506_s7, 3 }
 0x11a   : > { %s4835_s20 = sshll.u32 %s6162_s23, 7  ;;  %s907_s28 = scalar_lea.vmem [#allocation3], %s4834_s1 }
 0x11b   : > { %5423 = dma.hbm_to_vmem [thread:$0]  (!%p7600_p8), %s6721_s22, 16, %s1235_s19, %s7489_s25  }
 0x11c   : > { %s6743_s4 = scalar_lea.hbm %s7550_s5, %s4835_s20  ;;  %s914_s21 = sshll.u32 %s907_s28, 4  ;;  %s6747_s21 = int_to_ptr.vmem [resolvable:$true] %s914_s21 }
 0x11d   : > { %s6750_s29 = scalar_lea.hbm %s7549_s13, %s4835_s20  ;;  %s904_s12 = scalar_lea.sflag [#allocation4], %s6506_s7 }
 0x11e   : > { %s5810_s14 = scalar_lea.hbm %s6743_s4, 128  ;;  %p7601_p0 = scmp.ne.s32.totalorder %s7582_s11, 0 }
 0x11f   : > { %p5811_p7 = scmp.ne.s32.totalorder %s6743_s4, %s5810_s14  ;;  %s5815_s22 = scalar_lea.hbm %s7550_s5, 256 }
 0x120   : > { %p5816_p3 = scmp.lt.u32.totalorder %s6743_s4, %s7550_s5  ;;  %p5817_p10 = scmp.lt.u32.totalorder %s5815_s22, %s5810_s14 }
 0x121   : > { %p5813_p4 = pnand %p5811_p7, %p7601_p0  ;;  %p5819_p6 = scmp.lt.u32.totalorder %s5810_s14, %s6743_s4 }
 0x122   : > { %p5818_p11 = por %p5817_p10, %p5816_p3 }
 0x123   : > { %p5814_p1 = pneg %p5813_p4 }
 0x124   : > { %p5820_p5 = por %p5819_p6, %p5818_p11 }
 0x126   : > { %p5821_p9 = pnand %p5820_p5, %p5814_p1 }
 0x128   : > { %5824 = shalt.err (!%p5821_p9)
}
 0x129   : > { %s5825_s19 = scalar_lea.vmem %s6747_s21, 128  ;;  %s6209_s20 = smov [#allocation3]  }
 0x12a   : > { %p5826_p13 = scmp.ne.s32.totalorder %s6747_s21, %s5825_s19  ;;  %s5830_s28 = sshll.u32 %s6209_s20, 4  ;;  %s5831_s28 = int_to_ptr.vmem [resolvable:$false] %s5830_s28 }
 0x12b   : > { %s5832_s25 = scalar_lea.vmem %s5831_s28, 256  ;;  %p5833_p7 = scmp.lt.s32.totalorder %s6747_s21, %s5831_s28 }
 0x12c   : > { %p5828_p2 = pnand %p5826_p13, %p7601_p0  ;;  %p5834_p4 = scmp.lt.s32.totalorder %s5832_s25, %s5825_s19 }
 0x12e   : > { %p5829_p8 = pneg %p5828_p2  ;;  %p5835_p3 = por %p5834_p4, %p5833_p7 }
 0x130   : > { %p5836_p10 = pnand %p5835_p3, %p5829_p8 }
 0x132   : > { %5839 = shalt.err (!%p5836_p10)
}
 0x133   : > { %p7602_p1 = scmp.ne.s32.totalorder %s7580_s24, 0  ;;  %s7603_s14 = sld [smem:[#allocation47_spill]] }
 0x134   : > { %s946_s25 = scalar_lea.vmem [#allocation8], %s4834_s1  ;;  %s5840_s20 = scalar_lea.hbm %s6750_s29, 128 }
 0x135   : > { %5390 = dma.hbm_to_vmem [thread:$0]  (!%p7602_p1), %s6743_s4, 128, %s6747_s21, %s904_s12  }
 0x136   : > { %s953_s22 = sshll.u32 %s946_s25, 4  ;;  %p5841_p8 = scmp.ne.s32.totalorder %s6750_s29, %s5840_s20  ;;  %s954_s22 = int_to_ptr.vmem [resolvable:$true] %s953_s22 }
 0x137   : > { %s5845_s28 = scalar_lea.hbm %s7549_s13, 256  ;;  %p5846_p5 = scmp.lt.u32.totalorder %s6750_s29, %s7549_s13 }
 0x138   : > { %p5843_p11 = pnand %p5841_p8, %p7601_p0  ;;  %p5847_p9 = scmp.lt.u32.totalorder %s5845_s28, %s5840_s20 }
 0x139   : > { %s6774_s19 = scalar_lea.hbm %s7603_s14, %s6612_s18  ;;  %p5849_p2 = scmp.lt.u32.totalorder %s5840_s20, %s6750_s29 }
 0x13a   : > { %p5844_p6 = pneg %p5843_p11  ;;  %p5848_p13 = por %p5847_p9, %p5846_p5 }
 0x13c   : > { %p5850_p7 = por %p5849_p2, %p5848_p13 }
 0x13e   : > { %p5851_p4 = pnand %p5850_p7, %p5844_p6 }
 0x140   : > { %5854 = shalt.err (!%p5851_p4)
}
 0x141   : > { %s5855_s12 = scalar_lea.vmem %s954_s22, 128  ;;  %s6210_s7 = smov [#allocation8]  }
 0x142   : > { %p5856_p3 = scmp.ne.s32.totalorder %s954_s22, %s5855_s12  ;;  %s5860_s1 = sshll.u32 %s6210_s7, 4  ;;  %s5861_s1 = int_to_ptr.vmem [resolvable:$false] %s5860_s1 }
 0x143   : > { %s5862_s4 = scalar_lea.vmem %s5861_s1, 256  ;;  %p5863_p8 = scmp.lt.s32.totalorder %s954_s22, %s5861_s1 }
 0x144   : > { %p5858_p10 = pnand %p5856_p3, %p7601_p0  ;;  %p5864_p11 = scmp.lt.s32.totalorder %s5862_s4, %s5855_s12 }
 0x146   : > { %p5859_p12 = pneg %p5858_p10  ;;  %p5865_p1 = por %p5864_p11, %p5863_p8 }
 0x148   : > { %p5866_p5 = pnand %p5865_p1, %p5859_p12 }
 0x14a   : > { %5869 = shalt.err (!%p5866_p5)
}
 0x14b   : > { %p7604_p9 = scmp.ne.s32.totalorder %s7580_s24, 0  ;;  %s7605_s21 = scalar_lea.sflag [#allocation7], %s6515_s2 }
 0x14c   : > { %s7606_s25 = sld [smem:[#allocation51_spill]]  ;;  %s1045_s11 = scalar_lea.vmem [#allocation11], %s6606_s9 }
 0x14d   : > { %5396 = dma.hbm_to_vmem [thread:$0]  (!%p7604_p9), %s6750_s29, 128, %s954_s22, %s7605_s21  }
 0x14e   : > { %s1052_s20 = sshll.u32 %s1045_s11, 4  ;;  %s5870_s24 = scalar_lea.hbm %s6774_s19, 512  ;;  %s6792_s20 = int_to_ptr.vmem [resolvable:$true] %s1052_s20 }
 0x14f   : > { %p5871_p12 = scmp.ne.s32.totalorder %s6774_s19, %s5870_s24  ;;  %p7607_p0 = scmp.ne.s32.totalorder %s7592_s17, 0 }
 0x150   : > { %s5875_s12 = scalar_lea.hbm %s7603_s14, 1024  ;;  %p5876_p13 = scmp.lt.u32.totalorder %s6774_s19, %s7603_s14 }
 0x151   : > { %p5873_p1 = pnand %p5871_p12, %p7607_p0  ;;  %p5877_p2 = scmp.lt.u32.totalorder %s5875_s12, %s5870_s24 }
 0x152   : > { %s6796_s28 = scalar_lea.hbm %s7606_s25, %s6612_s18  ;;  %p5879_p4 = scmp.lt.u32.totalorder %s5870_s24, %s6774_s19 }
 0x153   : > { %p5874_p6 = pneg %p5873_p1  ;;  %p5878_p7 = por %p5877_p2, %p5876_p13 }
 0x155   : > { %p5880_p3 = por %p5879_p4, %p5878_p7 }
 0x157   : > { %p5881_p10 = pnand %p5880_p3, %p5874_p6 }
 0x159   : > { %5884 = shalt.err (!%p5881_p10)
}
 0x15a   : > { %s5885_s29 = scalar_lea.vmem %s6792_s20, 512  ;;  %s6211_s22 = smov [#allocation11]  }
 0x15b   : > { %p5886_p8 = scmp.ne.s32.totalorder %s6792_s20, %s5885_s29  ;;  %s5890_s7 = sshll.u32 %s6211_s22, 4  ;;  %s5891_s7 = int_to_ptr.vmem [resolvable:$false] %s5890_s7 }
 0x15c   : > { %s5892_s1 = scalar_lea.vmem %s5891_s7, 1024  ;;  %p5893_p9 = scmp.lt.s32.totalorder %s6792_s20, %s5891_s7 }
 0x15d   : > { %p5888_p11 = pnand %p5886_p8, %p7607_p0  ;;  %p5894_p12 = scmp.lt.s32.totalorder %s5892_s1, %s5885_s29 }
 0x15f   : > { %p5889_p5 = pneg %p5888_p11  ;;  %p5895_p1 = por %p5894_p12, %p5893_p9 }
 0x161   : > { %p5896_p13 = pnand %p5895_p1, %p5889_p5 }
 0x163   : > { %5899 = shalt.err (!%p5896_p13)
}
 0x164   : > { %p7608_p6 = scmp.ne.s32.totalorder %s7581_s3, 0  ;;  %s7609_s4 = scalar_lea.sflag [#allocation10], %s6515_s2 }
 0x165   : > { %s7610_s21 = sld [smem:[#allocation57_spill]]  ;;  %s1099_s11 = scalar_lea.vmem [#allocation14], %s6606_s9 }
 0x166   : > { %5402 = dma.hbm_to_vmem [thread:$0]  (!%p7608_p6), %s6774_s19, 512, %s6792_s20, %s7609_s4, %s7594_s15, %s7594_s15, %s7593_s8  }
 0x167   : > { %s1106_s24 = sshll.u32 %s1099_s11, 4  ;;  %s5900_s29 = scalar_lea.hbm %s6796_s28, 512  ;;  %s6821_s24 = int_to_ptr.vmem [resolvable:$true] %s1106_s24 }
 0x168   : > { %p5901_p2 = scmp.ne.s32.totalorder %s6796_s28, %s5900_s29  ;;  %s5905_s22 = scalar_lea.hbm %s7606_s25, 1024 }
 0x169   : > { %p5906_p3 = scmp.lt.u32.totalorder %s6796_s28, %s7606_s25  ;;  %p5907_p10 = scmp.lt.u32.totalorder %s5905_s22, %s5900_s29 }
 0x16a   : > { %p5903_p7 = pnand %p5901_p2, %p7607_p0  ;;  %p5909_p11 = scmp.lt.u32.totalorder %s5900_s29, %s6796_s28 }
 0x16b   : > { %s6825_s12 = scalar_lea.hbm %s7610_s21, %s6612_s18  ;;  %p5908_p8 = por %p5907_p10, %p5906_p3 }
 0x16c   : > { %p5904_p4 = pneg %p5903_p7 }
 0x16d   : > { %p5910_p5 = por %p5909_p11, %p5908_p8 }
 0x16f   : > { %p5911_p9 = pnand %p5910_p5, %p5904_p4 }
 0x171   : > { %5914 = shalt.err (!%p5911_p9)
}
 0x172   : > { %s5915_s19 = scalar_lea.vmem %s6821_s24, 512  ;;  %s6212_s18 = smov [#allocation14]  }
 0x173   : > { %p5916_p12 = scmp.ne.s32.totalorder %s6821_s24, %s5915_s19  ;;  %s5920_s20 = sshll.u32 %s6212_s18, 4  ;;  %s5921_s20 = int_to_ptr.vmem [resolvable:$false] %s5920_s20 }
 0x174   : > { %s5922_s7 = scalar_lea.vmem %s5921_s20, 1024  ;;  %p5923_p2 = scmp.lt.s32.totalorder %s6821_s24, %s5921_s20 }
 0x175   : > { %p5918_p1 = pnand %p5916_p12, %p7607_p0  ;;  %p5924_p7 = scmp.lt.s32.totalorder %s5922_s7, %s5915_s19 }
 0x177   : > { %p5919_p13 = pneg %p5918_p1  ;;  %p5925_p3 = por %p5924_p7, %p5923_p2 }
 0x179   : > { %p5926_p10 = pnand %p5925_p3, %p5919_p13 }
 0x17b   : > { %5929 = shalt.err (!%p5926_p10)
}
 0x17c   : > { %s7611_s1 = scalar_lea.sflag [#allocation13], %s6515_s2  ;;  %s7612_s4 = sld [smem:[#allocation60_spill]] }
 0x17d   : > { %5408 = dma.hbm_to_vmem [thread:$0]  (!%p7608_p6), %s6796_s28, 512, %s6821_s24, %s7611_s1, %s7594_s15, %s7594_s15, %s7593_s8  }
 0x17e   : > { %s1165_s11 = scalar_lea.vmem [#allocation17], %s6606_s9  ;;  %s5930_s19 = scalar_lea.hbm %s6825_s12, 512 }
 0x17f   : > { %s1172_s29 = sshll.u32 %s1165_s11, 4  ;;  %p5931_p4 = scmp.ne.s32.totalorder %s6825_s12, %s5930_s19  ;;  %s6850_s29 = int_to_ptr.vmem [resolvable:$true] %s1172_s29 }
 0x180   : > { %s5935_s18 = scalar_lea.hbm %s7610_s21, 1024  ;;  %p5936_p5 = scmp.lt.u32.totalorder %s6825_s12, %s7610_s21 }
 0x181   : > { %p5933_p8 = pnand %p5931_p4, %p7607_p0  ;;  %p5937_p9 = scmp.lt.u32.totalorder %s5935_s18, %s5930_s19 }
 0x182   : > { %s6854_s22 = scalar_lea.hbm %s7612_s4, %s6696_s6  ;;  %p5939_p1 = scmp.lt.u32.totalorder %s5930_s19, %s6825_s12 }
 0x183   : > { %p5934_p11 = pneg %p5933_p8  ;;  %p5938_p12 = por %p5937_p9, %p5936_p5 }
 0x185   : > { %p5940_p13 = por %p5939_p1, %p5938_p12 }
 0x187   : > { %p5941_p2 = pnand %p5940_p13, %p5934_p11 }
 0x189   : > { %5944 = shalt.err (!%p5941_p2)
}
 0x18a   : > { %s5945_s9 = scalar_lea.vmem %s6850_s29, 512  ;;  %s6213_s28 = smov [#allocation17]  }
 0x18b   : > { %p5946_p7 = scmp.ne.s32.totalorder %s6850_s29, %s5945_s9  ;;  %s5950_s24 = sshll.u32 %s6213_s28, 4  ;;  %s5951_s24 = int_to_ptr.vmem [resolvable:$false] %s5950_s24 }
 0x18c   : > { %s5952_s20 = scalar_lea.vmem %s5951_s24, 1024  ;;  %p5953_p4 = scmp.lt.s32.totalorder %s6850_s29, %s5951_s24 }
 0x18d   : > { %p5948_p3 = pnand %p5946_p7, %p7607_p0  ;;  %p5954_p8 = scmp.lt.s32.totalorder %s5952_s20, %s5945_s9 }
 0x18f   : > { %p5949_p10 = pneg %p5948_p3  ;;  %p5955_p5 = por %p5954_p8, %p5953_p4 }
 0x191   : > { %p5956_p9 = pnand %p5955_p5, %p5949_p10 }
 0x193   : > { %5959 = shalt.err (!%p5956_p9)
}
 0x194   : > { %s7613_s7 = scalar_lea.sflag [#allocation16], %s6515_s2  ;;  %s7614_s1 = sld [smem:[#allocation62_spill]] }
 0x195   : > { %5414 = dma.hbm_to_vmem [thread:$0]  (!%p7608_p6), %s6825_s12, 512, %s6850_s29, %s7613_s7, %s7594_s15, %s7594_s15, %s7593_s8  }
 0x196   : > { %s1210_s11 = scalar_lea.vmem [#allocation20], %s6602_s16  ;;  %s5960_s9 = scalar_lea.hbm %s6854_s22, 16 }
 0x197   : > { %s1217_s19 = sshll.u32 %s1210_s11, 4  ;;  %p5961_p11 = scmp.ne.s32.totalorder %s6854_s22, %s5960_s9  ;;  %s1218_s19 = int_to_ptr.vmem [resolvable:$true] %s1217_s19 }
 0x198   : > { %s5965_s28 = scalar_lea.hbm %s7612_s4, 32  ;;  %p5966_p13 = scmp.lt.u32.totalorder %s6854_s22, %s7612_s4 }
 0x199   : > { %p5963_p12 = pnand %p5961_p11, %p7607_p0  ;;  %p5967_p2 = scmp.lt.u32.totalorder %s5965_s28, %s5960_s9 }
 0x19a   : > { %s6881_s18 = scalar_lea.hbm %s7614_s1, %s6696_s6  ;;  %p5969_p3 = scmp.lt.u32.totalorder %s5960_s9, %s6854_s22 }
 0x19b   : > { %p5964_p1 = pneg %p5963_p12  ;;  %p5968_p7 = por %p5967_p2, %p5966_p13 }
 0x19d   : > { %p5970_p10 = por %p5969_p3, %p5968_p7 }
 0x19f   : > { %p5971_p4 = pnand %p5970_p10, %p5964_p1 }
 0x1a1   : > { %5974 = shalt.err (!%p5971_p4)
}
 0x1a2   : > { %s5975_s24 = scalar_lea.vmem %s1218_s19, 16  ;;  %s6214_s8 = smov [#allocation20]  }
 0x1a3   : > { %p5976_p8 = scmp.ne.s32.totalorder %s1218_s19, %s5975_s24  ;;  %s5980_s15 = sshll.u32 %s6214_s8, 4  ;;  %s5981_s15 = int_to_ptr.vmem [resolvable:$false] %s5980_s15 }
 0x1a4   : > { %s5982_s6 = scalar_lea.vmem %s5981_s15, 32  ;;  %p5983_p11 = scmp.lt.s32.totalorder %s1218_s19, %s5981_s15 }
 0x1a5   : > { %p5978_p5 = pnand %p5976_p8, %p7607_p0  ;;  %p5984_p12 = scmp.lt.s32.totalorder %s5982_s6, %s5975_s24 }
 0x1a7   : > { %p5979_p9 = pneg %p5978_p5  ;;  %p5985_p6 = por %p5984_p12, %p5983_p11 }
 0x1a9   : > { %p5986_p2 = pnand %p5985_p6, %p5979_p9 }
 0x1ab   : > { %5989 = shalt.err (!%p5986_p2)
}
 0x1ac   : > { %p7615_p13 = scmp.ne.s32.totalorder %s7581_s3, 0  ;;  %s7616_s12 = scalar_lea.sflag [#allocation19], %s6515_s2 }
 0x1ad   : > { %s1244_s29 = scalar_lea.vmem [#allocation23], %s6602_s16  ;;  %s5990_s7 = scalar_lea.hbm %s6881_s18, 16 }
 0x1ae   : > { %5420 = dma.hbm_to_vmem [thread:$0]  (!%p7615_p13), %s6854_s22, 16, %s1218_s19, %s7616_s12  }
 0x1af   : > { %s1251_s20 = sshll.u32 %s1244_s29, 4  ;;  %p5991_p6 = scmp.ne.s32.totalorder %s6881_s18, %s5990_s7  ;;  %s1252_s20 = int_to_ptr.vmem [resolvable:$true] %s1251_s20 }
 0x1b0   : > { %s5995_s11 = scalar_lea.hbm %s7614_s1, 32  ;;  %p5996_p3 = scmp.lt.u32.totalorder %s6881_s18, %s7614_s1 }
 0x1b1   : > { %p5993_p1 = pnand %p5991_p6, %p7607_p0  ;;  %p5997_p10 = scmp.lt.u32.totalorder %s5995_s11, %s5990_s7 }
 0x1b2   : > { %p5999_p8 = scmp.lt.u32.totalorder %s5990_s7, %s6881_s18 }
 0x1b3   : > { %p5994_p7 = pneg %p5993_p1  ;;  %p5998_p4 = por %p5997_p10, %p5996_p3 }
 0x1b5   : > { %p6000_p5 = por %p5999_p8, %p5998_p4 }
 0x1b7   : > { %p6001_p9 = pnand %p6000_p5, %p5994_p7 }
 0x1b9   : > { %6004 = shalt.err (!%p6001_p9)
}
 0x1ba   : > { %s6005_s9 = scalar_lea.vmem %s1252_s20, 16  ;;  %s6215_s16 = smov [#allocation23]  }
 0x1bb   : > { %p6006_p11 = scmp.ne.s32.totalorder %s1252_s20, %s6005_s9  ;;  %s6010_s22 = sshll.u32 %s6215_s16, 4  ;;  %s6011_s22 = int_to_ptr.vmem [resolvable:$false] %s6010_s22 }
 0x1bc   : > { %s6012_s19 = scalar_lea.vmem %s6011_s22, 32  ;;  %p6013_p6 = scmp.lt.s32.totalorder %s1252_s20, %s6011_s22 }
 0x1bd   : > { %p6008_p12 = pnand %p6006_p11, %p7607_p0  ;;  %p6014_p1 = scmp.lt.s32.totalorder %s6012_s19, %s6005_s9 }
 0x1bf   : > { %p6009_p2 = pneg %p6008_p12  ;;  %p6015_p13 = por %p6014_p1, %p6013_p6 }
 0x1c1   : > { %p6016_p3 = pnand %p6015_p13, %p6009_p2 }
 0x1c3   : > { %6019 = shalt.err (!%p6016_p3)
}
 0x1c4   : > { %p7617_p10 = scmp.ne.s32.totalorder %s7581_s3, 0  ;;  %s7618_s28 = scalar_lea.sflag [#allocation22], %s6515_s2 }
 0x1c5   : > { %s7619_s24 = sld [smem:[#allocation81_spill]] }
 0x1c6   : > { %5426 = dma.hbm_to_vmem [thread:$0]  (!%p7617_p10), %s6881_s18, 16, %s1252_s20, %s7618_s28  }
 0x1cb   : > { %p7620_p7 = scmp.ne.s32.totalorder %s7619_s24, 0 }
 0x1cd   : > { %1260 = sbr.rel (%p7620_p7) target bundleno = 7290 (0x1c7a), region = 136 }
 0x1d4   : > { %s7621_s17 = sld [smem:[#allocation67_spill]]  ;;  %s7622_s8 = sld [smem:[#allocation76_spill]] }
 0x1da   : > { %s6917_s15 = sand.u32 1, %s7621_s17   ;;  %p7624_p0 = scmp.ne.s32.totalorder %s7622_s8, 0 }
 0x1db   : > { %7623 = sst [smem:[#allocation84_spill]] %s6917_s15  ;;  %s6920_s6 = sshll.u32 %s6917_s15, 3 }
 0x1dc   : > { %s1263_s12 = scalar_lea.sflag [#allocation4], %s6917_s15 }
 0x1dd   : > { %6093 = dma.done.wait (%p7624_p0), %s1263_s12, 128  }
 0x1de   : > { %6095 = vsyncadd (%p7624_p0), %s1263_s12, 4294967168  ;;  %s7625_s3 = sld [smem:[#allocation74_spill]]  ;;  %s4865_s18 = sshll.u32 %s6917_s15, 4 }
 0x1df   : > { %s6933_s7 = scalar_lea.vmem [#allocation6], %s4865_s18 }
 0x1e0   : > { %7626 = sst [smem:[#allocation85_spill]] %s6933_s7 }
 0x1e4   : > { %s6929_s2 = sand.u32 1, %s7625_s3  }
 0x1e5   : > { %s1272_s20 = scalar_lea.sflag [#allocation7], %s6929_s2 }
 0x1e6   : > { %6097 = dma.done.wait (%p7624_p0), %s1272_s20, 384  }
 0x1e7   : > { %6099 = vsyncadd (%p7624_p0), %s1272_s20, 4294966912  ;;  %s1290_s9 = scalar_lea.sflag [#allocation10], %s6929_s2  ;;  %s6941_s16 = scalar_lea.vmem [#allocation9], %s4865_s18 }
 0x1e8   : > { %7627 = sst [smem:[#allocation86_spill]] %s6941_s16 }
 0x1e9   : > { %6101 = dma.done.wait (%p7624_p0), %s1290_s9, 256  }
 0x1ea   : > { %6103 = vsyncadd (%p7624_p0), %s1290_s9, 4294967040  ;;  %s7628_s22 = sld [smem:[#allocation64_spill]] }
 0x1eb   : > { %s7629_s19 = sld [smem:[#allocation78_spill]] }
 0x1f0   : > { %s6948_s28 = sand.u32 1, %s7628_s22  }
 0x1f1   : > { %s4868_s24 = sshll.u32 %s6948_s28, 5  ;;  %p7631_p13 = scmp.ne.s32.totalorder %s7629_s19, 0 }
 0x1f2   : > { %s6951_s17 = scalar_lea.vmem [#allocation11], %s4868_s24 }
 0x1f3   : > { %7630 = sst [smem:[#allocation87_spill]] %s6951_s17 }
 0x1f4   : > { %6105 = dma.done.wait (%p7631_p13), %s1290_s9, 512  }
 0x1f5   : > { %6107 = vsyncadd (%p7631_p13), %s1290_s9, 4294966784  ;;  %s1308_s12 = scalar_lea.sflag [#allocation13], %s6929_s2  ;;  %s6958_s3 = scalar_lea.vmem [#allocation12], %s4868_s24 }
 0x1f6   : > { %7632 = sst [smem:[#allocation88_spill]] %s6958_s3 }
 0x1f7   : > { %6109 = dma.done.wait (%p7631_p13), %s1308_s12, 1024  }
 0x1f8   : > { %6111 = vsyncadd (%p7631_p13), %s1308_s12, 4294966272  ;;  %s6964_s8 = scalar_lea.vmem [#allocation14], %s4868_s24  ;;  %s1326_s18 = scalar_lea.sflag [#allocation16], %s6929_s2 }
 0x1f9   : > { %7633 = sst [smem:[#allocation89_spill]] %s6964_s8  ;;  %s6967_s20 = scalar_lea.vmem [#allocation15], %s4868_s24 }
 0x1fa   : > { %7634 = sst [smem:[#allocation90_spill]] %s6967_s20 }
 0x1fb   : > { %6113 = dma.done.wait (%p7631_p13), %s1326_s18, 1024  }
 0x1fc   : > { %6115 = vsyncadd (%p7631_p13), %s1326_s18, 4294966272  ;;  %s6973_s9 = scalar_lea.vmem [#allocation17], %s4868_s24  ;;  %s1344_s22 = scalar_lea.sflag [#allocation19], %s6929_s2 }
 0x1fd   : > { %7635 = sst [smem:[#allocation91_spill]] %s6973_s9 }
 0x1fe   : > { %6117 = dma.done.wait (%p7631_p13), %s1344_s22, 32  }
 0x1ff   : > { %6119 = vsyncadd (%p7631_p13), %s1344_s22, 4294967264  ;;  %s1360_s29 = scalar_lea.sflag [#allocation22], %s6929_s2 }
 0x200   : > { %6121 = dma.done.wait (%p7631_p13), %s1360_s29, 32  }
 0x201   : > { %6123 = vsyncadd (%p7631_p13), %s1360_s29, 4294967264  ;;  %s7636_s24 = sld [smem:[#allocation69_spill]]  ;;  %s7637_s18 = sld [smem:[#allocation70_spill]] }
 0x202   : > { %s7640_s5 = sld [smem:[#allocation39_spill]]  ;;  %s7641_s22 = sld [smem:[#allocation41_spill]] }
 0x203   : > { %s7643_s14 = sld [smem:[#allocation43_spill]]  ;;  %s7644_s21 = sld [smem:[#allocation44_spill]] }
 0x204   : > { %s7645_s25 = sld [smem:[#allocation45_spill]]  ;;  %s7646_s12 = sld [smem:[#allocation46_spill]] }
 0x205   : > { %s7647_s2 = sld [smem:[#allocation48_spill]]  ;;  %s7648_s1 = sld [smem:[#allocation50_spill]] }
 0x206   : > { %s7649_s27 = sld [smem:[#allocation52_spill]]  ;;  %s7650_s19 = sld [smem:[#allocation54_spill]] }
 0x207   : > { %p1557_p4 = scmp.lt.s32.totalorder %s7636_s24, 1  ;;  %p1560_p8 = scmp.lt.s32.totalorder %s7637_s18, 1 }
 0x208   : > { %s7652_s29 = sld [smem:[#allocation55_spill]]  ;;  %s7653_s26 = sld [smem:[#allocation56_spill]] }
 0x209   : > { %s7717_s24 = smov (!%p1557_p4, %s7636_s24), 1  ;;  %s7654_s10 = sld [smem:[#allocation59_spill]] }
 0x20a   : > { %7651 = sst [smem:[#allocation92_spill]] %s7717_s24 }
 0x20b   : > { %s6994_s30 = scalar_select %p1560_p8, %s7637_s18, 1 }
 0x20c   : > { %s7657_s8 = sld [smem:[#allocation70_spill]] }
 0x20d   : > { %s4957_s0 = sshll.u32 %s6994_s30, 5  ;;  %s1583_s16 = scalar_lea.vmem %s7644_s21, %s6994_s30 }
 0x20e   : > { %s7002_s9 = scalar_lea.vmem %s7640_s5, %s4957_s0  ;;  %s7005_s20 = scalar_lea.vmem %s7641_s22, %s4957_s0 }
 0x20f   : > { %7655 = sst [smem:[#allocation93_spill]] %s7002_s9  ;;  %s7010_s17 = scalar_lea.vmem %s7643_s14, %s4957_s0 }
 0x210   : > { %7656 = sst [smem:[#allocation94_spill]] %s7005_s20  ;;  %s1586_s7 = scalar_lea.vmem %s7645_s25, %s6994_s30 }
 0x211   : > { %s1589_s3 = scalar_lea.vmem %s7646_s12, %s6994_s30  ;;  %s1592_s18 = scalar_lea.vmem %s7647_s2, %s6994_s30 }
 0x212   : > { %s1595_s11 = scalar_lea.vmem %s7648_s1, %s6994_s30  ;;  %s1598_s23 = scalar_lea.vmem %s7649_s27, %s6994_s30 }
 0x213   : > { %s1601_s24 = scalar_lea.vmem %s7650_s19, %s6994_s30  ;;  %s1604_s4 = scalar_lea.vmem %s7652_s29, %s6994_s30 }
 0x214   : > { %s1607_s15 = scalar_lea.vmem %s7653_s26, %s6994_s30  ;;  %s4960_s5 = sshll.u32 %s6994_s30, 6 }
 0x215   : > { %s7032_s9 = scalar_lea.vmem %s7654_s10, %s4960_s5  ;;  %s1370_s22 = scalar_lea.vmem [#allocation23], %s6948_s28 }
 0x216   : > { %s1556_s20 = scalar_lea.vmem [#allocation24], %s6920_s6  ;;  %p4882_p5 = scmp.ne.s32.totalorder %s7657_s8, 0 }
 0x217   : > { %s7658_s13 = scalar_lea.vmem (!%p4882_p5), [#allocation3], %s6920_s6  ;;  %s7659_s0 = sld [smem:[#allocation69_spill]] (!%p4882_p5)  ;;  %vm1620_vm0 = vcmask (!%p4882_p5), 261120  }
 0x218   : > { %1616 = sbr.rel (%p4882_p5) target bundleno = 544 (0x220), region = 192  ;;  %v1617_v0 = vld [vmem:[%s7658_s13] sm:$0xff] (!%p4882_p5) }
 0x21d   : > { %s4883_s14 = sshll.u32 (!%p4882_p5), %s7659_s0, 3 }
 0x21e   : > { %s1619_s25 = scalar_lea.vmem (!%p4882_p5), [#allocation2], %s4883_s14 }
 0x21f   : > { %1621 = vst.msk [vmem:[%s1619_s25] sm:$0xff] %vm1620_vm0, %v1617_v0 }
 0x220 PF: > { %s7660_s27 = sld [smem:[#allocation93_spill]]  ;;  %s7661_s10 = sld [smem:[#allocation69_spill]]  ;;  %v6216_v4 = vmov 0.0|0.0   ;;  %vm6217_vm1 = vmmov 0   ;;  %v6218_v7 = vmov 0.0   ;;  %vm1643_vm2 = vcmask 261120  }
 0x221   : > { %5279 = vmatprep.subr.bf16.mxu0 %v6216_v4  ;;  %5066 = vmatprep.mubr.msk.f32.mxu0 %vm6217_vm1, %v6218_v7  ;;  %s7662_s26 = sld [smem:[#allocation40_spill]]  ;;  %s7663_s8 = scalar_lea.vmem [#allocation8], %s6920_s6  ;;  %vm1810_vm3 = vcmask 64512   ;;  %v1802_v51 = vld [vmem:[%s7010_s17 + $0x8] sm:$0xff]  ;;  %v1801_v56 = vld [vmem:[%s7010_s17] sm:$0xff]  ;;  %vm3160_vm5 = vcmask 130048  }
 0x222   : > { %5285 = vmatprep.subr.bf16.mxu1 %v6216_v4  ;;  %5077 = vmatprep.mubr.msk.f32.mxu1 %vm6217_vm1, %v6218_v7  ;;  %v7058_v10 = vld [vmem:[%s7663_s8] sm:$0xff]  ;;  %s7665_s2 = sld [smem:[#allocation94_spill]]  ;;  %s6219_s19 = smov 88   ;;  %vm7213_vm4 = vmpackc.low %vm1810_vm3, %vm1810_vm3  ;;  %vm4194_vm6 = vcmask 523264  }
 0x223   : > { %s6220_s29 = smov 96   ;;  %s7666_s5 = sld [smem:[#allocation42_spill]] }
 0x224   : > { %s6221_s13 = smov 120   ;;  %s6222_s14 = smov 112  }
 0x225   : > { %s6223_s25 = smov 80   ;;  %s7669_s8 = sld [smem:[#allocation88_spill]] }
 0x226   : > { %v1632_v1 = vld [vmem:[%s7660_s27] sm:$0xff]  ;;  %v1633_v2 = vld [vmem:[%s7660_s27 + $0x8] sm:$0xff]  ;;  %v1634_v3 = vld [vmem:[%s7660_s27 + $0x10] sm:$0xff]  ;;  %s4884_s21 = sshll.u32 %s7661_s10, 3 }
 0x227   : > { %v5280_v5 = vpack.c.bf16 %v1633_v2, %v1632_v1  ;;  %v1635_v6 = vld [vmem:[%s7660_s27 + $0x18] sm:$0xff]  ;;  %s7051_s1 = scalar_lea.vmem [#allocation2], %s4884_s21  ;;  %s7664_s12 = scalar_lea.vmem %s7662_s26, %s6994_s30 }
 0x228   : > { %v5283_v8 = vpack.c.bf16 %v1635_v6, %v1634_v3  ;;  %v7054_v9 = vld [vmem:[%s7051_s1] sm:$0xff]  ;;  %v1718_v19 = vld [vmem:[%s7665_s2 + $0x8] sm:$0xff]  ;;  %v1719_v20 = vld [vmem:[%s7665_s2 + $0x10] sm:$0xff]  ;;  %s6224_s27 = smov 104   ;;  %s6225_s26 = smov 72  }
 0x229   : > { %5281 = vmatpush3.bf16.msra.mxu0 %v5280_v5  ;;  %v1631_v11 = vadd.f32 %v7058_v10, %v7054_v9  ;;  %v4885_v12 = vld [vmem:[%s7664_s12] ss:$0 sm:$0xff]  ;;  %v1720_v22 = vld [vmem:[%s7665_s2 + $0x18] sm:$0xff]  ;;  %s7667_s0 = scalar_lea.vmem %s7666_s5, %s6994_s30  ;;  %s7671_s12 = sld [smem:[#allocation86_spill]] }
 0x22a   : > { %5282 = vmatprep.subr.bf16.mxu0 %v6216_v4  ;;  %v1717_v18 = vld [vmem:[%s7665_s2] sm:$0xff]  ;;  %v5289_v23 = vpack.c.bf16 %v1720_v22, %v1719_v20  ;;  %s7691_s30 = sld [smem:[#allocation63_spill]]  ;;  %s4947_s21 = sshll.u32 %s7661_s10, 7 }
 0x22b   : > { %v5286_v21 = vpack.c.bf16 %v1718_v19, %v1717_v18  ;;  %v4887_v32 = vld [vmem:[%s7667_s0] ss:$0 sm:$0xff] }
 0x22d   : > { %5284 = vmatpush3.bf16.msra.mxu0 %v5283_v8  ;;  %5287 = vmatpush3.bf16.msra.mxu1 %v5286_v21 }
 0x22e   : > { %5080 = vmatprep.subr.mxu0 %v6218_v7  ;;  %5288 = vmatprep.subr.bf16.mxu1 %v6216_v4 }
 0x230   : > { %5067 = vmatmul.mubr.msk.f32.vlgmr.msra.gmra.mrb[0].mxu0 %vm1643_vm2, %v1631_v11 }
 0x231   : > { %5082 = vmatprep.mubr.msk.f32.mxu0 %vm6217_vm1, %v6218_v7  ;;  %5290 = vmatpush3.bf16.msra.mxu1 %v5289_v23 }
 0x232   : > { %5095 = vmatprep.subr.mxu1 %v6218_v7 }
 0x234   : > { %5078 = vmatmul.mubr.msk.f32.vlgmr.msra.gmra.mrb[0].mxu1 %vm1643_vm2, %v7054_v9 }
 0x235   : > { %5097 = vmatprep.mubr.msk.f32.mxu1 %vm6217_vm1, %v6218_v7 }
 0x303   : > { %v1713_v13 = vpop.f32.mrb[0].mxu0 }
 0x304   : > { %v7070_v14 = vadd.f32 %v4885_v12, %v1713_v13  ;;  %v5068_v15 = vpop.f32.mrb[1].mxu0 }
 0x306   : > { %1972 = vrot.lane.b32.xlu1 %v7070_v14, %s6219_s19  ;;  %1808 = vrot.lane.b32.xlu0 %v7070_v14, %s6220_s29  ;;  %v7076_v17 = vmul.f32 0.35355338, %v7070_v14 }
 0x307   : > { %v1797_v33 = vpop.f32.mrb[0].mxu1 }
 0x308   : > { %v7100_v34 = vadd.f32 %v4887_v32, %v1797_v33  ;;  %v5079_v35 = vpop.f32.mrb[1].mxu1  ;;  %v1804_v32 = vld [vmem:[%s7010_s17 + $0x18] sm:$0xff] }
 0x378   : > { %v1809_v16 = vpop.permute.xlu0 %1808  ;;  %v1973_v36 = vpop.permute.xlu1 %1972 }
 0x379   : > { %5081 = vmatpush3.xpose.msk.msra.mxu0 %vm1810_vm3, %v1809_v16 }
 0x37a   : > { %5085 = vmatprep.subr.mxu0 %v6218_v7 }
 0x37c   : > { %5083 = vmatmul.mubr.msk.f32.vlgmr.msra.gmra.mrb[2].mxu0 %vm1810_vm3, %v7076_v17 }
 0x37d   : > { %5087 = vmatprep.mubr.msk.f32.mxu0 %vm6217_vm1, %v6218_v7  ;;  %5086 = vmatpush3.msra.mxu0 %v7100_v34 }
 0x37e   : > { %5090 = vmatprep.subr.mxu0 %v6218_v7 }
 0x44f   : > { %v1882_v24 = vpop.f32.mrb[2].mxu0 }
 0x450   : > { %v5084_v25 = vpop.f32.mrb[3].mxu0  ;;  %v1886_v26 = vsel %vm1810_vm3, %v1882_v24, -inf }
 0x451   : > { %1887 = vmax.xlane.f32.xlu0 %v1886_v26 }
 0x4de   : > { %v1888_v27 = vpop.xlane.xlu0 %1887 }
 0x4df   : > { %v1889_v28 = vsub.f32 %v1882_v24, %v1888_v27 }
 0x4e1   : > { %v1890_v29 = vmul.f32 1.442695, %v1889_v28 }
 0x4e3   : > { %5592 = vpow2.f32 %v1890_v29 }
 0x4ed   : > { %v5593_v30 = vpop.eup %5592 }
 0x4ee   : > { %v1892_v31 = vsel %vm1810_vm3, %v5593_v30, 0.0 }
 0x4ef   : > { %1893 = vadd.xlane.f32.xlu1 %v1892_v31 }
 0x500   : > { %1970 = vrot.lane.b32.xlu1 %v7076_v17, %s6221_s13 }
 0x57c   : > { %v1894_v37 = vpop.xlane.xlu1 %1893 }
 0x57d   : > { %5594 = vrcp.f32 %v1894_v37 }
 0x580   : > { %v1971_v40 = vpop.permute.xlu1 %1970 }
 0x587   : > { %v5595_v38 = vpop.eup %5594 }
 0x588   : > { %v1896_v39 = vmul.f32 %v5595_v38, %v5593_v30 }
 0x58a   : > { %5088 = vmatmul.mubr.msk.f32.vlgmr.msra.gmra.mrb[4].mxu0 %vm1810_vm3, %v1896_v39 }
 0x58b   : > { %5091 = vmatpush3.xpose.msk.msra.mxu0 %vm1810_vm3, %v1973_v36  ;;  %5092 = vmatprep.mubr.msk.f32.mxu0 %vm6217_vm1, %v6218_v7 }
 0x58c   : > { %5100 = vmatprep.subr.mxu0 %v6218_v7 }
 0x58e   : > { %5093 = vmatmul.mubr.msk.f32.vlgmr.msra.gmra.mrb[6].mxu0 %vm1810_vm3, %v1971_v40 }
 0x58f   : > { %5102 = vmatprep.mubr.msk.f32.mxu0 %vm6217_vm1, %v6218_v7  ;;  %5101 = vmatpush3.msra.mxu0 %v1802_v51 }
 0x590   : > { %5110 = vmatprep.subr.mxu0 %v6218_v7 }
 0x65d   : > { %v1966_v41 = vpop.f32.mrb[4].mxu0 }
 0x65e   : > { %v5089_v42 = vpop.f32.mrb[5].mxu0 }
 0x661   : > { %v2044_v43 = vpop.f32.mrb[6].mxu0 }
 0x662   : > { %v5094_v44 = vpop.f32.mrb[7].mxu0  ;;  %v2048_v45 = vsel %vm1810_vm3, %v2044_v43, -inf }
 0x663   : > { %2049 = vmax.xlane.f32.xlu1 %v2048_v45 }
 0x674   : > { %2282 = vrot.lane.b32.xlu1 %v7076_v17, %s6222_s14 }
 0x6f0   : > { %v2050_v46 = vpop.xlane.xlu1 %2049 }
 0x6f1   : > { %v2051_v47 = vsub.f32 %v2044_v43, %v2050_v46 }
 0x6f3   : > { %v2052_v48 = vmul.f32 1.442695, %v2051_v47 }
 0x6f4   : > { %v2283_v60 = vpop.permute.xlu1 %2282 }
 0x6f5   : > { %5596 = vpow2.f32 %v2052_v48 }
 0x6ff   : > { %v5597_v49 = vpop.eup %5596 }
 0x700   : > { %v2054_v50 = vsel %vm1810_vm3, %v5597_v49, 0.0 }
 0x701   : > { %2055 = vadd.xlane.f32.xlu0 %v2054_v50 }
 0x717   : > { %2060 = vrot.lane.b32.xlu0 %v7100_v34, %s6221_s13 }
 0x71b   : > { %2284 = vrot.lane.b32.xlu0 %v7070_v14, %s6223_s25  ;;  %s7684_s25 = sld [smem:[#allocation90_spill]] }
 0x78e   : > { %v2056_v52 = vpop.xlane.xlu0 %2055 }
 0x78f   : > { %5598 = vrcp.f32 %v2056_v52 }
 0x792   : > { %v2061_v53 = vpop.permute.xlu0 %2060 }
 0x793   : > { %5096 = vmatpush3.msra.mxu1 %v2061_v53  ;;  %v2885_v53 = vld [vmem:[%s7669_s8] sm:$0xff] }
 0x794   : > { %5105 = vmatprep.subr.mxu1 %v6218_v7 }
 0x796   : > { %v2285_v58 = vpop.permute.xlu0 %2284 }
 0x799   : > { %v5599_v54 = vpop.eup %5598 }
 0x79a   : > { %v2058_v55 = vmul.f32 %v5599_v54, %v5597_v49  ;;  %v2886_v54 = vld [vmem:[%s7669_s8 + $0x8] sm:$0xff] }
 0x79c   : > { %5098 = vmatmul.mubr.msk.f32.vlgmr.msra.gmra.mrb[2].mxu1 %vm1810_vm3, %v2058_v55  ;;  %v5297_v55 = vpack.c.bf16 %v2886_v54, %v2885_v53 }
 0x79d   : > { %5106 = vmatpush3.msra.mxu1 %v1801_v56  ;;  %5107 = vmatprep.mubr.msk.f32.mxu1 %vm6217_vm1, %v6218_v7  ;;  %v2888_v56 = vld [vmem:[%s7669_s8 + $0x18] sm:$0xff] }
 0x79e   : > { %5115 = vmatprep.subr.mxu1 %v6218_v7 }
 0x7a0   : > { %5108 = vmatmul.mubr.msk.f32.vlgmr.msra.gmra.mrb[4].mxu1 %vm1810_vm3, %v1966_v41  ;;  %v4905_v41 = vld [vmem:[%s1583_s16] ss:$0 sm:$0xff]  ;;  %s7672_s16 = sld [smem:[#allocation87_spill]] }
 0x7a1   : > { %5117 = vmatprep.mubr.msk.f32.mxu1 %vm6217_vm1, %v6218_v7 }
 0x86f   : > { %v2132_v57 = vpop.f32.mrb[2].mxu1 }
 0x870   : > { %v5099_v59 = vpop.f32.mrb[3].mxu1  ;;  %5103 = vmatmul.mubr.msk.f32.vlgmr.msra.gmra.mrb[8].mxu0 %vm1810_vm3, %v2132_v57 }
 0x871   : > { %5111 = vmatpush3.xpose.msk.msra.mxu0 %vm1810_vm3, %v2285_v58  ;;  %5112 = vmatprep.mubr.msk.f32.mxu0 %vm6217_vm1, %v6218_v7  ;;  %v1628_v59 = vld [vmem:[%s7671_s12] sm:$0xff] }
 0x872   : > { %5120 = vmatprep.subr.mxu0 %v6218_v7 }
 0x873   : > { %v2278_v61 = vpop.f32.mrb[4].mxu1 }
 0x874   : > { %v5109_v62 = vpop.f32.mrb[5].mxu1  ;;  %5113 = vmatmul.mubr.msk.f32.vlgmr.msra.gmra.mrb[10].mxu0 %vm1810_vm3, %v2283_v60 }
 0x875   : > { %5122 = vmatprep.mubr.msk.f32.mxu0 %vm6217_vm1, %v6218_v7  ;;  %v1629_v62 = vld [vmem:[%s7671_s12 + $0x8] sm:$0xff] }
 0x943   : > { %v2205_v63 = vpop.f32.mrb[8].mxu0 }
 0x944   : > { %v2279_v0 = vadd.f32 %v2278_v61, %v2205_v63  ;;  %v5104_v1 = vpop.f32.mrb[9].mxu0 }
 0x945   : > { %v2800_v1 = vld [vmem:[%s7672_s16 + $0x8] sm:$0xff] }
 0x947   : > { %v2356_v2 = vpop.f32.mrb[10].mxu0 }
 0x948   : > { %v5114_v3 = vpop.f32.mrb[11].mxu0  ;;  %v2360_v5 = vsel %vm1810_vm3, %v2356_v2, -inf }
 0x949   : > { %2361 = vmax.xlane.f32.xlu0 %v2360_v5  ;;  %v2801_v3 = vld [vmem:[%s7672_s16 + $0x10] sm:$0xff]  ;;  %v2802_v5 = vld [vmem:[%s7672_s16 + $0x18] sm:$0xff] }
 0x95f   : > { %2371 = vrot.lane.b32.xlu0 %v7100_v34, %s6222_s14 }
 0x963   : > { %2521 = vrot.lane.b32.xlu0 %v7076_v17, %s6224_s27 }
 0x9d6   : > { %v2362_v6 = vpop.xlane.xlu0 %2361 }
 0x9d7   : > { %v2363_v8 = vsub.f32 %v2356_v2, %v2362_v6  ;;  %v5295_v6 = vpack.c.bf16 %v2802_v5, %v2801_v3 }
 0x9d9   : > { %v2364_v11 = vmul.f32 1.442695, %v2363_v8 }
 0x9da   : > { %v2372_v12 = vpop.permute.xlu0 %2371 }
 0x9db   : > { %5600 = vpow2.f32 %v2364_v11  ;;  %5116 = vmatpush3.msra.mxu1 %v2372_v12 }
 0x9dc   : > { %5125 = vmatprep.subr.mxu1 %v6218_v7 }
 0x9de   : > { %v2522_v20 = vpop.permute.xlu0 %2521 }
 0x9e5   : > { %v5601_v13 = vpop.eup %5600 }
 0x9e6   : > { %v2366_v15 = vsel %vm1810_vm3, %v5601_v13, 0.0 }
 0x9e7   : > { %2367 = vadd.xlane.f32.xlu1 %v2366_v15  ;;  %v4906_v15 = vld [vmem:[%s1586_s7] ss:$0 sm:$0xff]  ;;  %s7679_s7 = sld [smem:[#allocation89_spill]] }
 0x9f8   : > { %2523 = vrot.lane.b32.xlu1 %v7070_v14, %s6225_s26  ;;  %v1803_v14 = vld [vmem:[%s7010_s17 + $0x10] sm:$0xff]  ;;  %s7670_s17 = sld [smem:[#allocation85_spill]]  ;;  %s7694_s26 = scalar_lea.vmem [#allocation21], %s6948_s28 }
 0x9f9   : > { %5121 = vmatpush3.msra.mxu0 %v1803_v14  ;;  %v4910_v14 = vld [vmem:[%s1595_s11] ss:$0 sm:$0xff] }
 0x9fa   : > { %5130 = vmatprep.subr.mxu0 %v6218_v7 }
 0x9fe   : > { %v1626_v58 = vld [vmem:[%s7670_s17] sm:$0xff]  ;;  %v7182_v61 = vld [vmem:[%s7670_s17 + $0x8] sm:$0xff]  ;;  %s7374_s17 = scalar_lea.hbm %s7691_s30, %s4947_s21 }
 0x9ff   : > { %v2883_v60 = vadd.f32 %v1628_v59, %v1626_v58  ;;  %v2884_v63 = vadd.f32 %v1629_v62, %v7182_v61 }
 0xa74   : > { %v2368_v16 = vpop.xlane.xlu1 %2367 }
 0xa75   : > { %5602 = vrcp.f32 %v2368_v16 }
 0xa78   : > { %v2524_v19 = vpop.permute.xlu1 %2523 }
 0xa7f   : > { %v5603_v18 = vpop.eup %5602 }
 0xa80   : > { %v2370_v17 = vmul.f32 %v5603_v18, %v5601_v13  ;;  %v4907_v18 = vld [vmem:[%s1589_s3] ss:$0 sm:$0xff]  ;;  %s7680_s3 = sld [smem:[#allocation38_spill]] }
 0xa82   : > { %5118 = vmatmul.mubr.msk.f32.vlgmr.msra.gmra.mrb[6].mxu1 %vm1810_vm3, %v2370_v17 }
 0xa83   : > { %5126 = vmatpush3.xpose.msk.msra.mxu1 %vm1810_vm3, %v2524_v19  ;;  %5127 = vmatprep.mubr.msk.f32.mxu1 %vm6217_vm1, %v6218_v7 }
 0xa84   : > { %5135 = vmatprep.subr.mxu1 %v6218_v7 }
 0xa86   : > { %5128 = vmatmul.mubr.msk.f32.vlgmr.msra.gmra.mrb[8].mxu1 %vm1810_vm3, %v2522_v20 }
 0xa87   : > { %5137 = vmatprep.mubr.msk.f32.mxu1 %vm6217_vm1, %v6218_v7  ;;  %5136 = vmatpush3.msra.mxu1 %v1804_v32 }
 0xa88   : > { %5298 = vmatprep.subr.bf16.mxu1 %v5297_v55 }
 0xb55   : > { %v2443_v21 = vpop.f32.mrb[6].mxu1 }
 0xb56   : > { %v5119_v22 = vpop.f32.mrb[7].mxu1  ;;  %5123 = vmatmul.mubr.msk.f32.vlgmr.msra.gmra.mrb[12].mxu0 %vm1810_vm3, %v2443_v21 }
 0xb57   : > { %5132 = vmatprep.mubr.msk.f32.mxu0 %vm6217_vm1, %v6218_v7 }
 0xb59   : > { %v2595_v23 = vpop.f32.mrb[8].mxu1 }
 0xb5a   : > { %v5129_v24 = vpop.f32.mrb[9].mxu1  ;;  %v2599_v25 = vsel %vm1810_vm3, %v2595_v23, -inf }
 0xb5b   : > { %2600 = vmax.xlane.f32.xlu0 %v2599_v25 }
 0xb71   : > { %2610 = vrot.lane.b32.xlu0 %v7100_v34, %s6224_s27 }
 0xbe8   : > { %v2601_v26 = vpop.xlane.xlu0 %2600 }
 0xbe9   : > { %v2602_v27 = vsub.f32 %v2595_v23, %v2601_v26 }
 0xbeb   : > { %v2603_v28 = vmul.f32 1.442695, %v2602_v27 }
 0xbec   : > { %v2611_v29 = vpop.permute.xlu0 %2610 }
 0xbed   : > { %5604 = vpow2.f32 %v2603_v28  ;;  %5131 = vmatpush3.msra.mxu0 %v2611_v29  ;;  %v4908_v28 = vld [vmem:[%s1592_s18] ss:$0 sm:$0xff]  ;;  %s7681_s18 = sld [smem:[#allocation92_spill]] }
 0xbee   : > { %5291 = vmatprep.subr.bf16.mxu0 %v6216_v4 }
 0xbf3   : > { %s7682_s11 = scalar_lea.vmem %s7680_s3, %s7681_s18 }
 0xbf7   : > { %v5605_v30 = vpop.eup %5604 }
 0xbf8   : > { %v2605_v31 = vsel %vm1810_vm3, %v5605_v30, 0.0 }
 0xbf9   : > { %2606 = vadd.xlane.f32.xlu1 %v2605_v31 }
 0xc29   : > { %v2516_v33 = vpop.f32.mrb[12].mxu0 }
 0xc2a   : > { %v2520_v35 = vadd.f32 %v2516_v33, %v2279_v0  ;;  %v5124_v36 = vpop.f32.mrb[13].mxu0  ;;  %v2799_v0 = vld [vmem:[%s7672_s16] sm:$0xff] }
 0xc2b   : > { %v5292_v2 = vpack.c.bf16 %v2800_v1, %v2799_v0 }
 0xc86   : > { %v2607_v34 = vpop.xlane.xlu1 %2606 }
 0xc87   : > { %5606 = vrcp.f32 %v2607_v34  ;;  %v2977_v34 = vld [vmem:[%s7679_s7] sm:$0xff] }
 0xc91   : > { %v5607_v37 = vpop.eup %5606 }
 0xc92   : > { %v2609_v38 = vmul.f32 %v5607_v37, %v5605_v30  ;;  %v2978_v37 = vld [vmem:[%s7679_s7 + $0x8] sm:$0xff] }
 0xc94   : > { %5133 = vmatmul.mubr.msk.f32.vlgmr.msra.gmra.mrb[14].mxu0 %vm1810_vm3, %v2609_v38  ;;  %v2979_v38 = vld [vmem:[%s7679_s7 + $0x10] sm:$0xff] }
 0xc95   : > { %5148 = vmatprep.mubr.msk.f32.mxu0 %vm6217_vm1, %v6218_v7  ;;  %5293 = vmatpush3.bf16.msra.mxu0 %v5292_v2 }
 0xc96   : > { %5294 = vmatprep.subr.bf16.mxu0 %v6216_v4 }
 0xc99   : > { %5296 = vmatpush3.bf16.msra.mxu0 %v5295_v6 }
 0xd67   : > { %v2682_v39 = vpop.f32.mrb[14].mxu0 }
 0xd68   : > { %v5134_v40 = vpop.f32.mrb[15].mxu0  ;;  %5138 = vmatmul.mubr.msk.f32.vlgmr.msra.gmra.mrb[10].mxu1 %vm1810_vm3, %v2682_v39  ;;  %v5305_v39 = vpack.c.bf16 %v2978_v37, %v2977_v34 }
 0xd69   : > { %5300 = vmatpush3.bf16.msra.mxu1 %v5297_v55  ;;  %5159 = vmatprep.mubr.msk.f32.mxu1 %vm1643_vm2, %v2883_v60  ;;  %v2980_v40 = vld [vmem:[%s7679_s7 + $0x18] sm:$0xff] }
 0xd6a   : > { %5306 = vmatprep.subr.bf16.mxu0 %v5305_v39 }
 0xe3b   : > { %v2755_v42 = vpop.f32.mrb[10].mxu1 }
 0xe3c   : > { %v2759_v43 = vadd.f32 %v2755_v42, %v2520_v35  ;;  %v5139_v44 = vpop.f32.mrb[11].mxu1 }
 0xe3e   : > { %v2766_v45 = vadd.f32 %v4905_v41, %v2759_v43  ;;  %v5309_v41 = vpack.c.bf16 %v2980_v40, %v2979_v38  ;;  %v7249_v43 = vld [vmem:[%s7682_s11] ss:$0 sm:$0xff] }
 0xe40   : > { %v2767_v46 = vadd.f32 %v2766_v45, %v7054_v9  ;;  %v2887_v9 = vld [vmem:[%s7669_s8 + $0x10] sm:$0xff]  ;;  %s4314_s8 = sshll.u32 %s1556_s20, 4  ;;  %s7376_s8 = int_to_ptr.vmem [resolvable:$true] %s4314_s8 }
 0xe41   : > { %v5301_v57 = vpack.c.bf16 %v2888_v56, %v2887_v9  ;;  %v4913_v9 = vld [vmem:[%s1598_s23] ss:$0 sm:$0xff] }
 0xe42   : > { %v2770_v47 = vsel %vm1643_vm2, %v2767_v46, 0.0 }
 0xe43   : > { %2771 = vadd.xlane.f32.xlu1 %v2770_v47  ;;  %5302 = vmatprep.subr.bf16.mxu1 %v5301_v57 }
 0xe44   : > { %5304 = vmatpush3.bf16.msra.mxu1 %v5301_v57 }
 0xe45   : > { %5313 = vmatprep.subr.bf16.mxu1 %v6216_v4 }
 0xe47   : > { %5160 = vmatmul.mubr.msk.f32.vlgmr.msra.gmra.mrb[12].mxu1 %vm1643_vm2, %v2884_v63 }
 0xe48   : > { %5177 = vmatprep.mubr.msk.f32.mxu1 %vm6217_vm1, %v6218_v7 }
 0xed0   : > { %v2772_v48 = vpop.xlane.xlu1 %2771 }
 0xed1   : > { %v2774_v49 = vmul.f32 0.03125, %v2772_v48 }
 0xed3   : > { %v2775_v50 = vsub.f32 %v2767_v46, %v2774_v49 }
 0xed5   : > { %v2776_v51 = vmul.f32 %v2775_v50, %v2775_v50 }
 0xed7   : > { %v2777_v52 = vsel %vm1643_vm2, %v2776_v51, 0.0 }
 0xed8   : > { %2778 = vadd.xlane.f32.xlu1 %v2777_v52 }
 0xf1a   : > { %v5161_v21 = vpop.f32.mrb[12].mxu1 }
 0xf1b   : > { %v2974_v22 = vadd.f32 %v5161_v21, %v4910_v14  ;;  %v2968_v23 = vpop.f32.mrb[13].mxu1 }
 0xf1c   : > { %v2969_v24 = vadd.f32 %v4910_v14, %v2968_v23  ;;  %v3070_v14 = vld [vmem:[%s7684_s25 + $0x8] sm:$0xff] }
 0xf1e   : > { %v5314_v26 = vpack.c.bf16 %v2974_v22, %v2969_v24  ;;  %v7217_v27 = vpack.i.bf16 %v2974_v22, %v2969_v24 }
 0xf20   : > { %5563 = vrot.lane.b32.xlu0 %v7217_v27, %s6221_s13  ;;  %5316 = vmatpush3.bf16.xpose.msk.msra.mxu1 %vm7213_vm4, %v5314_v26 }
 0xf21   : > { %5320 = vmatprep.subr.bf16.mxu1 %v6216_v4 }
 0xf65   : > { %v2779_v8 = vpop.xlane.xlu1 %2778 }
 0xf66   : > { %v2780_v11 = vmul.f32 0.03125, %v2779_v8 }
 0xf68   : > { %v2781_v12 = vadd.f32 1e-05, %v2780_v11  ;;  %v3069_v11 = vld [vmem:[%s7684_s25] sm:$0xff] }
 0xf6a   : > { %5608 = vrsqrt.f32 %v2781_v12 }
 0xf74   : > { %v5609_v13 = vpop.eup %5608 }
 0xf75   : > { %v2783_v16 = vmul.f32 %v5609_v13, %v2775_v50 }
 0xf77   : > { %v2790_v17 = vmul.f32 %v4906_v15, %v2783_v16 }
 0xf79   : > { %v7202_v19 = vadd.f32 %v4907_v18, %v2790_v17 }
 0xf7b   : > { %v2798_v20 = vadd.f32 %v7202_v19, %v7058_v10 }
 0xf7d   : > { %5149 = vmatmul.mubr.msk.f32.vlgmr.msra.gmra.mrb[16].mxu0 %vm1643_vm2, %v2798_v20 }
 0xf7e   : > { %5170 = vmatprep.mubr.msk.f32.mxu0 %vm1643_vm2, %v1626_v58  ;;  %5308 = vmatpush3.bf16.msra.mxu0 %v5305_v39 }
 0xf7f   : > { %5310 = vmatprep.subr.bf16.mxu0 %v5309_v41 }
 0xf82   : > { %5312 = vmatpush3.bf16.msra.mxu0 %v5309_v41 }
 0xf83   : > { %5317 = vmatprep.subr.bf16.mxu0 %v6216_v4 }
 0xf85   : > { %5171 = vmatmul.mubr.msk.f32.vlgmr.msra.gmra.mrb[18].mxu0 %vm1643_vm2, %v7182_v61 }
 0xf86   : > { %5184 = vmatprep.mubr.msk.f32.mxu0 %vm6217_vm1, %v6218_v7 }
 0xf92   : > { %v5564_v10 = vpop.permute.xlu0 %5563 }
 0xf93   : > { %v5566_v29 = vunpack.i.h.bf16 %v5564_v10  ;;  %v5565_v30 = vunpack.i.l.bf16 %v5564_v10 }
 0xf95   : > { %v5321_v35 = vpack.c.bf16 %v5566_v29, %v5565_v30 }
0x1050   : > { %v2879_v31 = vpop.f32.mrb[16].mxu0 }
0x1051   : > { %v2880_v32 = vadd.f32 %v4908_v28, %v2879_v31  ;;  %v5150_v33 = vpop.f32.mrb[17].mxu0 }
0x1053   : > { %v3074_v36 = vmul.f32 0.35355338, %v2880_v32 }
0x1055   : > { %3245 = vrot.lane.b32.xlu1 %v3074_v36, %s6221_s13  ;;  %5178 = vmatmul.mubr.msk.f32.vlgmr.msra.gmra.mrb[14].mxu1 %vm1810_vm3, %v3074_v36 }
0x1056   : > { %5323 = vmatpush3.bf16.xpose.msk.msra.mxu1 %vm7213_vm4, %v5321_v35  ;;  %5191 = vmatprep.mubr.msk.f32.mxu1 %vm6217_vm1, %v6218_v7 }
0x1057   : > { %5206 = vmatprep.subr.mxu1 %v6218_v7 }
0x1058   : > { %v5172_v55 = vpop.f32.mrb[18].mxu0 }
0x1059   : > { %v3066_v56 = vadd.f32 %v5172_v55, %v4913_v9  ;;  %v3060_v57 = vpop.f32.mrb[19].mxu0 }
0x105a   : > { %v3061_v58 = vadd.f32 %v4913_v9, %v3060_v57 }
0x105c   : > { %v7261_v59 = vpack.i.bf16 %v3066_v56, %v3061_v58  ;;  %v5318_v62 = vpack.c.bf16 %v3066_v56, %v3061_v58 }
0x105e   : > { %5319 = vmatpush3.bf16.msra.mxu0 %v5318_v62 }
0x105f   : > { %5324 = vmatprep.subr.bf16.mxu0 %v6216_v4 }
0x10c7   : > { %v3246_v42 = vpop.permute.xlu1 %3245 }
0x10c8   : > { %5192 = vmatmul.mubr.msk.f32.vlgmr.msra.gmra.mrb[16].mxu1 %vm1810_vm3, %v3246_v42 }
0x10c9   : > { %5208 = vmatprep.mubr.msk.f32.mxu1 %vm6217_vm1, %v6218_v7  ;;  %5207 = vmatpush3.msra.mxu1 %v3069_v11 }
0x10ca   : > { %5331 = vmatprep.subr.bf16.mxu1 %v6216_v4 }
0x1128   : > { %v3156_v44 = vpop.f32.mrb[14].mxu1 }
0x1129   : > { %v3157_v45 = vadd.f32 %v7249_v43, %v3156_v44  ;;  %v5179_v46 = vpop.f32.mrb[15].mxu1 }
0x112b   : > { %v3161_v47 = vsel %vm3160_vm5, %v3157_v45, -inf }
0x112c   : > { %3162 = vmax.xlane.f32.xlu0 %v3161_v47 }
0x119b   : > { %v3323_v48 = vpop.f32.mrb[16].mxu1 }
0x119c   : > { %v3324_v49 = vadd.f32 %v7249_v43, %v3323_v48  ;;  %v5193_v50 = vpop.f32.mrb[17].mxu1 }
0x119e   : > { %v3327_v51 = vsel %vm3160_vm5, %v3324_v49, -inf }
0x119f   : > { %3328 = vmax.xlane.f32.xlu1 %v3327_v51 }
0x11b0   : > { %5573 = vrot.lane.b32.xlu1 %v7217_v27, %s6222_s14 }
0x11b4   : > { %3811 = vrot.lane.b32.xlu1 %v3074_v36, %s6224_s27 }
0x11b9   : > { %v3163_v52 = vpop.xlane.xlu0 %3162 }
0x11ba   : > { %v3164_v53 = vsub.f32 %v3157_v45, %v3163_v52 }
0x11bc   : > { %v3165_v54 = vmul.f32 1.442695, %v3164_v53 }
0x11be   : > { %5610 = vpow2.f32 %v3165_v54 }
0x11c8   : > { %v5611_v60 = vpop.eup %5610 }
0x11c9   : > { %v3167_v61 = vsel %vm3160_vm5, %v5611_v60, 0.0 }
0x11ca   : > { %3168 = vadd.xlane.f32.xlu0 %v3167_v61 }
0x122c   : > { %v3329_v63 = vpop.xlane.xlu1 %3328 }
0x122d   : > { %v3330_v0 = vsub.f32 %v3324_v49, %v3329_v63 }
0x122f   : > { %v3331_v1 = vmul.f32 1.442695, %v3330_v0  ;;  %v3071_v0 = vld [vmem:[%s7684_s25 + $0x10] sm:$0xff] }
0x1230   : > { %v5574_v23 = vpop.permute.xlu1 %5573 }
0x1231   : > { %5612 = vpow2.f32 %v3331_v1  ;;  %v5576_v26 = vunpack.i.h.bf16 %v5574_v23 }
0x1234   : > { %v3812_v35 = vpop.permute.xlu1 %3811 }
0x123b   : > { %v5613_v2 = vpop.eup %5612 }
0x123c   : > { %v3333_v3 = vsel %vm3160_vm5, %v5613_v2, 0.0 }
0x123d   : > { %3334 = vadd.xlane.f32.xlu0 %v3333_v3 }
0x1253   : > { %5568 = vrot.lane.b32.xlu0 %v7261_v59, %s6221_s13  ;;  %s7686_s13 = sld [smem:[#allocation91_spill]] }
0x1257   : > { %v3169_v5 = vpop.xlane.xlu0 %3168  ;;  %3565 = vrot.lane.b32.xlu0 %v3074_v36, %s6222_s14 }
0x1258   : > { %5614 = vrcp.f32 %v3169_v5 }
0x125b   : > { %5578 = vrot.lane.b32.xlu0 %v7217_v27, %s6224_s27  ;;  %v5575_v27 = vunpack.i.l.bf16 %v5574_v23 }
0x125d   : > { %v5328_v10 = vpack.c.bf16 %v5576_v26, %v5575_v27 }
0x1262   : > { %v5615_v6 = vpop.eup %5614 }
0x1263   : > { %v3171_v8 = vmul.f32 %v5615_v6, %v5611_v60 }
0x1265   : > { %5185 = vmatmul.mubr.msk.f32.vlgmr.msra.gmra.mrb[20].mxu0 %vm3160_vm5, %v3171_v8 }
0x1266   : > { %5198 = vmatprep.mubr.msk.f32.mxu0 %vm6217_vm1, %v6218_v7 }
0x12ca   : > { %v3335_v12 = vpop.xlane.xlu0 %3334 }
0x12cb   : > { %5616 = vrcp.f32 %v3335_v12 }
0x12ce   : > { %v5569_v13 = vpop.permute.xlu0 %5568 }
0x12cf   : > { %v5571_v15 = vunpack.i.h.bf16 %v5569_v13  ;;  %v5570_v16 = vunpack.i.l.bf16 %v5569_v13  ;;  %v3072_v13 = vld [vmem:[%s7684_s25 + $0x18] sm:$0xff] }
0x12d1   : > { %v5325_v18 = vpack.c.bf16 %v5571_v15, %v5570_v16 }
0x12d2   : > { %v3566_v24 = vpop.permute.xlu0 %3565 }
0x12d3   : > { %5326 = vmatpush3.bf16.msra.mxu0 %v5325_v18 }
0x12d4   : > { %5201 = vmatprep.subr.mxu0 %v6218_v7 }
0x12d5   : > { %v5617_v17 = vpop.eup %5616 }
0x12d6   : > { %v3337_v20 = vmul.f32 %v5617_v17, %v5613_v2  ;;  %v5579_v29 = vpop.permute.xlu0 %5578 }
0x12d7   : > { %v5581_v31 = vunpack.i.h.bf16 %v5579_v29  ;;  %v5580_v32 = vunpack.i.l.bf16 %v5579_v29 }
0x12d8   : > { %5199 = vmatmul.mubr.msk.f32.vlgmr.msra.gmra.mrb[22].mxu0 %vm3160_vm5, %v3337_v20 }
0x12d9   : > { %5202 = vmatpush3.msra.mxu0 %v3070_v14  ;;  %5203 = vmatprep.mubr.msk.f32.mxu0 %vm6217_vm1, %v6218_v7  ;;  %v5335_v33 = vpack.c.bf16 %v5581_v31, %v5580_v32  ;;  %v4937_v14 = vld [vmem:[%s1601_s24] ss:$0 sm:$0xff]  ;;  %v4095_v32 = vld [vmem:[%s7686_s13 + $0x8] sm:$0xff] }
0x12da   : > { %5327 = vmatprep.subr.bf16.mxu0 %v6216_v4  ;;  %v4094_v31 = vld [vmem:[%s7686_s13] sm:$0xff] }
0x1338   : > { %v3241_v21 = vpop.f32.mrb[20].mxu0 }
0x1339   : > { %v5186_v22 = vpop.f32.mrb[21].mxu0  ;;  %5209 = vmatmul.mubr.msk.f32.vlgmr.msra.gmra.mrb[18].mxu1 %vm1810_vm3, %v3241_v21 }
0x133a   : > { %5222 = vmatprep.mubr.msk.f32.mxu1 %vm6217_vm1, %v6218_v7 }
0x13ab   : > { %v3415_v28 = vpop.f32.mrb[22].mxu0 }
0x13ac   : > { %v5200_v30 = vpop.f32.mrb[23].mxu0  ;;  %5204 = vmatmul.mubr.msk.f32.vlgmr.msra.gmra.mrb[24].mxu0 %vm1810_vm3, %v3415_v28 }
0x13ad   : > { %5330 = vmatpush3.bf16.xpose.msk.msra.mxu0 %vm7213_vm4, %v5328_v10  ;;  %5215 = vmatprep.mubr.msk.f32.mxu0 %vm6217_vm1, %v6218_v7 }
0x13ae   : > { %5334 = vmatprep.subr.bf16.mxu0 %v6216_v4 }
0x13b4   : > { %5216 = vmatmul.mubr.msk.f32.vlgmr.msra.gmra.mrb[26].mxu0 %vm1810_vm3, %v3566_v24 }
0x13b5   : > { %5337 = vmatpush3.bf16.xpose.msk.msra.mxu0 %vm7213_vm4, %v5335_v33  ;;  %5234 = vmatprep.mubr.msk.f32.mxu0 %vm6217_vm1, %v6218_v7  ;;  %v5342_v33 = vpack.c.bf16 %v4095_v32, %v4094_v31 }
0x13b6   : > { %5341 = vmatprep.subr.bf16.mxu0 %v6216_v4 }
0x13bc   : > { %5235 = vmatmul.mubr.msk.f32.vlgmr.msra.gmra.mrb[28].mxu0 %vm1810_vm3, %v3812_v35  ;;  %v4097_v35 = vld [vmem:[%s7686_s13 + $0x18] sm:$0xff] }
0x13bd   : > { %5257 = vmatprep.mubr.msk.f32.mxu0 %vm6217_vm1, %v6218_v7  ;;  %5343 = vmatpush3.bf16.msra.mxu0 %v5342_v33 }
0x13be   : > { %5344 = vmatprep.subr.bf16.mxu0 %v6216_v4 }
0x140c   : > { %v3561_v36 = vpop.f32.mrb[18].mxu1 }
0x140d   : > { %v5210_v34 = vpop.f32.mrb[19].mxu1 }
0x140e   : > { %v4179_v34 = vld [vmem:[%s7032_s9] sm:$0xff] }
0x147f   : > { %v3488_v37 = vpop.f32.mrb[24].mxu0 }
0x1480   : > { %v7300_v38 = vadd.f32 %v3561_v36, %v3488_v37  ;;  %v5205_v39 = vpop.f32.mrb[25].mxu0  ;;  %v4180_v37 = vld [vmem:[%s7032_s9 + $0x8] sm:$0xff] }
0x1481   : > { %v5348_v39 = vpack.c.bf16 %v4180_v37, %v4179_v34 }
0x1487   : > { %v3643_v40 = vpop.f32.mrb[26].mxu0 }
0x1488   : > { %v3644_v25 = vadd.f32 %v7249_v43, %v3643_v40  ;;  %v5217_v41 = vpop.f32.mrb[27].mxu0  ;;  %v4182_v40 = vld [vmem:[%s7032_s9 + $0x18] sm:$0xff] }
0x1489   : > { %v4183_v41 = vld [vmem:[%s7032_s9 + $0x20] sm:$0xff] }
0x148a   : > { %v3647_v42 = vsel %vm3160_vm5, %v3644_v25, -inf }
0x148b   : > { %3648 = vmax.xlane.f32.xlu0 %v3647_v42  ;;  %v4184_v42 = vld [vmem:[%s7032_s9 + $0x28] sm:$0xff] }
0x148f   : > { %v3889_v44 = vpop.f32.mrb[28].mxu0 }
0x1490   : > { %v5236_v45 = vpop.f32.mrb[29].mxu0  ;;  %v3890_v54 = vadd.f32 %v7249_v43, %v3889_v44  ;;  %v5354_v44 = vpack.c.bf16 %v4184_v42, %v4183_v41 }
0x1492   : > { %v3893_v9 = vsel %vm3160_vm5, %v3890_v54, -inf }
0x14a1   : > { %5583 = vrot.lane.b32.xlu0 %v7261_v59, %s6222_s14 }
0x1518   : > { %v3649_v46 = vpop.xlane.xlu0 %3648 }
0x1519   : > { %v3650_v47 = vsub.f32 %v3644_v25, %v3649_v46 }
0x151b   : > { %v3651_v48 = vmul.f32 1.442695, %v3650_v47 }
0x151c   : > { %v5584_v49 = vpop.permute.xlu0 %5583 }
0x151d   : > { %5618 = vpow2.f32 %v3651_v48  ;;  %v5586_v50 = vunpack.i.h.bf16 %v5584_v49  ;;  %v5585_v51 = vunpack.i.l.bf16 %v5584_v49  ;;  %v4938_v49 = vld [vmem:[%s1604_s4] ss:$0 sm:$0xff]  ;;  %s7690_s4 = scalar_lea.vmem [#allocation20], %s6948_s28 }
0x151f   : > { %v5332_v52 = vpack.c.bf16 %v5586_v50, %v5585_v51  ;;  %v4939_v51 = vld [vmem:[%s1607_s15] ss:$0 sm:$0xff]  ;;  %s7692_s15 = sld [smem:[#allocation84_spill]] }
0x1521   : > { %5333 = vmatpush3.bf16.msra.mxu1 %v5332_v52 }
0x1522   : > { %5225 = vmatprep.subr.mxu1 %v6218_v7 }
0x1525   : > { %s4301_s12 = scalar_lea.sflag [#allocation5], %s7692_s15 }
0x1527   : > { %v5619_v53 = vpop.eup %5618 }
0x1528   : > { %v3653_v55 = vsel %vm3160_vm5, %v5619_v53, 0.0 }
0x1529   : > { %3654 = vadd.xlane.f32.xlu1 %v3653_v55  ;;  %v4186_v55 = vld [vmem:[%s7032_s9 + $0x38] sm:$0xff] }
0x152d   : > { %3894 = vmax.xlane.f32.xlu1 %v3893_v9 }
0x15b6   : > { %v3655_v56 = vpop.xlane.xlu1 %3654 }
0x15b7   : > { %5620 = vrcp.f32 %v3655_v56 }
0x15ba   : > { %v3895_v57 = vpop.xlane.xlu1 %3894 }
0x15bb   : > { %v3896_v58 = vsub.f32 %v3890_v54, %v3895_v57  ;;  %v4185_v54 = vld [vmem:[%s7032_s9 + $0x30] sm:$0xff] }
0x15bc   : > { %v5357_v9 = vpack.c.bf16 %v4186_v55, %v4185_v54 }
0x15bd   : > { %v3897_v60 = vmul.f32 1.442695, %v3896_v58 }
0x15bf   : > { %5622 = vpow2.f32 %v3897_v60 }
0x15c1   : > { %v5621_v61 = vpop.eup %5620 }
0x15c2   : > { %v3657_v62 = vmul.f32 %v5621_v61, %v5619_v53  ;;  %v4942_v61 = vld [vmem:[%s7690_s4] ss:$0 sm:$0xff] }
0x15c4   : > { %5223 = vmatmul.mubr.msk.f32.vlgmr.msra.gmra.mrb[20].mxu1 %vm3160_vm5, %v3657_v62 }
0x15c5   : > { %5227 = vmatprep.mubr.msk.f32.mxu1 %vm6217_vm1, %v6218_v7  ;;  %5226 = vmatpush3.msra.mxu1 %v3071_v0 }
0x15c6   : > { %5338 = vmatprep.subr.bf16.mxu1 %v6216_v4 }
0x15c9   : > { %v5623_v43 = vpop.eup %5622 }
0x15ca   : > { %v3899_v63 = vsel %vm3160_vm5, %v5623_v43, 0.0 }
0x15cb   : > { %3900 = vadd.xlane.f32.xlu1 %v3899_v63 }
0x15dc   : > { %5588 = vrot.lane.b32.xlu1 %v7261_v59, %s6224_s27  ;;  %s7689_s27 = scalar_lea.vmem [#allocation18], %s6948_s28  ;;  %s6020_s28 = scalar_lea.vmem %s7376_s8, 128 }
0x15dd   : > { %p6021_p9 = scmp.ne.s32.totalorder %s7376_s8, %s6020_s28 }
0x1658   : > { %v3901_v1 = vpop.xlane.xlu1 %3900 }
0x1659   : > { %5624 = vrcp.f32 %v3901_v1 }
0x165c   : > { %v5589_v2 = vpop.permute.xlu1 %5588 }
0x165d   : > { %v5591_v3 = vunpack.i.h.bf16 %v5589_v2  ;;  %v5590_v5 = vunpack.i.l.bf16 %v5589_v2 }
0x165f   : > { %v5339_v8 = vpack.c.bf16 %v5591_v3, %v5590_v5 }
0x1663   : > { %v5625_v6 = vpop.eup %5624 }
0x1664   : > { %v3903_v59 = vmul.f32 %v5625_v6, %v5623_v43 }
0x1697   : > { %v3733_v11 = vpop.f32.mrb[20].mxu1 }
0x1698   : > { %v5224_v12 = vpop.f32.mrb[21].mxu1  ;;  %5228 = vmatmul.mubr.msk.f32.vlgmr.msra.gmra.mrb[22].mxu1 %vm1810_vm3, %v3733_v11 }
0x1699   : > { %5340 = vmatpush3.bf16.msra.mxu1 %v5339_v8  ;;  %5241 = vmatprep.mubr.msk.f32.mxu1 %vm6217_vm1, %v6218_v7 }
0x169a   : > { %5244 = vmatprep.subr.mxu1 %v6218_v7 }
0x169c   : > { %5242 = vmatmul.mubr.msk.f32.vlgmr.msra.gmra.mrb[24].mxu1 %vm3160_vm5, %v3903_v59 }
0x169d   : > { %5246 = vmatprep.mubr.msk.f32.mxu1 %vm6217_vm1, %v6218_v7  ;;  %5245 = vmatpush3.msra.mxu1 %v3072_v13 }
0x169e   : > { %5347 = vmatprep.subr.bf16.mxu1 %v6216_v4 }
0x176b   : > { %v3806_v15 = vpop.f32.mrb[22].mxu1 }
0x176c   : > { %v3810_v16 = vadd.f32 %v3806_v15, %v7300_v38  ;;  %v5229_v18 = vpop.f32.mrb[23].mxu1  ;;  %v4181_v38 = vld [vmem:[%s7032_s9 + $0x10] sm:$0xff]  ;;  %s7693_s9 = sld [smem:[#allocation79_spill]]  ;;  %v4944_v15 = vld [vmem:[%s7694_s26] ss:$0 sm:$0xff] }
0x176d   : > { %v5351_v25 = vpack.c.bf16 %v4182_v40, %v4181_v38  ;;  %v4945_v18 = vld [vmem:[%s1370_s22] ss:$0 sm:$0xff]  ;;  %s6226_s22 = smov [#allocation24]  }
0x176e   : > { %s6024_s10 = sshll.u32 %s6226_s22, 4  ;;  %s6025_s10 = int_to_ptr.vmem [resolvable:$false] %s6024_s10 }
0x176f   : > { %v3979_v17 = vpop.f32.mrb[24].mxu1  ;;  %s6026_s16 = scalar_lea.vmem %s6025_s10, 256  ;;  %p6027_p6 = scmp.lt.s32.totalorder %s7376_s8, %s6025_s10 }
0x1770   : > { %v5243_v20 = vpop.f32.mrb[25].mxu1  ;;  %5247 = vmatmul.mubr.msk.f32.vlgmr.msra.gmra.mrb[26].mxu1 %vm1810_vm3, %v3979_v17  ;;  %p6028_p1 = scmp.lt.s32.totalorder %s6026_s16, %s6020_s28 }
0x1771   : > { %5276 = vmatprep.mubr.msk.f32.mxu1 %vm6217_vm1, %v6218_v7  ;;  %5349 = vmatpush3.bf16.msra.mxu1 %v5348_v39 }
0x1772   : > { %5350 = vmatprep.subr.bf16.mxu1 %v6216_v4  ;;  %p7695_p11 = scmp.ne.s32.totalorder %s7693_s9, 0  ;;  %p6029_p3 = por %p6028_p1, %p6027_p6 }
0x1774   : > { %p6022_p12 = pnand %p6021_p9, %p7695_p11 }
0x1775   : > { %5352 = vmatpush3.bf16.msra.mxu1 %v5351_v25 }
0x1776   : > { %5353 = vmatprep.subr.bf16.mxu1 %v6216_v4  ;;  %p6023_p2 = pneg %p6022_p12 }
0x1778   : > { %p6030_p10 = pnand %p6029_p3, %p6023_p2 }
0x1779   : > { %5355 = vmatpush3.bf16.msra.mxu1 %v5354_v44 }
0x177a   : > { %5356 = vmatprep.subr.bf16.mxu1 %v6216_v4  ;;  %v4940_v4 = vld [vmem:[%s7689_s27] ss:$0 sm:$0xff] }
0x177d   : > { %5358 = vmatpush3.bf16.msra.mxu1 %v5357_v9 }
0x1843   : > { %v4052_v21 = vpop.f32.mrb[26].mxu1 }
0x1844   : > { %v4056_v22 = vadd.f32 %v4052_v21, %v3810_v16  ;;  %v5248_v23 = vpop.f32.mrb[27].mxu1 }
0x1846   : > { %v4063_v24 = vadd.f32 %v4937_v14, %v4056_v22 }
0x1848   : > { %v4064_v26 = vadd.f32 %v4063_v24, %v7202_v19  ;;  %v4096_v19 = vld [vmem:[%s7686_s13 + $0x10] sm:$0xff] }
0x1849   : > { %v5345_v36 = vpack.c.bf16 %v4097_v35, %v4096_v19 }
0x184a   : > { %v4067_v27 = vsel %vm1643_vm2, %v4064_v26, 0.0 }
0x184b   : > { %4068 = vadd.xlane.f32.xlu0 %v4067_v27  ;;  %5346 = vmatpush3.bf16.msra.mxu0 %v5345_v36 }
0x18d8   : > { %v4069_v10 = vpop.xlane.xlu0 %4068 }
0x18d9   : > { %v4070_v28 = vmul.f32 0.03125, %v4069_v10 }
0x18db   : > { %v4071_v7 = vsub.f32 %v4064_v26, %v4070_v28 }
0x18dd   : > { %v4072_v29 = vmul.f32 %v4071_v7, %v4071_v7 }
0x18df   : > { %v4073_v30 = vsel %vm1643_vm2, %v4072_v29, 0.0 }
0x18e0   : > { %4074 = vadd.xlane.f32.xlu1 %v4073_v30 }
0x196d   : > { %v4075_v45 = vpop.xlane.xlu1 %4074 }
0x196e   : > { %v4076_v46 = vmul.f32 0.03125, %v4075_v45 }
0x1970   : > { %v4077_v47 = vadd.f32 1e-05, %v4076_v46 }
0x1972   : > { %5626 = vrsqrt.f32 %v4077_v47 }
0x197c   : > { %v5627_v48 = vpop.eup %5626 }
0x197d   : > { %v4079_v50 = vmul.f32 %v5627_v48, %v4071_v7 }
0x197f   : > { %v4086_v52 = vmul.f32 %v4938_v49, %v4079_v50 }
0x1981   : > { %v4093_v53 = vadd.f32 %v4939_v51, %v4086_v52 }
0x1983   : > { %5258 = vmatmul.mubr.msk.f32.vlgmr.msra.gmra.mrb[30].mxu0 %vm1643_vm2, %v4093_v53 }
0x1a56   : > { %v4174_v56 = vpop.f32.mrb[30].mxu0 }
0x1a57   : > { %v4175_v57 = vadd.f32 %v4940_v4, %v4174_v56  ;;  %v5259_v58 = vpop.f32.mrb[31].mxu0 }
0x1a59   : > { %v4178_v60 = vmax.f32 %v4175_v57, 0.0 }
0x1a5b   : > { %5277 = vmatmul.mubr.msk.f32.vlgmr.msra.gmra.mrb[28].mxu1 %vm4194_vm6, %v4178_v60 }
0x1b2e   : > { %v4264_v62 = vpop.f32.mrb[28].mxu1 }
0x1b2f   : > { %v4265_v43 = vadd.f32 %v4942_v61, %v4264_v62  ;;  %v5278_v63 = vpop.f32.mrb[29].mxu1 }
0x1b31   : > { %v4268_v0 = vadd.f32 %v4265_v43, %v4093_v53 }
0x1b33   : > { %v4271_v1 = vsel %vm1643_vm2, %v4268_v0, 0.0 }
0x1b34   : > { %4272 = vadd.xlane.f32.xlu0 %v4271_v1 }
0x1bc1   : > { %v4273_v2 = vpop.xlane.xlu0 %4272 }
0x1bc2   : > { %v4274_v3 = vmul.f32 0.03125, %v4273_v2 }
0x1bc4   : > { %v4275_v5 = vsub.f32 %v4268_v0, %v4274_v3 }
0x1bc6   : > { %v4276_v6 = vmul.f32 %v4275_v5, %v4275_v5 }
0x1bc8   : > { %v4277_v8 = vsel %vm1643_vm2, %v4276_v6, 0.0 }
0x1bc9   : > { %4278 = vadd.xlane.f32.xlu0 %v4277_v8 }
0x1c56   : > { %v4279_v11 = vpop.xlane.xlu0 %4278 }
0x1c57   : > { %v4280_v12 = vmul.f32 0.03125, %v4279_v11 }
0x1c59   : > { %v4281_v59 = vadd.f32 1e-05, %v4280_v12 }
0x1c5b   : > { %5628 = vrsqrt.f32 %v4281_v59 }
0x1c65   : > { %v5629_v13 = vpop.eup %5628 }
0x1c66   : > { %v4283_v16 = vmul.f32 %v5629_v13, %v4275_v5 }
0x1c68   : > { %v4290_v17 = vmul.f32 %v4944_v15, %v4283_v16 }
0x1c6a   : > { %v4297_v20 = vadd.f32 %v4945_v18, %v4290_v17 }
0x1c6c   : > { %4298 = vst.msk [vmem:[%s7051_s1] sm:$0xff] %vm1643_vm2, %v4297_v20  ;;  %4299 = vst.msk [vmem:[%s1556_s20] sm:$0xff] %vm1643_vm2, %v4297_v20 }
0x1c6d   : > { %6033 = shalt.err (!%p6030_p10)
}
0x1c6e   : > { %s6034_s6 = scalar_lea.hbm %s7374_s17, 128  ;;  %s6038_s20 = scalar_lea.hbm %s7691_s30, 256 }
0x1c6f   : > { %p6035_p7 = scmp.ne.s32.totalorder %s7374_s17, %s6034_s6  ;;  %p6039_p4 = scmp.lt.u32.totalorder %s7374_s17, %s7691_s30 }
0x1c70   : > { %p6040_p8 = scmp.lt.u32.totalorder %s6038_s20, %s6034_s6  ;;  %p6042_p9 = scmp.lt.u32.totalorder %s6034_s6, %s7374_s17 }
0x1c71   : > { %p6036_p0 = pnand %p6035_p7, %p7695_p11 }
0x1c72   : > { %p6041_p5 = por %p6040_p8, %p6039_p4 }
0x1c73   : > { %p6037_p13 = pneg %p6036_p0 }
0x1c74   : > { %p6043_p12 = por %p6042_p9, %p6041_p5 }
0x1c76   : > { %p6044_p2 = pnand %p6043_p12, %p6037_p13 }
0x1c78   : > { %6047 = shalt.err (!%p6044_p2)
}
0x1c79   : > { %5385 = dma.vmem_to_hbm [thread:$0]  (%p7695_p11), %s7376_s8, 128, %s7374_s17, %s4301_s12  }
0x1c7a PF: > { %s7696_s1 = sld [smem:[#allocation73_spill]]  ;;  %s7697_s2 = sld [smem:[#allocation66_spill]] }
0x1c7b   : > { %s7698_s19 = sld [smem:[#allocation80_spill]] }
0x1c80   : > { %p5432_p6 = scmp.ge.s32.totalorder %s7696_s1, 2  ;;  %s4326_s29 = sand.u32 1, %s7697_s2  }
0x1c81   : > { %p7699_p1 = scmp.ne.s32.totalorder %s7698_s19, 0  ;;  %s4327_s5 = scalar_lea.sflag [#allocation5], %s4326_s29 }
0x1c83   : > { %p5428_p3 = pnand %p5432_p6, %p7699_p1 }
0x1c85   : > { %6125 = dma.done.wait (!%p5428_p3), %s4327_s5, 128  }
0x1c86   : > { %6127 = vsyncadd (!%p5428_p3), %s4327_s5, 4294967168  ;;  %s93_s28 = sadd.s32 1, %s7696_s1   ;;  %s7700_s7 = sld [smem:[#allocation64_spill]] }
0x1c87   : > { %p90_p10 = scmp.ge.s32.totalorder %s93_s28, 6   ;;  %s7701_s0 = sld [smem:[#allocation65_spill]] }
0x1c88   : > { %s7702_s10 = sld [smem:[#allocation83_spill]]  ;;  %s7703_s11 = sld [smem:[#allocation67_spill]] }
0x1c89   : > { %s7704_s15 = sld [smem:[#allocation68_spill]]  ;;  %s7705_s16 = sld [smem:[#allocation77_spill]] }
0x1c8a   : > { %s7706_s18 = sld [smem:[#allocation71_spill]]  ;;  %s7707_s22 = sld [smem:[#allocation72_spill]] }
0x1c8b   : > { %s7708_s23 = sld [smem:[#allocation75_spill]]  ;;  %s7709_s26 = sld [smem:[#allocation82_spill]] }
0x1c8c   :  { %92 = sbr.rel (!%p90_p10) target bundleno = 85 (0x55), region = 408 }
0x1c93   :  { %4332 = vsyncpa [#allocation4], 1 }
0x1c94   :  { %4334 = vsyncpa [#allocation4 + $0x1], 1 }
0x1c95   :  { %4335 = vsyncpa [#allocation7], 1 }
0x1c96   :  { %4337 = vsyncpa [#allocation7 + $0x1], 1 }
0x1c97   :  { %4338 = vsyncpa [#allocation10], 1 }
0x1c98   :  { %4340 = vsyncpa [#allocation10 + $0x1], 1 }
0x1c99   :  { %4341 = vsyncpa [#allocation13], 1 }
0x1c9a   :  { %4343 = vsyncpa [#allocation13 + $0x1], 1 }
0x1c9b   :  { %4344 = vsyncpa [#allocation16], 1 }
0x1c9c   :  { %4346 = vsyncpa [#allocation16 + $0x1], 1 }
0x1c9d   :  { %4347 = vsyncpa [#allocation19], 1 }
0x1c9e   :  { %4349 = vsyncpa [#allocation19 + $0x1], 1 }
0x1c9f   :  { %4350 = vsyncpa [#allocation22], 1 }
0x1ca0   :  { %4352 = vsyncpa [#allocation22 + $0x1], 1 }
0x1ca1   :  { %4353 = vsyncpa [#allocation5], 1 }
0x1ca2   :  { %4355 = vsyncpa [#allocation5 + $0x1], 1 }

</bundles_post_ra>
